<compile_context>
chip_gen: v7x
topology: tpu7x:2x2x1
jax: 0.10.0
libtpu: 0.0.40
codegen_flags: <defaults>
</compile_context>

<pallas_src>
import jax
import jax.numpy as jnp
from jax import lax
from jax.experimental import pallas as pl
from jax.experimental.pallas import tpu as pltpu

IN = 2048        # instance feature dim
L = 500          # fc output dim (logical)
L_PAD = 512      # lane-aligned fc output dim
D = 128          # attention hidden dim
K = 1            # attention heads
P_HID = 100      # proj hidden (logical)
P_HID_PAD = 128
OUT = 10         # proj output (logical)
OUT_PAD = 128


def _round_up(a, b):
    return (a + b - 1) // b * b


def _pad2(a, rows, cols):
    return jnp.pad(a, ((0, rows - a.shape[0]), (0, cols - a.shape[1])))


def _attention_kernel(n_ref, x_ref, w_fc_ref, b_fc_ref,
                      wa1_ref, ba1_ref, wa2_ref, ba2_ref,
                      wp1_ref, bp1_ref, wp2_ref, bp2_ref,
                      out_ref, m_sc, l_sc, acc_sc):
    i = pl.program_id(0)
    tile_n = x_ref.shape[0]

    @pl.when(i == 0)
    def _init():
        m_sc[...] = jnp.full(m_sc.shape, -jnp.inf, jnp.float32)
        l_sc[...] = jnp.zeros(l_sc.shape, jnp.float32)
        acc_sc[...] = jnp.zeros(acc_sc.shape, jnp.float32)

    # fc: (TILE_N, 2048)bf16 @ (2048, 512)bf16 -> f32 acc, + bias, ReLU
    h = jnp.dot(x_ref[...], w_fc_ref[...], preferred_element_type=jnp.float32)
    h = jnp.maximum(h + b_fc_ref[...], 0.0)                       # (TILE_N, 512) f32

    # attention scores: tanh(H @ Wa1 + ba1) . wa2_row  (VPU lane reduce, no 1-wide MXU)
    t = jnp.dot(h.astype(jnp.bfloat16), wa1_ref[...],
                preferred_element_type=jnp.float32) + ba1_ref[...]
    t = jnp.tanh(t)                                               # (TILE_N, 128) f32
    a = jnp.sum(t * wa2_ref[...], axis=-1, keepdims=True) + ba2_ref[...]  # (TILE_N, 1)

    # mask rows past the true N (x was zero-padded to a multiple of TILE_N)
    row = i * tile_n + lax.broadcasted_iota(jnp.int32, (tile_n, 1), 0)
    a = jnp.where(row < n_ref[0], a, -jnp.inf)

    # online softmax over the instance axis
    m_prev = m_sc[...]                                            # (1, 1)
    m_new = jnp.maximum(m_prev, jnp.max(a, axis=0, keepdims=True))
    alpha = jnp.exp(m_prev - m_new)
    p = jnp.exp(a - m_new)                                        # (TILE_N, 1)
    l_sc[...] = alpha * l_sc[...] + jnp.sum(p, axis=0, keepdims=True)
    # pooled partial: p^T @ H on the MXU (LHS-transposed contraction) -> (1, 512)
    acc_sc[...] = alpha * acc_sc[...] + lax.dot_general(
        p, h, (((0,), (0,)), ((), ())), preferred_element_type=jnp.float32)
    m_sc[...] = m_new

    @pl.when(i == pl.num_programs(0) - 1)
    def _finalize():
        m = acc_sc[...] * pl.reciprocal(l_sc[...], approx=True)   # (1, 512)
        p1 = jnp.dot(m.astype(jnp.bfloat16), wp1_ref[...],
                     preferred_element_type=jnp.float32) + bp1_ref[...]
        p1 = jnp.maximum(p1, 0.0)                                 # (1, 128)
        logits = jnp.dot(p1.astype(jnp.bfloat16), wp2_ref[...],
                         preferred_element_type=jnp.float32) + bp2_ref[...]
        out_ref[...] = 1.0 / (1.0 + jnp.exp(-logits))             # (1, 128)


def attention_forward(x, params, tile_n=256):
    """x: (1, N, 1, 2048) float32 -> (1, 10) float32."""
    x2d = x[0, :, 0, :]                       # squeeze(0), squeeze(1) -> (N, 2048)
    n = x2d.shape[0]
    tile_n = min(tile_n, _round_up(n, 8))
    n_pad = _round_up(n, tile_n)
    num_tiles = n_pad // tile_n

    x_p = jnp.pad(x2d, ((0, n_pad - n), (0, 0))).astype(jnp.bfloat16)

    # pre-pad / pre-cast weights (wrapper-side plumbing; zero padding is inert)
    w_fc = _pad2(params["w_fc"], IN, L_PAD).astype(jnp.bfloat16)
    b_fc = _pad2(params["b_fc"], 1, L_PAD)
    wa1 = _pad2(params["wa1"], L_PAD, D).astype(jnp.bfloat16)
    ba1 = params["ba1"]
    wa2_row = params["wa2"].T                                     # (1, 128) f32 (VPU)
    ba2 = params["ba2"]                                           # (1, 1) f32
    wp1 = _pad2(params["wp1"], L_PAD, P_HID_PAD).astype(jnp.bfloat16)
    bp1 = _pad2(params["bp1"], 1, P_HID_PAD)
    wp2 = _pad2(params["wp2"], P_HID_PAD, OUT_PAD).astype(jnp.bfloat16)
    bp2 = _pad2(params["bp2"], 1, OUT_PAD)
    n_arr = jnp.array([n], dtype=jnp.int32)

    const = lambda i: (0, 0)
    out = pl.pallas_call(
        _attention_kernel,
        out_shape=jax.ShapeDtypeStruct((1, OUT_PAD), jnp.float32),
        grid=(num_tiles,),
        in_specs=[
            pl.BlockSpec(memory_space=pltpu.MemorySpace.SMEM),    # n (scalar)
            pl.BlockSpec((tile_n, IN), lambda i: (i, 0)),         # x tiles (streamed)
            pl.BlockSpec((IN, L_PAD), const),                     # w_fc   (resident)
            pl.BlockSpec((1, L_PAD), const),                      # b_fc
            pl.BlockSpec((L_PAD, D), const),                      # wa1
            pl.BlockSpec((1, D), const),                          # ba1
            pl.BlockSpec((1, D), const),                          # wa2 row
            pl.BlockSpec((1, 1), const),                          # ba2
            pl.BlockSpec((L_PAD, P_HID_PAD), const),              # wp1
            pl.BlockSpec((1, P_HID_PAD), const),                  # bp1
            pl.BlockSpec((P_HID_PAD, OUT_PAD), const),            # wp2
            pl.BlockSpec((1, OUT_PAD), const),                    # bp2
        ],
        out_specs=pl.BlockSpec((1, OUT_PAD), const),
        scratch_shapes=[
            pltpu.VMEM((1, 1), jnp.float32),        # running max
            pltpu.VMEM((1, 1), jnp.float32),        # running softmax denominator
            pltpu.VMEM((1, L_PAD), jnp.float32),    # running weighted sum of H
        ],
        compiler_params=pltpu.CompilerParams(
            dimension_semantics=("arbitrary",),
            vmem_limit_bytes=48 * 1024 * 1024,
        ),
    )(n_arr, x_p, w_fc, b_fc, wa1, ba1, wa2_row, ba2, wp1, bp1, wp2, bp2)
    return out[:, :OUT]


def init_params(key):
    """Deterministic synthetic weights, same shapes as the PyTorch module.
    Stored pre-transposed: (in_features, out_features). Biases as (1, out). f32."""
    ks = jax.random.split(key, 10)

    def linear(kw, kb, fan_in, fan_out):
        bound = 1.0 / jnp.sqrt(fan_in)
        w = jax.random.uniform(kw, (fan_in, fan_out), jnp.float32, -bound, bound)
        b = jax.random.uniform(kb, (1, fan_out), jnp.float32, -bound, bound)
        return w, b

    w_fc, b_fc = linear(ks[0], ks[1], IN, L)
    wa1, ba1 = linear(ks[2], ks[3], L, D)
    wa2, ba2 = linear(ks[4], ks[5], D, K)
    wp1, bp1 = linear(ks[6], ks[7], L * K, P_HID)
    wp2, bp2 = linear(ks[8], ks[9], P_HID, OUT)
    return dict(w_fc=w_fc, b_fc=b_fc, wa1=wa1, ba1=ba1, wa2=wa2, ba2=ba2,
                wp1=wp1, bp1=bp1, wp2=wp2, bp2=bp2)


def reference_forward(x, params):
    """Pure-JAX f32 reference (mirrors the PyTorch module)."""
    x2d = x[0, :, 0, :]
    h = jnp.maximum(x2d @ params["w_fc"] + params["b_fc"], 0.0)
    a = jnp.tanh(h @ params["wa1"] + params["ba1"]) @ params["wa2"] + params["ba2"]
    a = jax.nn.softmax(a.T, axis=1)          # (1, N)
    m = a @ h                                 # (1, L)
    p = jnp.maximum(m @ params["wp1"] + params["bp1"], 0.0)
    return jax.nn.sigmoid(p @ params["wp2"] + params["bp2"])


if __name__ == "__main__":
    key = jax.random.PRNGKey(0)
    k_x, k_p = jax.random.split(key)

    # Small bag, but large enough (with tile_n=128) to exercise the multi-tile
    # online-softmax path and the padded-row masking (300 -> 3 tiles of 128).
    N = 300
    x = jax.random.normal(k_x, (1, N, 1, IN), dtype=jnp.float32)
    params = init_params(k_p)

    out = attention_forward(x, params, tile_n=128)
    out = jax.block_until_ready(out)

    ref = reference_forward(x, params)
    assert out.shape == (1, OUT)
    # bf16 matmul weights vs f32 reference: allow ~1e-2 deviation (sigmoid-squashed).
    assert jnp.allclose(out, ref, atol=2e-2, rtol=2e-2), (out, ref)

    print("KERNEL_OK")
</pallas_src>

<mosaic_0001>
module attributes {stable_mosaic.version = 11 : i64} {
  func.func @_attention_kernel(%arg0: i32, %arg1: memref<1xi32, #tpu.memory_space<smem>>, %arg2: memref<128x2048xbf16, #tpu.memory_space<vmem>>, %arg3: memref<2048x512xbf16, #tpu.memory_space<vmem>>, %arg4: memref<1x512xf32, #tpu.memory_space<vmem>>, %arg5: memref<512x128xbf16, #tpu.memory_space<vmem>>, %arg6: memref<1x128xf32, #tpu.memory_space<vmem>>, %arg7: memref<1x128xf32, #tpu.memory_space<vmem>>, %arg8: memref<1x1xf32, #tpu.memory_space<vmem>>, %arg9: memref<512x128xbf16, #tpu.memory_space<vmem>>, %arg10: memref<1x128xf32, #tpu.memory_space<vmem>>, %arg11: memref<128x128xbf16, #tpu.memory_space<vmem>>, %arg12: memref<1x128xf32, #tpu.memory_space<vmem>>, %arg13: memref<1x128xf32, #tpu.memory_space<vmem>>, %arg14: memref<1x1xf32, #tpu.memory_space<vmem>>, %arg15: memref<1x1xf32, #tpu.memory_space<vmem>>, %arg16: memref<1x512xf32, #tpu.memory_space<vmem>>) attributes {dimension_semantics = [#tpu.dimension_semantics<arbitrary>], iteration_bounds = array<i64: 3>, scalar_prefetch = 0 : i64, scratch_operands = 3 : i64, tpu.core_type = #tpu.core_type<tc>, window_params = [{transform_indices = @transform_0, window_bounds = array<i64: 1>}, {transform_indices = @transform_1, window_bounds = array<i64: 128, 2048>}, {pipeline_mode = #tpu.pipeline_mode<synchronous>, transform_indices = @transform_2, window_bounds = array<i64: 2048, 512>}, {pipeline_mode = #tpu.pipeline_mode<synchronous>, transform_indices = @transform_3, window_bounds = array<i64: 1, 512>}, {pipeline_mode = #tpu.pipeline_mode<synchronous>, transform_indices = @transform_4, window_bounds = array<i64: 512, 128>}, {pipeline_mode = #tpu.pipeline_mode<synchronous>, transform_indices = @transform_5, window_bounds = array<i64: 1, 128>}, {pipeline_mode = #tpu.pipeline_mode<synchronous>, transform_indices = @transform_6, window_bounds = array<i64: 1, 128>}, {pipeline_mode = #tpu.pipeline_mode<synchronous>, transform_indices = @transform_7, window_bounds = array<i64: 1, 1>}, {pipeline_mode = #tpu.pipeline_mode<synchronous>, transform_indices = @transform_8, window_bounds = array<i64: 512, 128>}, {pipeline_mode = #tpu.pipeline_mode<synchronous>, transform_indices = @transform_9, window_bounds = array<i64: 1, 128>}, {pipeline_mode = #tpu.pipeline_mode<synchronous>, transform_indices = @transform_10, window_bounds = array<i64: 128, 128>}, {pipeline_mode = #tpu.pipeline_mode<synchronous>, transform_indices = @transform_11, window_bounds = array<i64: 1, 128>}, {pipeline_mode = #tpu.pipeline_mode<synchronous>, transform_indices = @transform_12, window_bounds = array<i64: 1, 128>}]} {
    %c0_i32 = arith.constant 0 : i32
    %0 = arith.cmpi eq, %arg0, %c0_i32 : i32
    %1 = arith.extui %0 : i1 to i32
    %c0_i32_0 = arith.constant 0 : i32
    %2 = arith.cmpi ne, %1, %c0_i32_0 : i32
    scf.if %2 {
      %cst_35 = arith.constant 0xFF800000 : f32
      %60 = vector.broadcast %cst_35 : f32 to vector<1x1xf32>
      %c0_36 = arith.constant 0 : index
      %c0_37 = arith.constant 0 : index
      %61 = vector.load %arg14[%c0_36, %c0_37] : memref<1x1xf32, #tpu.memory_space<vmem>>, vector<1x1xf32>
      tpu.vector_store %arg14[%c0_36, %c0_37], %60 {strides = array<i32>} : memref<1x1xf32, #tpu.memory_space<vmem>>, vector<1x1xf32>,
      %cst_38 = arith.constant 0.000000e+00 : f32
      %62 = vector.broadcast %cst_38 : f32 to vector<1x1xf32>
      %c0_39 = arith.constant 0 : index
      %c0_40 = arith.constant 0 : index
      %63 = vector.load %arg15[%c0_39, %c0_40] : memref<1x1xf32, #tpu.memory_space<vmem>>, vector<1x1xf32>
      tpu.vector_store %arg15[%c0_39, %c0_40], %62 {strides = array<i32>} : memref<1x1xf32, #tpu.memory_space<vmem>>, vector<1x1xf32>,
      %cst_41 = arith.constant 0.000000e+00 : f32
      %64 = vector.broadcast %cst_41 : f32 to vector<1x512xf32>
      %c0_42 = arith.constant 0 : index
      %c0_43 = arith.constant 0 : index
      %65 = vector.load %arg16[%c0_42, %c0_43] : memref<1x512xf32, #tpu.memory_space<vmem>>, vector<1x512xf32>
      tpu.vector_store %arg16[%c0_42, %c0_43], %64 {strides = array<i32>} : memref<1x512xf32, #tpu.memory_space<vmem>>, vector<1x512xf32>,
    } else {
    }
    %c0 = arith.constant 0 : index
    %c0_1 = arith.constant 0 : index
    %3 = vector.load %arg2[%c0, %c0_1] : memref<128x2048xbf16, #tpu.memory_space<vmem>>, vector<128x2048xbf16>
    %c0_2 = arith.constant 0 : index
    %c0_3 = arith.constant 0 : index
    %4 = vector.load %arg3[%c0_2, %c0_3] : memref<2048x512xbf16, #tpu.memory_space<vmem>>, vector<2048x512xbf16>
    %cst = arith.constant dense<0.000000e+00> : vector<128x512xf32>
    %5 = tpu.matmul %3, %4, %cst {dimension_numbers = #tpu.dot_dimension_numbers<[1], [0], [0], [1], [0, 0, 1, 1], [], []>} : vector<128x2048xbf16>, vector<2048x512xbf16>, vector<128x512xf32> -> vector<128x512xf32>
    %c0_4 = arith.constant 0 : index
    %c0_5 = arith.constant 0 : index
    %6 = vector.load %arg4[%c0_4, %c0_5] : memref<1x512xf32, #tpu.memory_space<vmem>>, vector<1x512xf32>
    %7 = vector.broadcast %6 : vector<1x512xf32> to vector<128x512xf32>
    %8 = arith.addf %5, %7 : vector<128x512xf32>
    %cst_6 = arith.constant 0.000000e+00 : f32
    %9 = vector.broadcast %cst_6 : f32 to vector<128x512xf32>
    %10 = arith.maximumf %8, %9 : vector<128x512xf32>
    %11 = arith.truncf %10 : vector<128x512xf32> to vector<128x512xbf16>
    %c0_7 = arith.constant 0 : index
    %c0_8 = arith.constant 0 : index
    %12 = vector.load %arg5[%c0_7, %c0_8] : memref<512x128xbf16, #tpu.memory_space<vmem>>, vector<512x128xbf16>
    %cst_9 = arith.constant dense<0.000000e+00> : vector<128x128xf32>
    %13 = tpu.matmul %11, %12, %cst_9 {dimension_numbers = #tpu.dot_dimension_numbers<[1], [0], [0], [1], [0, 0, 1, 1], [], []>} : vector<128x512xbf16>, vector<512x128xbf16>, vector<128x128xf32> -> vector<128x128xf32>
    %c0_10 = arith.constant 0 : index
    %c0_11 = arith.constant 0 : index
    %14 = vector.load %arg6[%c0_10, %c0_11] : memref<1x128xf32, #tpu.memory_space<vmem>>, vector<1x128xf32>
    %15 = vector.broadcast %14 : vector<1x128xf32> to vector<128x128xf32>
    %16 = arith.addf %13, %15 : vector<128x128xf32>
    %17 = math.tanh %16 : vector<128x128xf32>
    %c0_12 = arith.constant 0 : index
    %c0_13 = arith.constant 0 : index
    %18 = vector.load %arg7[%c0_12, %c0_13] : memref<1x128xf32, #tpu.memory_space<vmem>>, vector<1x128xf32>
    %19 = vector.broadcast %18 : vector<1x128xf32> to vector<128x128xf32>
    %20 = arith.mulf %17, %19 : vector<128x128xf32>
    %cst_14 = arith.constant dense<0.000000e+00> : vector<128xf32>
    %21 = vector.multi_reduction <add>, %20, %cst_14 [1] : vector<128x128xf32> to vector<128xf32>
    %22 = vector.shape_cast %21 : vector<128xf32> to vector<128x1xf32>
    %c0_15 = arith.constant 0 : index
    %c0_16 = arith.constant 0 : index
    %23 = vector.load %arg8[%c0_15, %c0_16] : memref<1x1xf32, #tpu.memory_space<vmem>>, vector<1x1xf32>
    %24 = vector.broadcast %23 : vector<1x1xf32> to vector<128x1xf32>
    %25 = arith.addf %22, %24 : vector<128x1xf32>
    %c128_i32 = arith.constant 128 : i32
    %26 = arith.muli %arg0, %c128_i32 : i32
    %27 = tpu.iota {dimensions = array<i32: 0>} : vector<128x1xi32>
    %28 = vector.broadcast %26 : i32 to vector<128x1xi32>
    %29 = arith.addi %28, %27 : vector<128x1xi32>
    %c0_17 = arith.constant 0 : index
    %30 = memref.load %arg1[%c0_17] : memref<1xi32, #tpu.memory_space<smem>>
    %31 = vector.broadcast %30 : i32 to vector<128x1xi32>
    %32 = arith.cmpi slt, %29, %31 : vector<128x1xi32>
    %cst_18 = arith.constant 0xFF800000 : f32
    %33 = vector.broadcast %cst_18 : f32 to vector<128x1xf32>
    %34 = arith.select %32, %25, %33 : vector<128x1xi1>, vector<128x1xf32>
    %c0_19 = arith.constant 0 : index
    %c0_20 = arith.constant 0 : index
    %35 = vector.load %arg14[%c0_19, %c0_20] : memref<1x1xf32, #tpu.memory_space<vmem>>, vector<1x1xf32>
    %cst_21 = arith.constant dense<0xFF800000> : vector<1xf32>
    %36 = vector.multi_reduction <maximumf>, %34, %cst_21 [0] : vector<128x1xf32> to vector<1xf32>
    %37 = vector.shape_cast %36 : vector<1xf32> to vector<1x1xf32>
    %38 = arith.maximumf %35, %37 : vector<1x1xf32>
    %39 = arith.subf %35, %38 : vector<1x1xf32>
    %40 = math.exp %39 : vector<1x1xf32>
    %41 = vector.broadcast %38 : vector<1x1xf32> to vector<128x1xf32>
    %42 = arith.subf %34, %41 : vector<128x1xf32>
    %43 = math.exp %42 : vector<128x1xf32>
    %c0_22 = arith.constant 0 : index
    %c0_23 = arith.constant 0 : index
    %44 = vector.load %arg15[%c0_22, %c0_23] : memref<1x1xf32, #tpu.memory_space<vmem>>, vector<1x1xf32>
    %45 = arith.mulf %40, %44 : vector<1x1xf32>
    %cst_24 = arith.constant dense<0.000000e+00> : vector<1xf32>
    %46 = vector.multi_reduction <add>, %43, %cst_24 [0] : vector<128x1xf32> to vector<1xf32>
    %47 = vector.shape_cast %46 : vector<1xf32> to vector<1x1xf32>
    %48 = arith.addf %45, %47 : vector<1x1xf32>
    %c0_25 = arith.constant 0 : index
    %c0_26 = arith.constant 0 : index
    %49 = vector.load %arg15[%c0_25, %c0_26] : memref<1x1xf32, #tpu.memory_space<vmem>>, vector<1x1xf32>
    tpu.vector_store %arg15[%c0_25, %c0_26], %48 {strides = array<i32>} : memref<1x1xf32, #tpu.memory_space<vmem>>, vector<1x1xf32>,
    %c0_27 = arith.constant 0 : index
    %c0_28 = arith.constant 0 : index
    %50 = vector.load %arg16[%c0_27, %c0_28] : memref<1x512xf32, #tpu.memory_space<vmem>>, vector<1x512xf32>
    %51 = vector.broadcast %40 : vector<1x1xf32> to vector<1x512xf32>
    %52 = arith.mulf %51, %50 : vector<1x512xf32>
    %cst_29 = arith.constant dense<0.000000e+00> : vector<1x512xf32>
    %53 = tpu.matmul %43, %10, %cst_29 {dimension_numbers = #tpu.dot_dimension_numbers<[0], [0], [1], [1], [0, 1, 1, 1], [], []>} : vector<128x1xf32>, vector<128x512xf32>, vector<1x512xf32> -> vector<1x512xf32>
    %54 = arith.addf %52, %53 : vector<1x512xf32>
    %c0_30 = arith.constant 0 : index
    %c0_31 = arith.constant 0 : index
    %55 = vector.load %arg16[%c0_30, %c0_31] : memref<1x512xf32, #tpu.memory_space<vmem>>, vector<1x512xf32>
    tpu.vector_store %arg16[%c0_30, %c0_31], %54 {strides = array<i32>} : memref<1x512xf32, #tpu.memory_space<vmem>>, vector<1x512xf32>,
    %c0_32 = arith.constant 0 : index
    %c0_33 = arith.constant 0 : index
    %56 = vector.load %arg14[%c0_32, %c0_33] : memref<1x1xf32, #tpu.memory_space<vmem>>, vector<1x1xf32>
    tpu.vector_store %arg14[%c0_32, %c0_33], %38 {strides = array<i32>} : memref<1x1xf32, #tpu.memory_space<vmem>>, vector<1x1xf32>,
    %c2_i32 = arith.constant 2 : i32
    %57 = arith.cmpi eq, %arg0, %c2_i32 : i32
    %58 = arith.extui %57 : i1 to i32
    %c0_i32_34 = arith.constant 0 : i32
    %59 = arith.cmpi ne, %58, %c0_i32_34 : i32
    scf.if %59 {
      %c0_35 = arith.constant 0 : index
      %c0_36 = arith.constant 0 : index
      %60 = vector.load %arg16[%c0_35, %c0_36] : memref<1x512xf32, #tpu.memory_space<vmem>>, vector<1x512xf32>
      %c0_37 = arith.constant 0 : index
      %c0_38 = arith.constant 0 : index
      %61 = vector.load %arg15[%c0_37, %c0_38] : memref<1x1xf32, #tpu.memory_space<vmem>>, vector<1x1xf32>
      %62 = tpu.reciprocal %61 {approx = true} : vector<1x1xf32> -> vector<1x1xf32>
      %63 = vector.broadcast %62 : vector<1x1xf32> to vector<1x512xf32>
      %64 = arith.mulf %60, %63 : vector<1x512xf32>
      %65 = arith.truncf %64 : vector<1x512xf32> to vector<1x512xbf16>
      %c0_39 = arith.constant 0 : index
      %c0_40 = arith.constant 0 : index
      %66 = vector.load %arg9[%c0_39, %c0_40] : memref<512x128xbf16, #tpu.memory_space<vmem>>, vector<512x128xbf16>
      %cst_41 = arith.constant dense<0.000000e+00> : vector<1x128xf32>
      %67 = tpu.matmul %65, %66, %cst_41 {dimension_numbers = #tpu.dot_dimension_numbers<[1], [0], [0], [1], [0, 0, 1, 1], [], []>} : vector<1x512xbf16>, vector<512x128xbf16>, vector<1x128xf32> -> vector<1x128xf32>
      %c0_42 = arith.constant 0 : index
      %c0_43 = arith.constant 0 : index
      %68 = vector.load %arg10[%c0_42, %c0_43] : memref<1x128xf32, #tpu.memory_space<vmem>>, vector<1x128xf32>
      %69 = arith.addf %67, %68 : vector<1x128xf32>
      %cst_44 = arith.constant 0.000000e+00 : f32
      %70 = vector.broadcast %cst_44 : f32 to vector<1x128xf32>
      %71 = arith.maximumf %69, %70 : vector<1x128xf32>
      %72 = arith.truncf %71 : vector<1x128xf32> to vector<1x128xbf16>
      %c0_45 = arith.constant 0 : index
      %c0_46 = arith.constant 0 : index
      %73 = vector.load %arg11[%c0_45, %c0_46] : memref<128x128xbf16, #tpu.memory_space<vmem>>, vector<128x128xbf16>
      %cst_47 = arith.constant dense<0.000000e+00> : vector<1x128xf32>
      %74 = tpu.matmul %72, %73, %cst_47 {dimension_numbers = #tpu.dot_dimension_numbers<[1], [0], [0], [1], [0, 0, 1, 1], [], []>} : vector<1x128xbf16>, vector<128x128xbf16>, vector<1x128xf32> -> vector<1x128xf32>
      %c0_48 = arith.constant 0 : index
      %c0_49 = arith.constant 0 : index
      %75 = vector.load %arg12[%c0_48, %c0_49] : memref<1x128xf32, #tpu.memory_space<vmem>>, vector<1x128xf32>
      %76 = arith.addf %74, %75 : vector<1x128xf32>
      %cst_50 = arith.constant 0.000000e+00 : f32
      %77 = vector.broadcast %cst_50 : f32 to vector<1x128xf32>
      %78 = arith.subf %77, %76 : vector<1x128xf32>
      %79 = math.exp %78 : vector<1x128xf32>
      %cst_51 = arith.constant 1.000000e+00 : f32
      %80 = vector.broadcast %cst_51 : f32 to vector<1x128xf32>
      %81 = arith.addf %80, %79 : vector<1x128xf32>
      %cst_52 = arith.constant 1.000000e+00 : f32
      %82 = vector.broadcast %cst_52 : f32 to vector<1x128xf32>
      %83 = arith.divf %82, %81 : vector<1x128xf32>
      %c0_53 = arith.constant 0 : index
      %c0_54 = arith.constant 0 : index
      %84 = vector.load %arg13[%c0_53, %c0_54] : memref<1x128xf32, #tpu.memory_space<vmem>>, vector<1x128xf32>
      tpu.vector_store %arg13[%c0_53, %c0_54], %83 {strides = array<i32>} : memref<1x128xf32, #tpu.memory_space<vmem>>, vector<1x128xf32>,
    } else {
    }
    return
  }
  func.func @transform_0(%arg0: i32) -> i32 {
    %c0_i32 = arith.constant 0 : i32
    %c0_i32_0 = arith.constant 0 : i32
    return %c0_i32 : i32
  }
  func.func @transform_1(%arg0: i32) -> (i32, i32) {
    %c0_i32 = arith.constant 0 : i32
    %c0_i32_0 = arith.constant 0 : i32
    return %arg0, %c0_i32 : i32, i32
  }
  func.func @transform_2(%arg0: i32) -> (i32, i32) {
    %c0_i32 = arith.constant 0 : i32
    %c0_i32_0 = arith.constant 0 : i32
    %c0_i32_1 = arith.constant 0 : i32
    return %c0_i32, %c0_i32_0 : i32, i32
  }
  func.func @transform_3(%arg0: i32) -> (i32, i32) {
    %c0_i32 = arith.constant 0 : i32
    %c0_i32_0 = arith.constant 0 : i32
    %c0_i32_1 = arith.constant 0 : i32
    return %c0_i32, %c0_i32_0 : i32, i32
  }
  func.func @transform_4(%arg0: i32) -> (i32, i32) {
    %c0_i32 = arith.constant 0 : i32
    %c0_i32_0 = arith.constant 0 : i32
    %c0_i32_1 = arith.constant 0 : i32
    return %c0_i32, %c0_i32_0 : i32, i32
  }
  func.func @transform_5(%arg0: i32) -> (i32, i32) {
    %c0_i32 = arith.constant 0 : i32
    %c0_i32_0 = arith.constant 0 : i32
    %c0_i32_1 = arith.constant 0 : i32
    return %c0_i32, %c0_i32_0 : i32, i32
  }
  func.func @transform_6(%arg0: i32) -> (i32, i32) {
    %c0_i32 = arith.constant 0 : i32
    %c0_i32_0 = arith.constant 0 : i32
    %c0_i32_1 = arith.constant 0 : i32
    return %c0_i32, %c0_i32_0 : i32, i32
  }
  func.func @transform_7(%arg0: i32) -> (i32, i32) {
    %c0_i32 = arith.constant 0 : i32
    %c0_i32_0 = arith.constant 0 : i32
    %c0_i32_1 = arith.constant 0 : i32
    return %c0_i32, %c0_i32_0 : i32, i32
  }
  func.func @transform_8(%arg0: i32) -> (i32, i32) {
    %c0_i32 = arith.constant 0 : i32
    %c0_i32_0 = arith.constant 0 : i32
    %c0_i32_1 = arith.constant 0 : i32
    return %c0_i32, %c0_i32_0 : i32, i32
  }
  func.func @transform_9(%arg0: i32) -> (i32, i32) {
    %c0_i32 = arith.constant 0 : i32
    %c0_i32_0 = arith.constant 0 : i32
    %c0_i32_1 = arith.constant 0 : i32
    return %c0_i32, %c0_i32_0 : i32, i32
  }
  func.func @transform_10(%arg0: i32) -> (i32, i32) {
    %c0_i32 = arith.constant 0 : i32
    %c0_i32_0 = arith.constant 0 : i32
    %c0_i32_1 = arith.constant 0 : i32
    return %c0_i32, %c0_i32_0 : i32, i32
  }
  func.func @transform_11(%arg0: i32) -> (i32, i32) {
    %c0_i32 = arith.constant 0 : i32
    %c0_i32_0 = arith.constant 0 : i32
    %c0_i32_1 = arith.constant 0 : i32
    return %c0_i32, %c0_i32_0 : i32, i32
  }
  func.func @transform_12(%arg0: i32) -> (i32, i32) {
    %c0_i32 = arith.constant 0 : i32
    %c0_i32_0 = arith.constant 0 : i32
    %c0_i32_1 = arith.constant 0 : i32
    return %c0_i32, %c0_i32_0 : i32, i32
  }
}

</mosaic_0001>

<bundles_post_ra>
// kernel: tpu_custom_call.1
= control target key start
LH: loop header
LB: loop body
LE: loop exit
PB: predicated region body
PF: predicated region fallthrough
CT: control target
= control target key end

     0   :  { %s11854_s0 = inlined_call_operand.<no memory space> [shape: s32[1], index: 0, kind: input, shape index: {}]   ;;  %s11855_s1 = inlined_call_operand.hbm [shape: bf16[384,2048], index: 1, kind: input, shape index: {}]   ;;  %s11856_s2 = inlined_call_operand.hbm [shape: bf16[2048,512], index: 2, kind: input, shape index: {}]   ;;  %s11857_s3 = inlined_call_operand.hbm [shape: f32[1,512], index: 3, kind: input, shape index: {}]   ;;  %s11858_s4 = inlined_call_operand.hbm [shape: bf16[512,128], index: 4, kind: input, shape index: {}]   ;;  %s11859_s5 = inlined_call_operand.hbm [shape: f32[1,128], index: 5, kind: input, shape index: {}]   ;;  %s11860_s6 = inlined_call_operand.hbm [shape: f32[1,128], index: 6, kind: input, shape index: {}]   ;;  %s11861_s7 = inlined_call_operand.<no memory space> [shape: f32[1,1], index: 7, kind: input, shape index: {}]   ;;  %s11862_s8 = inlined_call_operand.hbm [shape: bf16[512,128], index: 8, kind: input, shape index: {}]   ;;  %s11863_s9 = inlined_call_operand.hbm [shape: f32[1,128], index: 9, kind: input, shape index: {}]   ;;  %s11864_s10 = inlined_call_operand.hbm [shape: bf16[128,128], index: 10, kind: input, shape index: {}]   ;;  %s11865_s11 = inlined_call_operand.hbm [shape: f32[1,128], index: 11, kind: input, shape index: {}]   ;;  %s11866_s12 = inlined_call_operand.hbm [shape: f32[1,128], index: 12, kind: output, shape index: {}]  }
   0x1   :  { %11873 = sst [smem:[#allocation33_spill]] %s11856_s2  ;;  %v18_v0 = vstv %s11861_s7 }
   0x2   :  { %11874 = sst [smem:[#allocation34_spill]] %s11866_s12  ;;  %19 = vst [vmem:[#allocation6] sm:$0x1] %v18_v0 }
   0x3   :  { %17 = sst [smem:[#allocation5]] %s11854_s0 }
   0x4   :  { %20 = vsyncpa [#allocation8], 0 }
   0x5   :  { %22 = vsyncpa [#allocation8 + $0x1], 0 }
   0x6   :  { %23 = vsyncpa [#allocation11], 0 }
   0x7   :  { %24 = vsyncpa [#allocation14], 0 }
   0x8   :  { %25 = vsyncpa [#allocation17], 0 }
   0x9   :  { %26 = vsyncpa [#allocation20], 0 }
   0xa   :  { %27 = vsyncpa [#allocation23], 0 }
   0xb   :  { %28 = vsyncpa [#allocation9], 0  ;;  %s10997_s25 = smov 0   ;;  %s10999_s26 = smov 0  }
   0xc   :  { %s11001_s27 = smov 0   ;;  %s11003_s0 = smov 0  }
   0xd LB: > { %s10902_s7 = smov [#allocation10]   ;;  %s11018_s29 = sadd.s32 4294967295, %s10900_s0   ;;  %s10900_s0 = sphi %s11003_s0, %s11901_s0   ;;  %s10896_s27 = sphi %s11001_s27, %s11900_s27   ;;  %s10892_s26 = sphi %s10999_s26, %s11899_s26   ;;  %s10888_s25 = sphi %s10997_s25, %s11898_s25  }
   0xe   : > { %s332_s28 = sshll.u32 %s10902_s7, 4  ;;  %p7942_p0 = scmp.ge.s32.totalorder %s10900_s0, 1  ;;  %s11024_s28 = int_to_ptr.vmem [resolvable:$true] %s332_s28 }
   0xf   : > { %p11869_p1 = scmp.eq.s32.totalorder %s11018_s29, 0  ;;  %p317_p2 = scmp.lt.s32.totalorder %s10900_s0, 4 }
  0x10   : > { %s10903_s13 = smov [#allocation13]   ;;  %s10904_s16 = smov [#allocation16]  }
  0x11   : > { %p11026_p4 = pnand %p7942_p0, %p317_p2  ;;  %s356_s14 = sshll.u32 %s10903_s13, 4  ;;  %s11038_s14 = int_to_ptr.vmem [resolvable:$true] %s356_s14 }
  0x12   : > { %s11040_s17 = sshll.u32 %s10904_s16, 4  ;;  %s11878_s2 = sld [smem:[#allocation33_spill]]  ;;  %s382_s17 = int_to_ptr.vmem [resolvable:$true] %s11040_s17 }
  0x13   : > { %s11875_s30 = scalar_select %p11026_p4, 1, 0 }
  0x14   : > { %p9511_p5 = pneg %p11026_p4 }
  0x15   : > { %11876 = sst [smem:[#allocation32_spill]] %s11875_s30 }
  0x16   : > { %p11034_p6 = pnand %p9511_p5, %p11869_p1 }
  0x18   : > { %s10534_s20 = scalar_lea.hbm %s11878_s2, 65536  ;;  %p11050_p8 = pneg %p11034_p6 }
  0x19   : > { %p10535_p7 = scmp.ne.s32.totalorder %s11878_s2, %s10534_s20  ;;  %p10541_p11 = scmp.lt.u32.totalorder %s10534_s20, %s11878_s2 }
  0x1b   : > { %p10537_p9 = pnand %p11050_p8, %p10535_p7 }
  0x1d   : > { %p10538_p10 = pneg %p10537_p9 }
  0x1f   : > { %p10543_p12 = pnand %p10541_p11, %p10538_p10 }
  0x21   : > { %10546 = shalt.err (!%p10543_p12)
}
  0x22   : > { %s10547_s13 = scalar_lea.vmem %s11024_s28, 65536  ;;  %p10555_p5 = scmp.lt.s32.totalorder %s11024_s28, %s11024_s28 }
  0x23   : > { %p10548_p13 = scmp.ne.s32.totalorder %s11024_s28, %s10547_s13  ;;  %p10556_p3 = scmp.lt.s32.totalorder %s10547_s13, %s10547_s13 }
  0x25   : > { %p10550_p0 = pnand %p10548_p13, %p11050_p8  ;;  %p10557_p7 = por %p10556_p3, %p10555_p5 }
  0x27   : > { %p10551_p2 = pneg %p10550_p0 }
  0x29   : > { %p10558_p9 = pnand %p10557_p7, %p10551_p2 }
  0x2b   : > { %10561 = shalt.err (!%p10558_p9)
}
  0x2c   : > { %s10905_s16 = smov 256   ;;  %s10906_s18 = smov 16  }
  0x2d   : > { %9514 = dma.hbm_to_vmem [thread:$0]  (!%p11034_p6), %s11878_s2, 65536, %s11024_s28, [#allocation11], %s10905_s16, %s10905_s16, %s10906_s18  }
  0x2e   : > { %s10562_s24 = scalar_lea.hbm %s11858_s4, 4096 }
  0x2f   : > { %p10563_p3 = scmp.ne.s32.totalorder %s11858_s4, %s10562_s24  ;;  %p10569_p12 = scmp.lt.u32.totalorder %s10562_s24, %s11858_s4 }
  0x31   : > { %p10565_p10 = pnand %p10563_p3, %p11050_p8 }
  0x33   : > { %p10566_p11 = pneg %p10565_p10 }
  0x35   : > { %p10571_p13 = pnand %p10569_p12, %p10566_p11 }
  0x37   : > { %10574 = shalt.err (!%p10571_p13)
}
  0x38   : > { %s10575_s28 = scalar_lea.vmem %s11038_s14, 4096  ;;  %p10583_p7 = scmp.lt.s32.totalorder %s11038_s14, %s11038_s14 }
  0x39   : > { %p10576_p0 = scmp.ne.s32.totalorder %s11038_s14, %s10575_s28  ;;  %p10584_p9 = scmp.lt.s32.totalorder %s10575_s28, %s10575_s28 }
  0x3b   : > { %p10578_p2 = pnand %p10576_p0, %p11050_p8  ;;  %p10585_p3 = por %p10584_p9, %p10583_p7 }
  0x3d   : > { %p10579_p5 = pneg %p10578_p2 }
  0x3f   : > { %p10586_p10 = pnand %p10585_p3, %p10579_p5 }
  0x41   : > { %10589 = shalt.err (!%p10586_p10)
}
  0x42   : > { %s11871_s12 = smov 64   ;;  %s10908_s30 = smov 4  }
  0x43   : > { %9520 = dma.hbm_to_vmem [thread:$0]  (!%p11034_p6), %s11858_s4, 4096, %s11038_s14, [#allocation14], %s11871_s12, %s11871_s12, %s10908_s30  }
  0x44   : > { %s10590_s21 = scalar_lea.hbm %s11860_s6, 16 }
  0x45   : > { %p10591_p11 = scmp.ne.s32.totalorder %s11860_s6, %s10590_s21  ;;  %p10597_p0 = scmp.lt.u32.totalorder %s10590_s21, %s11860_s6 }
  0x47   : > { %p10593_p12 = pnand %p10591_p11, %p11050_p8 }
  0x49   : > { %p10594_p13 = pneg %p10593_p12 }
  0x4b   : > { %p10599_p2 = pnand %p10597_p0, %p10594_p13 }
  0x4d   : > { %10602 = shalt.err (!%p10599_p2)
}
  0x4e   : > { %s10603_s28 = scalar_lea.vmem %s382_s17, 16  ;;  %s10610_s14 = scalar_lea.vmem %s382_s17, 32 }
  0x4f   : > { %p10604_p5 = scmp.ne.s32.totalorder %s382_s17, %s10603_s28  ;;  %p10611_p3 = scmp.lt.s32.totalorder %s382_s17, %s382_s17 }
  0x50   : > { %p10612_p10 = scmp.lt.s32.totalorder %s10610_s14, %s10603_s28 }
  0x51   : > { %p10606_p7 = pnand %p10604_p5, %p11050_p8 }
  0x52   : > { %p10613_p1 = por %p10612_p10, %p10611_p3 }
  0x53   : > { %p10607_p9 = pneg %p10606_p7 }
  0x55   : > { %p10614_p4 = pnand %p10613_p1, %p10607_p9 }
  0x57   : > { %10617 = shalt.err (!%p10614_p4)
}
  0x58   : > { %9526 = dma.hbm_to_vmem [thread:$0]  (!%p11034_p6), %s11860_s6, 16, %s382_s17, [#allocation17]  }
  0x59   : > { %s10909_s19 = smov [#allocation19]   ;;  %s10910_s21 = smov [#allocation12]  }
  0x5a   : > { %s408_s20 = sshll.u32 %s10909_s19, 4  ;;  %s346_s22 = sshll.u32 %s10910_s21, 4  ;;  %s409_s20 = int_to_ptr.vmem [resolvable:$true] %s408_s20  ;;  %s347_s22 = int_to_ptr.vmem [resolvable:$true] %s346_s22 }
  0x5b   : > { %s10618_s13 = scalar_lea.hbm %s11863_s9, 16 }
  0x5c   : > { %p10619_p1 = scmp.ne.s32.totalorder %s11863_s9, %s10618_s13  ;;  %p10625_p12 = scmp.lt.u32.totalorder %s10618_s13, %s11863_s9 }
  0x5e   : > { %p10621_p4 = pnand %p10619_p1, %p11050_p8 }
  0x60   : > { %p10622_p11 = pneg %p10621_p4 }
  0x62   : > { %p10627_p13 = pnand %p10625_p12, %p10622_p11 }
  0x64   : > { %10630 = shalt.err (!%p10627_p13)
}
  0x65   : > { %s10631_s17 = scalar_lea.vmem %s409_s20, 16  ;;  %s10638_s18 = scalar_lea.vmem %s409_s20, 32 }
  0x66   : > { %p10632_p0 = scmp.ne.s32.totalorder %s409_s20, %s10631_s17  ;;  %p10639_p7 = scmp.lt.s32.totalorder %s409_s20, %s409_s20 }
  0x67   : > { %p10640_p9 = scmp.lt.s32.totalorder %s10638_s18, %s10631_s17 }
  0x68   : > { %p10634_p2 = pnand %p10632_p0, %p11050_p8 }
  0x69   : > { %p10641_p3 = por %p10640_p9, %p10639_p7 }
  0x6a   : > { %p10635_p5 = pneg %p10634_p2 }
  0x6c   : > { %p10642_p10 = pnand %p10641_p3, %p10635_p5 }
  0x6e   : > { %10645 = shalt.err (!%p10642_p10)
}
  0x6f   : > { %9532 = dma.hbm_to_vmem [thread:$0]  (!%p11034_p6), %s11863_s9, 16, %s409_s20, [#allocation20]  }
  0x70   : > { %s10646_s7 = scalar_lea.hbm %s11857_s3, 64 }
  0x71   : > { %p10647_p1 = scmp.ne.s32.totalorder %s11857_s3, %s10646_s7  ;;  %p10653_p12 = scmp.lt.u32.totalorder %s10646_s7, %s11857_s3 }
  0x73   : > { %p10649_p4 = pnand %p10647_p1, %p11050_p8 }
  0x75   : > { %p10650_p11 = pneg %p10649_p4 }
  0x77   : > { %p10655_p13 = pnand %p10653_p12, %p10650_p11 }
  0x79   : > { %10658 = shalt.err (!%p10655_p13)
}
  0x7a   : > { %s10659_s17 = scalar_lea.vmem %s347_s22, 64  ;;  %p10667_p7 = scmp.lt.s32.totalorder %s347_s22, %s347_s22 }
  0x7b   : > { %p10660_p0 = scmp.ne.s32.totalorder %s347_s22, %s10659_s17  ;;  %p10668_p9 = scmp.lt.s32.totalorder %s10659_s17, %s10659_s17 }
  0x7d   : > { %p10662_p2 = pnand %p10660_p0, %p11050_p8  ;;  %p10669_p3 = por %p10668_p9, %p10667_p7 }
  0x7f   : > { %p10663_p5 = pneg %p10662_p2 }
  0x81   : > { %p10670_p10 = pnand %p10669_p3, %p10663_p5 }
  0x83   : > { %10673 = shalt.err (!%p10670_p10)
}
  0x84   : > { %9517 = dma.hbm_to_vmem [thread:$0]  (!%p11034_p6), %s11857_s3, 64, %s347_s22, [#allocation11]  }
  0x85   : > { %s10911_s19 = smov [#allocation15]   ;;  %s10912_s12 = smov [#allocation18]  }
  0x86   : > { %s370_s21 = sshll.u32 %s10911_s19, 4  ;;  %s394_s24 = sshll.u32 %s10912_s12, 4  ;;  %s371_s21 = int_to_ptr.vmem [resolvable:$true] %s370_s21  ;;  %s395_s24 = int_to_ptr.vmem [resolvable:$true] %s394_s24 }
  0x87   : > { %s10674_s28 = scalar_lea.hbm %s11859_s5, 16 }
  0x88   : > { %p10675_p1 = scmp.ne.s32.totalorder %s11859_s5, %s10674_s28  ;;  %p10681_p12 = scmp.lt.u32.totalorder %s10674_s28, %s11859_s5 }
  0x8a   : > { %p10677_p4 = pnand %p10675_p1, %p11050_p8 }
  0x8c   : > { %p10678_p11 = pneg %p10677_p4 }
  0x8e   : > { %p10683_p13 = pnand %p10681_p12, %p10678_p11 }
  0x90   : > { %10686 = shalt.err (!%p10683_p13)
}
  0x91   : > { %s10687_s22 = scalar_lea.vmem %s371_s21, 16  ;;  %s10694_s18 = scalar_lea.vmem %s371_s21, 32 }
  0x92   : > { %p10688_p0 = scmp.ne.s32.totalorder %s371_s21, %s10687_s22  ;;  %p10695_p7 = scmp.lt.s32.totalorder %s371_s21, %s371_s21 }
  0x93   : > { %p10696_p9 = scmp.lt.s32.totalorder %s10694_s18, %s10687_s22 }
  0x94   : > { %p10690_p2 = pnand %p10688_p0, %p11050_p8 }
  0x95   : > { %p10697_p3 = por %p10696_p9, %p10695_p7 }
  0x96   : > { %p10691_p5 = pneg %p10690_p2 }
  0x98   : > { %p10698_p10 = pnand %p10697_p3, %p10691_p5 }
  0x9a   : > { %10701 = shalt.err (!%p10698_p10)
}
  0x9b   : > { %9523 = dma.hbm_to_vmem [thread:$0]  (!%p11034_p6), %s11859_s5, 16, %s371_s21, [#allocation14]  }
  0x9c   : > { %s10702_s28 = scalar_lea.hbm %s11862_s8, 4096 }
  0x9d   : > { %p10703_p1 = scmp.ne.s32.totalorder %s11862_s8, %s10702_s28  ;;  %p10709_p12 = scmp.lt.u32.totalorder %s10702_s28, %s11862_s8 }
  0x9f   : > { %p10705_p4 = pnand %p10703_p1, %p11050_p8 }
  0xa1   : > { %p10706_p11 = pneg %p10705_p4 }
  0xa3   : > { %p10711_p13 = pnand %p10709_p12, %p10706_p11 }
  0xa5   : > { %10714 = shalt.err (!%p10711_p13)
}
  0xa6   : > { %s10715_s22 = scalar_lea.vmem %s395_s24, 4096  ;;  %p10723_p7 = scmp.lt.s32.totalorder %s395_s24, %s395_s24 }
  0xa7   : > { %p10716_p0 = scmp.ne.s32.totalorder %s395_s24, %s10715_s22  ;;  %p10724_p9 = scmp.lt.s32.totalorder %s10715_s22, %s10715_s22 }
  0xa9   : > { %p10718_p2 = pnand %p10716_p0, %p11050_p8  ;;  %p10725_p3 = por %p10724_p9, %p10723_p7 }
  0xab   : > { %p10719_p5 = pneg %p10718_p2 }
  0xad   : > { %p10726_p10 = pnand %p10725_p3, %p10719_p5 }
  0xaf   : > { %10729 = shalt.err (!%p10726_p10)
}
  0xb0   : > { %s11880_s21 = smov 64   ;;  %s10913_s12 = smov [#allocation21]  }
  0xb1   : > { %9529 = dma.hbm_to_vmem [thread:$0]  (!%p11034_p6), %s11862_s8, 4096, %s395_s24, [#allocation17], %s11880_s21, %s11880_s21, %s10908_s30  }
  0xb2   : > { %s418_s7 = sshll.u32 %s10913_s12, 4  ;;  %s10914_s13 = smov [#allocation22]   ;;  %s419_s7 = int_to_ptr.vmem [resolvable:$true] %s418_s7 }
  0xb3   : > { %s432_s28 = sshll.u32 %s10914_s13, 4  ;;  %s10730_s17 = scalar_lea.hbm %s11864_s10, 1024  ;;  %s433_s28 = int_to_ptr.vmem [resolvable:$true] %s432_s28 }
  0xb4   : > { %p10731_p1 = scmp.ne.s32.totalorder %s11864_s10, %s10730_s17  ;;  %p10737_p12 = scmp.lt.u32.totalorder %s10730_s17, %s11864_s10 }
  0xb6   : > { %p10733_p4 = pnand %p10731_p1, %p11050_p8 }
  0xb8   : > { %p10734_p11 = pneg %p10733_p4 }
  0xba   : > { %p10739_p13 = pnand %p10737_p12, %p10734_p11 }
  0xbc   : > { %10742 = shalt.err (!%p10739_p13)
}
  0xbd   : > { %s10743_s24 = scalar_lea.vmem %s419_s7, 1024  ;;  %p10751_p7 = scmp.lt.s32.totalorder %s419_s7, %s419_s7 }
  0xbe   : > { %p10744_p0 = scmp.ne.s32.totalorder %s419_s7, %s10743_s24  ;;  %p10752_p9 = scmp.lt.s32.totalorder %s10743_s24, %s10743_s24 }
  0xc0   : > { %p10746_p2 = pnand %p10744_p0, %p11050_p8  ;;  %p10753_p3 = por %p10752_p9, %p10751_p7 }
  0xc2   : > { %p10747_p5 = pneg %p10746_p2 }
  0xc4   : > { %p10754_p10 = pnand %p10753_p3, %p10747_p5 }
  0xc6   : > { %10757 = shalt.err (!%p10754_p10)
}
  0xc7   : > { %9535 = dma.hbm_to_vmem [thread:$0]  (!%p11034_p6), %s11864_s10, 1024, %s419_s7, [#allocation20], %s11880_s21, %s11880_s21, %s10908_s30  }
  0xc8   : > { %s10758_s14 = scalar_lea.hbm %s11865_s11, 16 }
  0xc9   : > { %p10759_p1 = scmp.ne.s32.totalorder %s11865_s11, %s10758_s14  ;;  %p10765_p12 = scmp.lt.u32.totalorder %s10758_s14, %s11865_s11 }
  0xcb   : > { %p10761_p4 = pnand %p10759_p1, %p11050_p8 }
  0xcd   : > { %p10762_p11 = pneg %p10761_p4 }
  0xcf   : > { %p10767_p13 = pnand %p10765_p12, %p10762_p11 }
  0xd1   : > { %10770 = shalt.err (!%p10767_p13)
}
  0xd2   : > { %s10771_s18 = scalar_lea.vmem %s433_s28, 16  ;;  %s10778_s30 = scalar_lea.vmem %s433_s28, 32 }
  0xd3   : > { %p10772_p0 = scmp.ne.s32.totalorder %s433_s28, %s10771_s18  ;;  %p10779_p7 = scmp.lt.s32.totalorder %s433_s28, %s433_s28 }
  0xd4   : > { %p10780_p9 = scmp.lt.s32.totalorder %s10778_s30, %s10771_s18 }
  0xd5   : > { %p10774_p2 = pnand %p10772_p0, %p11050_p8 }
  0xd6   : > { %p10781_p3 = por %p10780_p9, %p10779_p7 }
  0xd7   : > { %p10775_p5 = pneg %p10774_p2 }
  0xd9   : > { %p10782_p10 = pnand %p10781_p3, %p10775_p5 }
  0xdb   : > { %10785 = shalt.err (!%p10782_p10)
}
  0xdc   : > { %9538 = dma.hbm_to_vmem [thread:$0]  (!%p11034_p6), %s11865_s11, 16, %s433_s28, [#allocation23]  }
  0xdd   : > { %s11231_s23 = sadd.s32 1, %s10900_s0   ;;  %s62_s2 = sadd.s32 1, %s10896_s27 }
  0xde   : > { %s59_s15 = ssub.s32 %s10900_s0, %s11231_s23  ;;  %p69_p1 = scmp.ne.s32.totalorder %s10896_s27, %s10892_s26 }
  0xdf   : > { %p60_p8 = scmp.eq.s32.totalorder %s59_s15, 0  ;;  %p70_p4 = scmp.eq.s32.totalorder %s10900_s0, 0 }
  0xe0   : > { %p75_p11 = scmp.ne.s32.totalorder %s10892_s26, %s10888_s25  ;;  %p11881_p13 = scmp.eq.s32.totalorder %s11018_s29, 0 }
  0xe1   : > { %s11242_s19 = scalar_select %p60_p8, %s10896_s27, %s62_s2  }
  0xe2   : > { %p71_p12 = por %p70_p4, %p69_p1  ;;  %p11246_p0 = por %p11881_p13, %p75_p11 }
  0xe3   : > { %p9552_p2 = scmp.lt.s32.totalorder %s10900_s0, 3  ;;  %s443_s13 = sand.u32 1, %s10896_s27  }
  0xe4   : > { %s7953_s28 = sshll.u32 %s443_s13, 10  ;;  %s8691_s14 = sshll.u32 %s10900_s0, 14 }
  0xe5   : > { %s11256_s20 = scalar_lea.hbm %s11855_s1, %s8691_s14  ;;  %s447_s25 = scalar_lea.vmem [#allocation7], %s7953_s28 }
  0xe6   : > { %s455_s22 = sshll.u32 %s447_s25, 4  ;;  %p11260_p6 = pnand %p9552_p2, %p71_p12  ;;  %s11258_s22 = int_to_ptr.vmem [resolvable:$true] %s455_s22 }
  0xe7   : > { %s11264_s0 = scalar_lea.sflag [#allocation8], %s443_s13  ;;  %s10786_s30 = scalar_lea.hbm %s11256_s20, 16384 }
  0xe8   : > { %p10787_p5 = scmp.ne.s32.totalorder %s11256_s20, %s10786_s30  ;;  %p10788_p7 = pneg %p11260_p6 }
  0xe9   : > { %s10791_s15 = scalar_lea.hbm %s11855_s1, 49152  ;;  %p10792_p10 = scmp.lt.u32.totalorder %s11256_s20, %s11855_s1 }
  0xea   : > { %p10789_p9 = pnand %p10788_p7, %p10787_p5  ;;  %p10793_p8 = scmp.lt.u32.totalorder %s10791_s15, %s10786_s30 }
  0xeb   : > { %p10795_p4 = scmp.lt.u32.totalorder %s10786_s30, %s11256_s20 }
  0xec   : > { %p10790_p3 = pneg %p10789_p9  ;;  %p10794_p1 = por %p10793_p8, %p10792_p10 }
  0xee   : > { %p10796_p11 = por %p10795_p4, %p10794_p1 }
  0xf0   : > { %p10797_p12 = pnand %p10796_p11, %p10790_p3 }
  0xf2   : > { %10800 = shalt.err (!%p10797_p12)
}
  0xf3   : > { %s10801_s13 = scalar_lea.vmem %s11258_s22, 16384  ;;  %s10915_s14 = smov [#allocation7]  }
  0xf4   : > { %p10802_p13 = scmp.ne.s32.totalorder %s11258_s22, %s10801_s13  ;;  %s10806_s16 = sshll.u32 %s10915_s14, 4  ;;  %s10807_s16 = int_to_ptr.vmem [resolvable:$false] %s10806_s16 }
  0xf5   : > { %s10808_s17 = scalar_lea.vmem %s10807_s16, 32768  ;;  %p10809_p9 = scmp.lt.s32.totalorder %s11258_s22, %s10807_s16 }
  0xf6   : > { %p10804_p2 = pnand %p10802_p13, %p10788_p7  ;;  %p10810_p10 = scmp.lt.s32.totalorder %s10808_s17, %s10801_s13 }
  0xf8   : > { %p10805_p5 = pneg %p10804_p2  ;;  %p10811_p8 = por %p10810_p10, %p10809_p9 }
  0xfa   : > { %p10812_p1 = pnand %p10811_p8, %p10805_p5 }
  0xfc   : > { %10815 = shalt.err (!%p10812_p1)
}
  0xfd   : > { %s10916_s25 = smov 1024   ;;  %s11884_s30 = sld [smem:[#allocation32_spill]] }
  0xfe   : > { %9542 = dma.hbm_to_vmem [thread:$0]  (!%p11260_p6), %s11256_s20, 16384, %s11258_s22, %s11264_s0, %s10916_s25, %s10916_s25, %s11880_s21  }
 0x103   : > { %p11885_p7 = scmp.ne.s32.totalorder %s11884_s30, 0 }
 0x104   : > { %s469_s7 = sand.u32 (!%p11885_p7), 1, %s10892_s26  }
 0x105   : > { %467 = sbr.rel (%p11885_p7) target bundleno = 2366 (0x93e), region = 68  ;;  %s7958_s24 = sshll.u32 (!%p11885_p7), %s469_s7, 10 }
 0x106   : > { %s470_s15 = scalar_lea.sflag (!%p11885_p7), [#allocation8], %s469_s7  ;;  %s11296_s2 = scalar_lea.vmem (!%p11885_p7), [#allocation7], %s7958_s24 }
 0x10c   : > { %10859 = dma.done.wait (%p11246_p0), %s470_s15, 16384  }
 0x10d   : > { %10861 = vsyncadd (%p11246_p0), %s470_s15, 4294950912  ;;  %p11886_p3 = scmp.eq.s32.totalorder %s11018_s29, 0 }
 0x10f   : > { %10863 = dma.done.wait (%p11886_p3), [#allocation11], 65600   ;;  %p11887_p6 = pmov %p11886_p3 }
 0x110   : > { %p11888_p4 = pmov %p11886_p3 }
 0x111   : > { %10865 = vsyncadd (%p11887_p6), [#allocation11], 4294901696 }
 0x112   : > { %10867 = dma.done.wait (%p11888_p4), [#allocation14], 4112   ;;  %p11889_p11 = pmov %p11886_p3 }
 0x113   : > { %p11890_p12 = pmov %p11886_p3 }
 0x114   : > { %10869 = vsyncadd (%p11889_p11), [#allocation14], 4294963184 }
 0x115   : > { %10871 = dma.done.wait (%p11890_p12), [#allocation17], 4112   ;;  %p11891_p13 = pmov %p11886_p3 }
 0x116   : > { %p11892_p0 = pmov %p11886_p3 }
 0x117   : > { %10873 = vsyncadd (%p11891_p13), [#allocation17], 4294963184 }
 0x118   : > { %10875 = dma.done.wait (%p11892_p0), [#allocation20], 1040   ;;  %p11893_p2 = pmov %p11892_p0 }
 0x119   : > { %p11894_p5 = pmov %p11892_p0 }
 0x11a   : > { %10877 = vsyncadd (%p11893_p2), [#allocation20], 4294966256 }
 0x11b   : > { %10879 = dma.done.wait (%p11894_p5), [#allocation23], 16   ;;  %p11895_p9 = pmov %p11892_p0 }
 0x11c   : > { %p11896_p10 = scmp.ne.s32.totalorder %s11018_s29, 0 }
 0x11d   : > { %10881 = vsyncadd (%p11895_p9), [#allocation23], 4294967280  ;;  %vm551_vm0 = vcmask (!%p11896_p10), 0   ;;  %v554_v1 = vlaneseq (!%p11896_p10)  ;;  %v10917_v2 = vmov (!%p11896_p10), -inf   ;;  %v10918_v3 = vmov (!%p11896_p10), 0.0  }
 0x11e   : > { %550 = sbr.rel (%p11896_p10) target bundleno = 293 (0x125), region = 112  ;;  %552 = vst.msk [vmem:[#allocation2] sm:$0x1] (!%p11896_p10), %vm551_vm0, %v10917_v2  ;;  %553 = vst.msk [vmem:[#allocation3] sm:$0x1] (!%p11896_p10), %vm551_vm0, %v10918_v3 }
 0x11f   : > { %vm556_vm1 = vcmp.lt.s32.totalorder (!%p11896_p10), %v554_v1, 512 }
 0x120   : > { %558 = vst.msk [vmem:[#allocation4] sm:$0xf] (!%p11896_p10), %vm556_vm1, %v10918_v3 }
 0x125 PF: > { %v9621_v4 = vld [vmem:[#allocation10 + $0x4] ss:$16 sps:$4 sm:$0xff]   ;;  %v9623_v5 = vld [vmem:[#allocation10 + $0xc] ss:$16 sps:$4 sm:$0xff]   ;;  %v9625_v6 = vld [vmem:[#allocation10] ss:$16 sps:$4 sm:$0xff]  }
 0x126   : > { %4421 = vmatprep.subr.bf16.mxu0 %v9621_v4  ;;  %v9626_v7 = vld [vmem:[#allocation10 + $0x8] ss:$16 sps:$4 sm:$0xff]   ;;  %5325 = vmatprep.subr.bf16.mxu1 %v9623_v5  ;;  %v9627_v8 = vld [vmem:[#allocation10 + $0x24] ss:$16 sps:$4 sm:$0xff]   ;;  %v9629_v9 = vld [vmem:[#allocation10 + $0x2c] ss:$16 sps:$4 sm:$0xff]  }
 0x127   : > { %4422 = vmatpush1.bf16.msra.mxu0 %v9625_v6  ;;  %5326 = vmatpush1.bf16.msra.mxu1 %v9626_v7  ;;  %v9631_v10 = vld [vmem:[#allocation10 + $0x20] ss:$16 sps:$4 sm:$0xff]   ;;  %v9632_v11 = vld [vmem:[#allocation10 + $0x28] ss:$16 sps:$4 sm:$0xff]   ;;  %v9633_v12 = vld [vmem:[#allocation10 + $0x44] ss:$16 sps:$4 sm:$0xff]  }
 0x128   : > { %4423 = vmatprep.subr.bf16.mxu0 %v9627_v8  ;;  %5327 = vmatprep.subr.bf16.mxu1 %v9629_v9  ;;  %v9635_v13 = vld [vmem:[#allocation10 + $0x4c] ss:$16 sps:$4 sm:$0xff]   ;;  %v9637_v14 = vld [vmem:[#allocation10 + $0x40] ss:$16 sps:$4 sm:$0xff]   ;;  %v9638_v15 = vld [vmem:[#allocation10 + $0x48] ss:$16 sps:$4 sm:$0xff]  }
 0x129   : > { %v9639_v16 = vld [vmem:[#allocation10 + $0x64] ss:$16 sps:$4 sm:$0xff]   ;;  %v9641_v17 = vld [vmem:[#allocation10 + $0x6c] ss:$16 sps:$4 sm:$0xff]   ;;  %v9643_v18 = vld [vmem:[#allocation10 + $0x60] ss:$16 sps:$4 sm:$0xff]  }
 0x12a   : > { %v9644_v19 = vld [vmem:[#allocation10 + $0x68] ss:$16 sps:$4 sm:$0xff]   ;;  %v9645_v20 = vld [vmem:[#allocation10 + $0x84] ss:$16 sps:$4 sm:$0xff]   ;;  %v9647_v21 = vld [vmem:[#allocation10 + $0x8c] ss:$16 sps:$4 sm:$0xff]  }
 0x12b   : > { %4424 = vmatpush1.bf16.msra.mxu0 %v9631_v10  ;;  %5328 = vmatpush1.bf16.msra.mxu1 %v9632_v11  ;;  %v9649_v22 = vld [vmem:[#allocation10 + $0x80] ss:$16 sps:$4 sm:$0xff]   ;;  %v9650_v23 = vld [vmem:[#allocation10 + $0x88] ss:$16 sps:$4 sm:$0xff]   ;;  %v9651_v24 = vld [vmem:[#allocation10 + $0xa4] ss:$16 sps:$4 sm:$0xff]  }
 0x12c   : > { %4425 = vmatprep.subr.bf16.mxu0 %v9633_v12  ;;  %5329 = vmatprep.subr.bf16.mxu1 %v9635_v13  ;;  %v9653_v25 = vld [vmem:[#allocation10 + $0xac] ss:$16 sps:$4 sm:$0xff]   ;;  %v9655_v26 = vld [vmem:[#allocation10 + $0xa0] ss:$16 sps:$4 sm:$0xff]   ;;  %v9656_v27 = vld [vmem:[#allocation10 + $0xa8] ss:$16 sps:$4 sm:$0xff]  }
 0x12d   : > { %v9657_v28 = vld [vmem:[#allocation10 + $0xc4] ss:$16 sps:$4 sm:$0xff]   ;;  %v9659_v29 = vld [vmem:[#allocation10 + $0xcc] ss:$16 sps:$4 sm:$0xff]   ;;  %v9661_v30 = vld [vmem:[#allocation10 + $0xc0] ss:$16 sps:$4 sm:$0xff]  }
 0x12e   : > { %v9662_v31 = vld [vmem:[#allocation10 + $0xc8] ss:$16 sps:$4 sm:$0xff]   ;;  %v9663_v32 = vld [vmem:[#allocation10 + $0xe4] ss:$16 sps:$4 sm:$0xff]   ;;  %v9665_v33 = vld [vmem:[#allocation10 + $0xec] ss:$16 sps:$4 sm:$0xff]  }
 0x12f   : > { %4426 = vmatpush1.bf16.msra.mxu0 %v9637_v14  ;;  %5330 = vmatpush1.bf16.msra.mxu1 %v9638_v15  ;;  %v9667_v34 = vld [vmem:[#allocation10 + $0xe0] ss:$16 sps:$4 sm:$0xff]   ;;  %v9668_v35 = vld [vmem:[#allocation10 + $0xe8] ss:$16 sps:$4 sm:$0xff]   ;;  %v9669_v36 = vld [vmem:[#allocation10 + $0x104] ss:$16 sps:$4 sm:$0xff]  }
 0x130   : > { %4427 = vmatprep.subr.bf16.mxu0 %v9639_v16  ;;  %5331 = vmatprep.subr.bf16.mxu1 %v9641_v17  ;;  %v9671_v37 = vld [vmem:[#allocation10 + $0x10c] ss:$16 sps:$4 sm:$0xff]   ;;  %v9673_v38 = vld [vmem:[#allocation10 + $0x100] ss:$16 sps:$4 sm:$0xff]   ;;  %v9674_v39 = vld [vmem:[#allocation10 + $0x108] ss:$16 sps:$4 sm:$0xff]  }
 0x131   : > { %v9675_v40 = vld [vmem:[#allocation10 + $0x124] ss:$16 sps:$4 sm:$0xff]   ;;  %v9677_v41 = vld [vmem:[#allocation10 + $0x12c] ss:$16 sps:$4 sm:$0xff]   ;;  %v9679_v42 = vld [vmem:[#allocation10 + $0x120] ss:$16 sps:$4 sm:$0xff]  }
 0x132   : > { %v9680_v43 = vld [vmem:[#allocation10 + $0x128] ss:$16 sps:$4 sm:$0xff]   ;;  %v9681_v44 = vld [vmem:[#allocation10 + $0x144] ss:$16 sps:$4 sm:$0xff]   ;;  %v9683_v45 = vld [vmem:[#allocation10 + $0x14c] ss:$16 sps:$4 sm:$0xff]  }
 0x133   : > { %4428 = vmatpush1.bf16.msra.mxu0 %v9643_v18  ;;  %5332 = vmatpush1.bf16.msra.mxu1 %v9644_v19  ;;  %v9685_v46 = vld [vmem:[#allocation10 + $0x140] ss:$16 sps:$4 sm:$0xff]   ;;  %v9686_v47 = vld [vmem:[#allocation10 + $0x148] ss:$16 sps:$4 sm:$0xff]   ;;  %v9687_v48 = vld [vmem:[#allocation10 + $0x164] ss:$16 sps:$4 sm:$0xff]  }
 0x134   : > { %4429 = vmatprep.subr.bf16.mxu0 %v9645_v20  ;;  %5333 = vmatprep.subr.bf16.mxu1 %v9647_v21  ;;  %v9689_v49 = vld [vmem:[#allocation10 + $0x16c] ss:$16 sps:$4 sm:$0xff]   ;;  %v559_v50 = vld [vmem:[%s11296_s2] sm:$0xff]  ;;  %v9692_v53 = vld [vmem:[#allocation10 + $0x168] ss:$16 sps:$4 sm:$0xff]   ;;  %s6911_s21 = sld [smem:[#allocation5]] }
 0x135   : > { %v567_v51 = vld [vmem:[%s11296_s2 + $0x40] sm:$0xff]  ;;  %v9695_v56 = vld [vmem:[#allocation10 + $0x18c] ss:$16 sps:$4 sm:$0xff]   ;;  %v9698_v58 = vld [vmem:[#allocation10 + $0x188] ss:$16 sps:$4 sm:$0xff]   ;;  %s8644_s12 = sshll.u32 %s11018_s29, 7 }
 0x136   : > { %v9691_v52 = vld [vmem:[#allocation10 + $0x160] ss:$16 sps:$4 sm:$0xff]   ;;  %v7970_v54 = vcombine.high %v559_v50, %v567_v51  ;;  %v9693_v55 = vld [vmem:[#allocation10 + $0x184] ss:$16 sps:$4 sm:$0xff]   ;;  %v9701_v60 = vld [vmem:[#allocation10 + $0x1ac] ss:$16 sps:$4 sm:$0xff]   ;;  %v7969_v11 = vcombine.low %v559_v50, %v567_v51 }
 0x137   : > { %4430 = vmatpush1.bf16.msra.mxu0 %v9649_v22  ;;  %5334 = vmatpush1.bf16.msra.mxu1 %v9650_v23  ;;  %v9697_v57 = vld [vmem:[#allocation10 + $0x180] ss:$16 sps:$4 sm:$0xff]   ;;  %v9699_v59 = vld [vmem:[#allocation10 + $0x1a4] ss:$16 sps:$4 sm:$0xff]   ;;  %v9704_v62 = vld [vmem:[#allocation10 + $0x1a8] ss:$16 sps:$4 sm:$0xff]  }
 0x138   : > { %4431 = vmatprep.subr.bf16.mxu0 %v9651_v24  ;;  %5335 = vmatprep.subr.bf16.mxu1 %v9653_v25  ;;  %v9703_v61 = vld [vmem:[#allocation10 + $0x1a0] ss:$16 sps:$4 sm:$0xff]   ;;  %v9705_v63 = vld [vmem:[#allocation10 + $0x1c4] ss:$16 sps:$4 sm:$0xff]   ;;  %v9707_v0 = vld [vmem:[#allocation10 + $0x1cc] ss:$16 sps:$4 sm:$0xff]  }
 0x139   : > { %4453 = vmatprep.mubr.bf16.mxu0 %v7970_v54  ;;  %5357 = vmatprep.mubr.bf16.mxu1 %v7970_v54  ;;  %v9709_v1 = vld [vmem:[#allocation10 + $0x1c0] ss:$16 sps:$4 sm:$0xff]   ;;  %v9710_v2 = vld [vmem:[#allocation10 + $0x1c8] ss:$16 sps:$4 sm:$0xff]   ;;  %v9711_v3 = vld [vmem:[#allocation10 + $0x1e4] ss:$16 sps:$4 sm:$0xff]  }
 0x13a   : > { %v9713_v4 = vld [vmem:[#allocation10 + $0x1ec] ss:$16 sps:$4 sm:$0xff]   ;;  %v9715_v5 = vld [vmem:[#allocation10 + $0x1e0] ss:$16 sps:$4 sm:$0xff]   ;;  %v9716_v6 = vld [vmem:[#allocation10 + $0x1e8] ss:$16 sps:$4 sm:$0xff]  }
 0x13b   : > { %4432 = vmatpush1.bf16.msra.mxu0 %v9655_v26  ;;  %5336 = vmatpush1.bf16.msra.mxu1 %v9656_v27  ;;  %v9719_v7 = vld [vmem:[#allocation10 + $0x204] ss:$16 sps:$4 sm:$0xff]   ;;  %v9722_v8 = vld [vmem:[#allocation10 + $0x20c] ss:$16 sps:$4 sm:$0xff]   ;;  %v9717_v9 = vld [vmem:[#allocation10 + $0x200] ss:$16 sps:$4 sm:$0xff]  }
 0x13c   : > { %4433 = vmatprep.subr.bf16.mxu0 %v9657_v28  ;;  %5337 = vmatprep.subr.bf16.mxu1 %v9659_v29  ;;  %v9720_v10 = vld [vmem:[#allocation10 + $0x208] ss:$16 sps:$4 sm:$0xff]   ;;  %v575_v12 = vld [vmem:[%s11296_s2 + $0x80] sm:$0xff]  ;;  %v9728_v15 = vld [vmem:[#allocation10 + $0x22c] ss:$16 sps:$4 sm:$0xff]   ;;  %vm6946_vm3 = vcmask 7168  }
 0x13d   : > { %v583_v13 = vld [vmem:[%s11296_s2 + $0xc0] sm:$0xff]  ;;  %v9726_v18 = vld [vmem:[#allocation10 + $0x228] ss:$16 sps:$4 sm:$0xff]   ;;  %v9734_v20 = vld [vmem:[#allocation10 + $0x24c] ss:$16 sps:$4 sm:$0xff]   ;;  %p8645_p8 = scmp.ne.s32.totalorder %s11018_s29, 2 }
 0x13e   : > { %v9725_v14 = vld [vmem:[#allocation10 + $0x224] ss:$16 sps:$4 sm:$0xff]   ;;  %v7986_v16 = vcombine.high %v575_v12, %v583_v13  ;;  %v9723_v17 = vld [vmem:[#allocation10 + $0x220] ss:$16 sps:$4 sm:$0xff]   ;;  %v7985_v22 = vcombine.low %v575_v12, %v583_v13  ;;  %v9732_v25 = vld [vmem:[#allocation10 + $0x248] ss:$16 sps:$4 sm:$0xff]  }
 0x13f   : > { %4434 = vmatpush1.bf16.msra.mxu0 %v9661_v30  ;;  %5338 = vmatpush1.bf16.msra.mxu1 %v9662_v31  ;;  %v9731_v19 = vld [vmem:[#allocation10 + $0x244] ss:$16 sps:$4 sm:$0xff]   ;;  %v9729_v24 = vld [vmem:[#allocation10 + $0x240] ss:$16 sps:$4 sm:$0xff]   ;;  %v9740_v27 = vld [vmem:[#allocation10 + $0x26c] ss:$16 sps:$4 sm:$0xff]  }
 0x140   : > { %4435 = vmatprep.subr.bf16.mxu0 %v9663_v32  ;;  %5339 = vmatprep.subr.bf16.mxu1 %v9665_v33  ;;  %v591_v21 = vld [vmem:[%s11296_s2 + $0x100] sm:$0xff]  ;;  %v9738_v30 = vld [vmem:[#allocation10 + $0x268] ss:$16 sps:$4 sm:$0xff]   ;;  %v9746_v32 = vld [vmem:[#allocation10 + $0x28c] ss:$16 sps:$4 sm:$0xff]  }
 0x141   : > { %v599_v23 = vld [vmem:[%s11296_s2 + $0x140] sm:$0xff]  ;;  %v9764_v51 = vld [vmem:[#allocation10 + $0x2ec] ss:$16 sps:$4 sm:$0xff]   ;;  %v9762_v54 = vld [vmem:[#allocation10 + $0x2e8] ss:$16 sps:$4 sm:$0xff]  }
 0x142   : > { %v9737_v26 = vld [vmem:[#allocation10 + $0x264] ss:$16 sps:$4 sm:$0xff]   ;;  %v8002_v28 = vcombine.high %v591_v21, %v599_v23  ;;  %v9735_v29 = vld [vmem:[#allocation10 + $0x260] ss:$16 sps:$4 sm:$0xff]  }
 0x143   : > { %4436 = vmatpush1.bf16.msra.mxu0 %v9667_v34  ;;  %5340 = vmatpush1.bf16.msra.mxu1 %v9668_v35  ;;  %v9743_v31 = vld [vmem:[#allocation10 + $0x284] ss:$16 sps:$4 sm:$0xff]   ;;  %v8001_v34 = vcombine.low %v591_v21, %v599_v23  ;;  %v9783_v13 = vld [vmem:[#allocation10 + $0x360] ss:$16 sps:$4 sm:$0xff]   ;;  %v9800_v23 = vld [vmem:[#allocation10 + $0x3ac] ss:$16 sps:$4 sm:$0xff]  }
 0x144   : > { %4437 = vmatprep.subr.bf16.mxu0 %v9669_v36  ;;  %5341 = vmatprep.subr.bf16.mxu1 %v9671_v37  ;;  %v607_v33 = vld [vmem:[%s11296_s2 + $0x180] sm:$0xff]  ;;  %v9744_v37 = vld [vmem:[#allocation10 + $0x288] ss:$16 sps:$4 sm:$0xff]  }
 0x145   : > { %v615_v35 = vld [vmem:[%s11296_s2 + $0x1c0] sm:$0xff] }
 0x146   : > { %v9741_v36 = vld [vmem:[#allocation10 + $0x280] ss:$16 sps:$4 sm:$0xff]   ;;  %v9761_v50 = vld [vmem:[#allocation10 + $0x2e4] ss:$16 sps:$4 sm:$0xff]  }
 0x147   : > { %4438 = vmatpush1.bf16.msra.mxu0 %v9673_v38  ;;  %5342 = vmatpush1.bf16.msra.mxu1 %v9674_v39  ;;  %v9749_v38 = vld [vmem:[#allocation10 + $0x2a4] ss:$16 sps:$4 sm:$0xff]   ;;  %v9752_v39 = vld [vmem:[#allocation10 + $0x2ac] ss:$16 sps:$4 sm:$0xff]  }
 0x148   : > { %4439 = vmatprep.subr.bf16.mxu0 %v9675_v40  ;;  %5343 = vmatprep.subr.bf16.mxu1 %v9677_v41  ;;  %v8018_v40 = vcombine.high %v607_v33, %v615_v35  ;;  %v9747_v41 = vld [vmem:[#allocation10 + $0x2a0] ss:$16 sps:$4 sm:$0xff]  }
 0x149   : > { %v679_v21 = vld [vmem:[%s11296_s2 + $0x3c0] sm:$0xff] }
 0x14b   : > { %4440 = vmatpush1.bf16.msra.mxu0 %v9679_v42  ;;  %5344 = vmatpush1.bf16.msra.mxu1 %v9680_v43  ;;  %v9750_v42 = vld [vmem:[#allocation10 + $0x2a8] ss:$16 sps:$4 sm:$0xff]   ;;  %v9755_v43 = vld [vmem:[#allocation10 + $0x2c4] ss:$16 sps:$4 sm:$0xff]  }
 0x14c   : > { %4441 = vmatprep.subr.bf16.mxu0 %v9681_v44  ;;  %5345 = vmatprep.subr.bf16.mxu1 %v9683_v45  ;;  %v9758_v44 = vld [vmem:[#allocation10 + $0x2cc] ss:$16 sps:$4 sm:$0xff]   ;;  %v9753_v45 = vld [vmem:[#allocation10 + $0x2c0] ss:$16 sps:$4 sm:$0xff]  }
 0x14f   : > { %4442 = vmatpush1.bf16.msra.mxu0 %v9685_v46  ;;  %5346 = vmatpush1.bf16.msra.mxu1 %v9686_v47  ;;  %v9756_v46 = vld [vmem:[#allocation10 + $0x2c8] ss:$16 sps:$4 sm:$0xff]   ;;  %v8017_v47 = vcombine.low %v607_v33, %v615_v35  ;;  %v9812_v35 = vld [vmem:[#allocation10 + $0x3ec] ss:$16 sps:$4 sm:$0xff]  }
 0x150   : > { %4443 = vmatprep.subr.bf16.mxu0 %v9687_v48  ;;  %5347 = vmatprep.subr.bf16.mxu1 %v9689_v49  ;;  %v623_v48 = vld [vmem:[%s11296_s2 + $0x200] sm:$0xff]  ;;  %v9804_v33 = vld [vmem:[#allocation10 + $0x3c8] ss:$16 sps:$4 sm:$0xff]  }
 0x151   : > { %v631_v49 = vld [vmem:[%s11296_s2 + $0x240] sm:$0xff] }
 0x153   : > { %4444 = vmatpush1.bf16.msra.mxu0 %v9691_v52  ;;  %5348 = vmatpush1.bf16.msra.mxu1 %v9692_v53  ;;  %v8034_v52 = vcombine.high %v623_v48, %v631_v49  ;;  %v9759_v53 = vld [vmem:[#allocation10 + $0x2e0] ss:$16 sps:$4 sm:$0xff]  }
 0x154   : > { %4445 = vmatprep.subr.bf16.mxu0 %v9693_v55  ;;  %5349 = vmatprep.subr.bf16.mxu1 %v9695_v56  ;;  %v9767_v55 = vld [vmem:[#allocation10 + $0x304] ss:$16 sps:$4 sm:$0xff]   ;;  %v9770_v56 = vld [vmem:[#allocation10 + $0x30c] ss:$16 sps:$4 sm:$0xff]  }
 0x157   : > { %4446 = vmatpush1.bf16.msra.mxu0 %v9697_v57  ;;  %5350 = vmatpush1.bf16.msra.mxu1 %v9698_v58  ;;  %v639_v57 = vld [vmem:[%s11296_s2 + $0x280] sm:$0xff]  ;;  %v8033_v58 = vcombine.low %v623_v48, %v631_v49 }
 0x158   : > { %4447 = vmatprep.subr.bf16.mxu0 %v9699_v59  ;;  %5351 = vmatprep.subr.bf16.mxu1 %v9701_v60  ;;  %v647_v59 = vld [vmem:[%s11296_s2 + $0x2c0] sm:$0xff] }
 0x159   : > { %v9765_v60 = vld [vmem:[#allocation10 + $0x300] ss:$16 sps:$4 sm:$0xff]  }
 0x15a   : > { %v9819_v49 = vld [vmem:[#allocation10 + $0x420] ss:$16 sps:$4 sm:$0xff]  }
 0x15b   : > { %4448 = vmatpush1.bf16.msra.mxu0 %v9703_v61  ;;  %5352 = vmatpush1.bf16.msra.mxu1 %v9704_v62  ;;  %v9768_v61 = vld [vmem:[#allocation10 + $0x308] ss:$16 sps:$4 sm:$0xff]   ;;  %v9773_v62 = vld [vmem:[#allocation10 + $0x324] ss:$16 sps:$4 sm:$0xff]  }
 0x15c   : > { %4449 = vmatprep.subr.bf16.mxu0 %v9705_v63  ;;  %5353 = vmatprep.subr.bf16.mxu1 %v9707_v0  ;;  %v9776_v63 = vld [vmem:[#allocation10 + $0x32c] ss:$16 sps:$4 sm:$0xff]   ;;  %v8050_v0 = vcombine.high %v639_v57, %v647_v59 }
 0x15f   : > { %4450 = vmatpush1.bf16.msra.mxu0 %v9709_v1  ;;  %5354 = vmatpush1.bf16.msra.mxu1 %v9710_v2  ;;  %v9771_v1 = vld [vmem:[#allocation10 + $0x320] ss:$16 sps:$4 sm:$0xff]   ;;  %v9774_v2 = vld [vmem:[#allocation10 + $0x328] ss:$16 sps:$4 sm:$0xff]  }
 0x160   : > { %4451 = vmatprep.subr.bf16.mxu0 %v9711_v3  ;;  %5355 = vmatprep.subr.bf16.mxu1 %v9713_v4  ;;  %v9779_v3 = vld [vmem:[#allocation10 + $0x344] ss:$16 sps:$4 sm:$0xff]   ;;  %v9782_v4 = vld [vmem:[#allocation10 + $0x34c] ss:$16 sps:$4 sm:$0xff]  }
 0x163   : > { %4452 = vmatpush1.bf16.msra.mxu0 %v9715_v5  ;;  %5356 = vmatpush1.bf16.msra.mxu1 %v9716_v6  ;;  %v655_v5 = vld [vmem:[%s11296_s2 + $0x300] sm:$0xff]  ;;  %v8049_v6 = vcombine.low %v639_v57, %v647_v59  ;;  %v600_v57 = vld [vmem:[%s11296_s2 + $0x148] sm:$0xff] }
 0x164   : > { %4534 = vmatprep.subr.bf16.mxu0 %v9719_v7  ;;  %5438 = vmatprep.subr.bf16.mxu1 %v9722_v8  ;;  %v663_v7 = vld [vmem:[%s11296_s2 + $0x340] sm:$0xff]  ;;  %v9836_v59 = vld [vmem:[#allocation10 + $0x46c] ss:$16 sps:$4 sm:$0xff]  }
 0x165   : > { %v9777_v8 = vld [vmem:[#allocation10 + $0x340] ss:$16 sps:$4 sm:$0xff]   ;;  %v8066_v12 = vcombine.high %v655_v5, %v663_v7 }
 0x166   : > { %4454 = vmatmul.mubr.bf16.vlgmr.msra.gmra.mrb[0].mxu0 %v7969_v11  ;;  %5358 = vmatmul.mubr.bf16.vlgmr.msra.gmra.mrb[0].mxu1 %v7969_v11  ;;  %v9788_v11 = vld [vmem:[#allocation10 + $0x36c] ss:$16 sps:$4 sm:$0xff]  }
 0x167   : > { %4535 = vmatpush1.bf16.msra.mxu0 %v9717_v9  ;;  %5439 = vmatpush1.bf16.msra.mxu1 %v9720_v10  ;;  %v9780_v9 = vld [vmem:[#allocation10 + $0x348] ss:$16 sps:$4 sm:$0xff]   ;;  %v9785_v10 = vld [vmem:[#allocation10 + $0x364] ss:$16 sps:$4 sm:$0xff]  }
 0x168   : > { %4536 = vmatprep.subr.bf16.mxu0 %v9725_v14  ;;  %5440 = vmatprep.subr.bf16.mxu1 %v9728_v15  ;;  %v9786_v14 = vld [vmem:[#allocation10 + $0x368] ss:$16 sps:$4 sm:$0xff]   ;;  %v9791_v15 = vld [vmem:[#allocation10 + $0x384] ss:$16 sps:$4 sm:$0xff]  }
 0x169   : > { %4463 = vmatprep.mubr.bf16.mxu0 %v7986_v16  ;;  %5367 = vmatprep.mubr.bf16.mxu1 %v7986_v16  ;;  %v9794_v16 = vld [vmem:[#allocation10 + $0x38c] ss:$16 sps:$4 sm:$0xff]  }
 0x16b   : > { %4537 = vmatpush1.bf16.msra.mxu0 %v9723_v17  ;;  %5441 = vmatpush1.bf16.msra.mxu1 %v9726_v18  ;;  %v9789_v17 = vld [vmem:[#allocation10 + $0x380] ss:$16 sps:$4 sm:$0xff]   ;;  %v9792_v18 = vld [vmem:[#allocation10 + $0x388] ss:$16 sps:$4 sm:$0xff]  }
 0x16c   : > { %4538 = vmatprep.subr.bf16.mxu0 %v9731_v19  ;;  %5442 = vmatprep.subr.bf16.mxu1 %v9734_v20  ;;  %v8065_v19 = vcombine.low %v655_v5, %v663_v7  ;;  %v671_v20 = vld [vmem:[%s11296_s2 + $0x380] sm:$0xff]  ;;  %v9840_v5 = vld [vmem:[#allocation10 + $0x488] ss:$16 sps:$4 sm:$0xff]   ;;  %v9848_v7 = vld [vmem:[#allocation10 + $0x4ac] ss:$16 sps:$4 sm:$0xff]  }
 0x16e   : > { %4464 = vmatmul.mubr.bf16.gmra.mrb[4].mxu0 %v7985_v22  ;;  %5368 = vmatmul.mubr.bf16.gmra.mrb[4].mxu1 %v7985_v22  ;;  %v9797_v22 = vld [vmem:[#allocation10 + $0x3a4] ss:$16 sps:$4 sm:$0xff]  }
 0x16f   : > { %4539 = vmatpush1.bf16.msra.mxu0 %v9729_v24  ;;  %5443 = vmatpush1.bf16.msra.mxu1 %v9732_v25  ;;  %v8082_v24 = vcombine.high %v671_v20, %v679_v21  ;;  %v9795_v25 = vld [vmem:[#allocation10 + $0x3a0] ss:$16 sps:$4 sm:$0xff]  }
 0x170   : > { %4540 = vmatprep.subr.bf16.mxu0 %v9737_v26  ;;  %5444 = vmatprep.subr.bf16.mxu1 %v9740_v27  ;;  %v9798_v26 = vld [vmem:[#allocation10 + $0x3a8] ss:$16 sps:$4 sm:$0xff]   ;;  %v9803_v27 = vld [vmem:[#allocation10 + $0x3c4] ss:$16 sps:$4 sm:$0xff]  }
 0x171   : > { %4473 = vmatprep.mubr.bf16.mxu0 %v8002_v28  ;;  %5377 = vmatprep.mubr.bf16.mxu1 %v8002_v28  ;;  %v9806_v28 = vld [vmem:[#allocation10 + $0x3cc] ss:$16 sps:$4 sm:$0xff]  }
 0x173   : > { %4541 = vmatpush1.bf16.msra.mxu0 %v9735_v29  ;;  %5445 = vmatpush1.bf16.msra.mxu1 %v9738_v30  ;;  %v560_v29 = vld [vmem:[%s11296_s2 + $0x8] sm:$0xff]  ;;  %v8081_v30 = vcombine.low %v671_v20, %v679_v21  ;;  %v9855_v21 = vld [vmem:[#allocation10 + $0x4e0] ss:$16 sps:$4 sm:$0xff]  }
 0x174   : > { %4542 = vmatprep.subr.bf16.mxu0 %v9743_v31  ;;  %5446 = vmatprep.subr.bf16.mxu1 %v9746_v32  ;;  %v568_v31 = vld [vmem:[%s11296_s2 + $0x48] sm:$0xff]  ;;  %v9801_v32 = vld [vmem:[#allocation10 + $0x3c0] ss:$16 sps:$4 sm:$0xff]  }
 0x176   : > { %4474 = vmatmul.mubr.bf16.gmra.mrb[8].mxu0 %v8001_v34  ;;  %5378 = vmatmul.mubr.bf16.gmra.mrb[8].mxu1 %v8001_v34  ;;  %v9809_v34 = vld [vmem:[#allocation10 + $0x3e4] ss:$16 sps:$4 sm:$0xff]  }
 0x177   : > { %4543 = vmatpush1.bf16.msra.mxu0 %v9741_v36  ;;  %5447 = vmatpush1.bf16.msra.mxu1 %v9744_v37  ;;  %v7972_v36 = vcombine.high %v560_v29, %v568_v31  ;;  %v9807_v37 = vld [vmem:[#allocation10 + $0x3e0] ss:$16 sps:$4 sm:$0xff]  }
 0x178   : > { %4544 = vmatprep.subr.bf16.mxu0 %v9749_v38  ;;  %5448 = vmatprep.subr.bf16.mxu1 %v9752_v39  ;;  %v9810_v38 = vld [vmem:[#allocation10 + $0x3e8] ss:$16 sps:$4 sm:$0xff]   ;;  %v9815_v39 = vld [vmem:[#allocation10 + $0x404] ss:$16 sps:$4 sm:$0xff]  }
 0x179   : > { %4483 = vmatprep.mubr.bf16.mxu0 %v8018_v40  ;;  %5387 = vmatprep.mubr.bf16.mxu1 %v8018_v40  ;;  %v9818_v40 = vld [vmem:[#allocation10 + $0x40c] ss:$16 sps:$4 sm:$0xff]  }
 0x17b   : > { %4545 = vmatpush1.bf16.msra.mxu0 %v9747_v41  ;;  %5449 = vmatpush1.bf16.msra.mxu1 %v9750_v42  ;;  %v576_v41 = vld [vmem:[%s11296_s2 + $0x88] sm:$0xff]  ;;  %v7971_v42 = vcombine.low %v560_v29, %v568_v31 }
 0x17c   : > { %4546 = vmatprep.subr.bf16.mxu0 %v9755_v43  ;;  %5450 = vmatprep.subr.bf16.mxu1 %v9758_v44  ;;  %v584_v43 = vld [vmem:[%s11296_s2 + $0xc8] sm:$0xff]  ;;  %v9813_v44 = vld [vmem:[#allocation10 + $0x400] ss:$16 sps:$4 sm:$0xff]  }
 0x17d   : > { %v7988_v48 = vcombine.high %v576_v41, %v584_v43  ;;  %v648_v29 = vld [vmem:[%s11296_s2 + $0x2c8] sm:$0xff] }
 0x17e   : > { %4484 = vmatmul.mubr.bf16.gmra.mrb[12].mxu0 %v8017_v47  ;;  %5388 = vmatmul.mubr.bf16.gmra.mrb[12].mxu1 %v8017_v47  ;;  %v9824_v47 = vld [vmem:[#allocation10 + $0x42c] ss:$16 sps:$4 sm:$0xff]  }
 0x17f   : > { %4547 = vmatpush1.bf16.msra.mxu0 %v9753_v45  ;;  %5451 = vmatpush1.bf16.msra.mxu1 %v9756_v46  ;;  %v9816_v45 = vld [vmem:[#allocation10 + $0x408] ss:$16 sps:$4 sm:$0xff]   ;;  %v9821_v46 = vld [vmem:[#allocation10 + $0x424] ss:$16 sps:$4 sm:$0xff]   ;;  %v9872_v31 = vld [vmem:[#allocation10 + $0x52c] ss:$16 sps:$4 sm:$0xff]  }
 0x180   : > { %4548 = vmatprep.subr.bf16.mxu0 %v9761_v50  ;;  %5452 = vmatprep.subr.bf16.mxu1 %v9764_v51  ;;  %v9822_v50 = vld [vmem:[#allocation10 + $0x428] ss:$16 sps:$4 sm:$0xff]   ;;  %v9827_v51 = vld [vmem:[#allocation10 + $0x444] ss:$16 sps:$4 sm:$0xff]  }
 0x181   : > { %4493 = vmatprep.mubr.bf16.mxu0 %v8034_v52  ;;  %5397 = vmatprep.mubr.bf16.mxu1 %v8034_v52  ;;  %v9830_v52 = vld [vmem:[#allocation10 + $0x44c] ss:$16 sps:$4 sm:$0xff]  }
 0x183   : > { %4549 = vmatpush1.bf16.msra.mxu0 %v9759_v53  ;;  %5453 = vmatpush1.bf16.msra.mxu1 %v9762_v54  ;;  %v9825_v53 = vld [vmem:[#allocation10 + $0x440] ss:$16 sps:$4 sm:$0xff]   ;;  %v9828_v54 = vld [vmem:[#allocation10 + $0x448] ss:$16 sps:$4 sm:$0xff]  }
 0x184   : > { %4550 = vmatprep.subr.bf16.mxu0 %v9767_v55  ;;  %5454 = vmatprep.subr.bf16.mxu1 %v9770_v56  ;;  %v7987_v55 = vcombine.low %v576_v41, %v584_v43  ;;  %v592_v56 = vld [vmem:[%s11296_s2 + $0x108] sm:$0xff] }
 0x185   : > { %v9876_v41 = vld [vmem:[#allocation10 + $0x548] ss:$16 sps:$4 sm:$0xff]   ;;  %v9884_v43 = vld [vmem:[#allocation10 + $0x56c] ss:$16 sps:$4 sm:$0xff]  }
 0x186   : > { %4494 = vmatmul.mubr.bf16.gmra.mrb[16].mxu0 %v8033_v58  ;;  %5398 = vmatmul.mubr.bf16.gmra.mrb[16].mxu1 %v8033_v58  ;;  %v9833_v58 = vld [vmem:[#allocation10 + $0x464] ss:$16 sps:$4 sm:$0xff]  }
 0x187   : > { %4551 = vmatpush1.bf16.msra.mxu0 %v9765_v60  ;;  %5455 = vmatpush1.bf16.msra.mxu1 %v9768_v61  ;;  %v8004_v60 = vcombine.high %v592_v56, %v600_v57  ;;  %v9831_v61 = vld [vmem:[#allocation10 + $0x460] ss:$16 sps:$4 sm:$0xff]  }
 0x188   : > { %4552 = vmatprep.subr.bf16.mxu0 %v9773_v62  ;;  %5456 = vmatprep.subr.bf16.mxu1 %v9776_v63  ;;  %v9834_v62 = vld [vmem:[#allocation10 + $0x468] ss:$16 sps:$4 sm:$0xff]   ;;  %v9839_v63 = vld [vmem:[#allocation10 + $0x484] ss:$16 sps:$4 sm:$0xff]  }
 0x189   : > { %4503 = vmatprep.mubr.bf16.mxu0 %v8050_v0  ;;  %5407 = vmatprep.mubr.bf16.mxu1 %v8050_v0  ;;  %v9842_v0 = vld [vmem:[#allocation10 + $0x48c] ss:$16 sps:$4 sm:$0xff]  }
 0x18b   : > { %4553 = vmatpush1.bf16.msra.mxu0 %v9771_v1  ;;  %5457 = vmatpush1.bf16.msra.mxu1 %v9774_v2  ;;  %v608_v1 = vld [vmem:[%s11296_s2 + $0x188] sm:$0xff]  ;;  %v8003_v2 = vcombine.low %v592_v56, %v600_v57  ;;  %v9891_v57 = vld [vmem:[#allocation10 + $0x5a0] ss:$16 sps:$4 sm:$0xff]  }
 0x18c   : > { %4554 = vmatprep.subr.bf16.mxu0 %v9779_v3  ;;  %5458 = vmatprep.subr.bf16.mxu1 %v9782_v4  ;;  %v616_v3 = vld [vmem:[%s11296_s2 + $0x1c8] sm:$0xff]  ;;  %v9837_v4 = vld [vmem:[#allocation10 + $0x480] ss:$16 sps:$4 sm:$0xff]  }
 0x18e   : > { %4504 = vmatmul.mubr.bf16.gmra.mrb[20].mxu0 %v8049_v6  ;;  %5408 = vmatmul.mubr.bf16.gmra.mrb[20].mxu1 %v8049_v6  ;;  %v9845_v6 = vld [vmem:[#allocation10 + $0x4a4] ss:$16 sps:$4 sm:$0xff]  }
 0x18f   : > { %4555 = vmatpush1.bf16.msra.mxu0 %v9777_v8  ;;  %5459 = vmatpush1.bf16.msra.mxu1 %v9780_v9  ;;  %v8020_v8 = vcombine.high %v608_v1, %v616_v3  ;;  %v9843_v9 = vld [vmem:[#allocation10 + $0x4a0] ss:$16 sps:$4 sm:$0xff]  }
 0x190   : > { %4556 = vmatprep.subr.bf16.mxu0 %v9785_v10  ;;  %5460 = vmatprep.subr.bf16.mxu1 %v9788_v11  ;;  %v9846_v10 = vld [vmem:[#allocation10 + $0x4a8] ss:$16 sps:$4 sm:$0xff]   ;;  %v9851_v11 = vld [vmem:[#allocation10 + $0x4c4] ss:$16 sps:$4 sm:$0xff]  }
 0x191   : > { %4513 = vmatprep.mubr.bf16.mxu0 %v8066_v12  ;;  %5417 = vmatprep.mubr.bf16.mxu1 %v8066_v12  ;;  %v9854_v12 = vld [vmem:[#allocation10 + $0x4cc] ss:$16 sps:$4 sm:$0xff]  }
 0x193   : > { %4557 = vmatpush1.bf16.msra.mxu0 %v9783_v13  ;;  %5461 = vmatpush1.bf16.msra.mxu1 %v9786_v14  ;;  %v624_v13 = vld [vmem:[%s11296_s2 + $0x208] sm:$0xff]  ;;  %v8019_v14 = vcombine.low %v608_v1, %v616_v3  ;;  %v569_v1 = vld [vmem:[%s11296_s2 + $0x50] sm:$0xff] }
 0x194   : > { %4558 = vmatprep.subr.bf16.mxu0 %v9791_v15  ;;  %5462 = vmatprep.subr.bf16.mxu1 %v9794_v16  ;;  %v632_v15 = vld [vmem:[%s11296_s2 + $0x248] sm:$0xff]  ;;  %v9849_v16 = vld [vmem:[#allocation10 + $0x4c0] ss:$16 sps:$4 sm:$0xff]  }
 0x195   : > { %v8036_v20 = vcombine.high %v624_v13, %v632_v15  ;;  %v9908_v3 = vld [vmem:[#allocation10 + $0x5ec] ss:$16 sps:$4 sm:$0xff]  }
 0x196   : > { %4514 = vmatmul.mubr.bf16.gmra.mrb[24].mxu0 %v8065_v19  ;;  %5418 = vmatmul.mubr.bf16.gmra.mrb[24].mxu1 %v8065_v19  ;;  %v9860_v19 = vld [vmem:[#allocation10 + $0x4ec] ss:$16 sps:$4 sm:$0xff]  }
 0x197   : > { %4559 = vmatpush1.bf16.msra.mxu0 %v9789_v17  ;;  %5463 = vmatpush1.bf16.msra.mxu1 %v9792_v18  ;;  %v9852_v17 = vld [vmem:[#allocation10 + $0x4c8] ss:$16 sps:$4 sm:$0xff]   ;;  %v9857_v18 = vld [vmem:[#allocation10 + $0x4e4] ss:$16 sps:$4 sm:$0xff]  }
 0x198   : > { %4560 = vmatprep.subr.bf16.mxu0 %v9797_v22  ;;  %5464 = vmatprep.subr.bf16.mxu1 %v9800_v23  ;;  %v9858_v22 = vld [vmem:[#allocation10 + $0x4e8] ss:$16 sps:$4 sm:$0xff]   ;;  %v9863_v23 = vld [vmem:[#allocation10 + $0x504] ss:$16 sps:$4 sm:$0xff]  }
 0x199   : > { %4523 = vmatprep.mubr.bf16.mxu0 %v8082_v24  ;;  %5427 = vmatprep.mubr.bf16.mxu1 %v8082_v24  ;;  %v9866_v24 = vld [vmem:[#allocation10 + $0x50c] ss:$16 sps:$4 sm:$0xff]  }
 0x19b   : > { %4561 = vmatpush1.bf16.msra.mxu0 %v9795_v25  ;;  %5465 = vmatpush1.bf16.msra.mxu1 %v9798_v26  ;;  %v9861_v25 = vld [vmem:[#allocation10 + $0x500] ss:$16 sps:$4 sm:$0xff]   ;;  %v9864_v26 = vld [vmem:[#allocation10 + $0x508] ss:$16 sps:$4 sm:$0xff]  }
 0x19c   : > { %4562 = vmatprep.subr.bf16.mxu0 %v9803_v27  ;;  %5466 = vmatprep.subr.bf16.mxu1 %v9806_v28  ;;  %v8035_v27 = vcombine.low %v624_v13, %v632_v15  ;;  %v640_v28 = vld [vmem:[%s11296_s2 + $0x288] sm:$0xff] }
 0x19d   : > { %v9912_v13 = vld [vmem:[#allocation10 + $0x608] ss:$16 sps:$4 sm:$0xff]   ;;  %v9920_v15 = vld [vmem:[#allocation10 + $0x62c] ss:$16 sps:$4 sm:$0xff]  }
 0x19e   : > { %4524 = vmatmul.mubr.bf16.gmra.mrb[28].mxu0 %v8081_v30  ;;  %5428 = vmatmul.mubr.bf16.gmra.mrb[28].mxu1 %v8081_v30  ;;  %v9869_v30 = vld [vmem:[#allocation10 + $0x524] ss:$16 sps:$4 sm:$0xff]  }
 0x19f   : > { %4563 = vmatpush1.bf16.msra.mxu0 %v9801_v32  ;;  %5467 = vmatpush1.bf16.msra.mxu1 %v9804_v33  ;;  %v8052_v32 = vcombine.high %v640_v28, %v648_v29  ;;  %v9867_v33 = vld [vmem:[#allocation10 + $0x520] ss:$16 sps:$4 sm:$0xff]  }
 0x1a0   : > { %4564 = vmatprep.subr.bf16.mxu0 %v9809_v34  ;;  %5468 = vmatprep.subr.bf16.mxu1 %v9812_v35  ;;  %v9870_v34 = vld [vmem:[#allocation10 + $0x528] ss:$16 sps:$4 sm:$0xff]   ;;  %v9875_v35 = vld [vmem:[#allocation10 + $0x544] ss:$16 sps:$4 sm:$0xff]  }
 0x1a1   : > { %4566 = vmatprep.mubr.bf16.mxu0 %v7972_v36  ;;  %5470 = vmatprep.mubr.bf16.mxu1 %v7972_v36  ;;  %v9878_v36 = vld [vmem:[#allocation10 + $0x54c] ss:$16 sps:$4 sm:$0xff]  }
 0x1a3   : > { %4565 = vmatpush1.bf16.msra.mxu0 %v9807_v37  ;;  %5469 = vmatpush1.bf16.msra.mxu1 %v9810_v38  ;;  %v656_v37 = vld [vmem:[%s11296_s2 + $0x308] sm:$0xff]  ;;  %v8051_v38 = vcombine.low %v640_v28, %v648_v29  ;;  %v9927_v29 = vld [vmem:[#allocation10 + $0x660] ss:$16 sps:$4 sm:$0xff]  }
 0x1a4   : > { %4647 = vmatprep.subr.bf16.mxu0 %v9815_v39  ;;  %5551 = vmatprep.subr.bf16.mxu1 %v9818_v40  ;;  %v664_v39 = vld [vmem:[%s11296_s2 + $0x348] sm:$0xff]  ;;  %v9873_v40 = vld [vmem:[#allocation10 + $0x540] ss:$16 sps:$4 sm:$0xff]  }
 0x1a6   : > { %4567 = vmatmul.mubr.bf16.vlgmr.msra.gmra.mrb[0].mxu0 %v7971_v42  ;;  %5471 = vmatmul.mubr.bf16.vlgmr.msra.gmra.mrb[0].mxu1 %v7971_v42  ;;  %v9881_v42 = vld [vmem:[#allocation10 + $0x564] ss:$16 sps:$4 sm:$0xff]  }
 0x1a7   : > { %4648 = vmatpush1.bf16.msra.mxu0 %v9813_v44  ;;  %5552 = vmatpush1.bf16.msra.mxu1 %v9816_v45  ;;  %v8068_v44 = vcombine.high %v656_v37, %v664_v39  ;;  %v9879_v45 = vld [vmem:[#allocation10 + $0x560] ss:$16 sps:$4 sm:$0xff]  }
 0x1a8   : > { %4649 = vmatprep.subr.bf16.mxu0 %v9821_v46  ;;  %5553 = vmatprep.subr.bf16.mxu1 %v9824_v47  ;;  %v9882_v46 = vld [vmem:[#allocation10 + $0x568] ss:$16 sps:$4 sm:$0xff]   ;;  %v9887_v47 = vld [vmem:[#allocation10 + $0x584] ss:$16 sps:$4 sm:$0xff]  }
 0x1a9   : > { %4576 = vmatprep.mubr.bf16.mxu0 %v7988_v48  ;;  %5480 = vmatprep.mubr.bf16.mxu1 %v7988_v48  ;;  %v9890_v48 = vld [vmem:[#allocation10 + $0x58c] ss:$16 sps:$4 sm:$0xff]  }
 0x1ab   : > { %4650 = vmatpush1.bf16.msra.mxu0 %v9819_v49  ;;  %5554 = vmatpush1.bf16.msra.mxu1 %v9822_v50  ;;  %v672_v49 = vld [vmem:[%s11296_s2 + $0x388] sm:$0xff]  ;;  %v8067_v50 = vcombine.low %v656_v37, %v664_v39  ;;  %v617_v37 = vld [vmem:[%s11296_s2 + $0x1d0] sm:$0xff] }
 0x1ac   : > { %4651 = vmatprep.subr.bf16.mxu0 %v9827_v51  ;;  %5555 = vmatprep.subr.bf16.mxu1 %v9830_v52  ;;  %v680_v51 = vld [vmem:[%s11296_s2 + $0x3c8] sm:$0xff]  ;;  %v9885_v52 = vld [vmem:[#allocation10 + $0x580] ss:$16 sps:$4 sm:$0xff]  }
 0x1ad   : > { %v8084_v56 = vcombine.high %v672_v49, %v680_v51  ;;  %v9944_v39 = vld [vmem:[#allocation10 + $0x6ac] ss:$16 sps:$4 sm:$0xff]  }
 0x1ae   : > { %4577 = vmatmul.mubr.bf16.gmra.mrb[4].mxu0 %v7987_v55  ;;  %5481 = vmatmul.mubr.bf16.gmra.mrb[4].mxu1 %v7987_v55  ;;  %v9896_v55 = vld [vmem:[#allocation10 + $0x5ac] ss:$16 sps:$4 sm:$0xff]  }
 0x1af   : > { %4652 = vmatpush1.bf16.msra.mxu0 %v9825_v53  ;;  %5556 = vmatpush1.bf16.msra.mxu1 %v9828_v54  ;;  %v9888_v53 = vld [vmem:[#allocation10 + $0x588] ss:$16 sps:$4 sm:$0xff]   ;;  %v9893_v54 = vld [vmem:[#allocation10 + $0x5a4] ss:$16 sps:$4 sm:$0xff]  }
 0x1b0   : > { %4653 = vmatprep.subr.bf16.mxu0 %v9833_v58  ;;  %5557 = vmatprep.subr.bf16.mxu1 %v9836_v59  ;;  %v9894_v58 = vld [vmem:[#allocation10 + $0x5a8] ss:$16 sps:$4 sm:$0xff]   ;;  %v9899_v59 = vld [vmem:[#allocation10 + $0x5c4] ss:$16 sps:$4 sm:$0xff]  }
 0x1b1   : > { %4586 = vmatprep.mubr.bf16.mxu0 %v8004_v60  ;;  %5490 = vmatprep.mubr.bf16.mxu1 %v8004_v60  ;;  %v9902_v60 = vld [vmem:[#allocation10 + $0x5cc] ss:$16 sps:$4 sm:$0xff]  }
 0x1b3   : > { %4654 = vmatpush1.bf16.msra.mxu0 %v9831_v61  ;;  %5558 = vmatpush1.bf16.msra.mxu1 %v9834_v62  ;;  %v9897_v61 = vld [vmem:[#allocation10 + $0x5c0] ss:$16 sps:$4 sm:$0xff]   ;;  %v9900_v62 = vld [vmem:[#allocation10 + $0x5c8] ss:$16 sps:$4 sm:$0xff]  }
 0x1b4   : > { %4655 = vmatprep.subr.bf16.mxu0 %v9839_v63  ;;  %5559 = vmatprep.subr.bf16.mxu1 %v9842_v0  ;;  %v8083_v63 = vcombine.low %v672_v49, %v680_v51  ;;  %v561_v0 = vld [vmem:[%s11296_s2 + $0x10] sm:$0xff]  ;;  %v9948_v49 = vld [vmem:[#allocation10 + $0x6c8] ss:$16 sps:$4 sm:$0xff]   ;;  %v9956_v51 = vld [vmem:[#allocation10 + $0x6ec] ss:$16 sps:$4 sm:$0xff]  }
 0x1b6   : > { %4587 = vmatmul.mubr.bf16.gmra.mrb[8].mxu0 %v8003_v2  ;;  %5491 = vmatmul.mubr.bf16.gmra.mrb[8].mxu1 %v8003_v2  ;;  %v9905_v2 = vld [vmem:[#allocation10 + $0x5e4] ss:$16 sps:$4 sm:$0xff]  }
 0x1b7   : > { %4656 = vmatpush1.bf16.msra.mxu0 %v9837_v4  ;;  %5560 = vmatpush1.bf16.msra.mxu1 %v9840_v5  ;;  %v7974_v4 = vcombine.high %v561_v0, %v569_v1  ;;  %v9903_v5 = vld [vmem:[#allocation10 + $0x5e0] ss:$16 sps:$4 sm:$0xff]  }
 0x1b8   : > { %4657 = vmatprep.subr.bf16.mxu0 %v9845_v6  ;;  %5561 = vmatprep.subr.bf16.mxu1 %v9848_v7  ;;  %v9906_v6 = vld [vmem:[#allocation10 + $0x5e8] ss:$16 sps:$4 sm:$0xff]   ;;  %v9911_v7 = vld [vmem:[#allocation10 + $0x604] ss:$16 sps:$4 sm:$0xff]  }
 0x1b9   : > { %4596 = vmatprep.mubr.bf16.mxu0 %v8020_v8  ;;  %5500 = vmatprep.mubr.bf16.mxu1 %v8020_v8  ;;  %v9914_v8 = vld [vmem:[#allocation10 + $0x60c] ss:$16 sps:$4 sm:$0xff]  }
 0x1bb   : > { %4658 = vmatpush1.bf16.msra.mxu0 %v9843_v9  ;;  %5562 = vmatpush1.bf16.msra.mxu1 %v9846_v10  ;;  %v577_v9 = vld [vmem:[%s11296_s2 + $0x90] sm:$0xff]  ;;  %v7973_v10 = vcombine.low %v561_v0, %v569_v1 }
 0x1bc   : > { %4659 = vmatprep.subr.bf16.mxu0 %v9851_v11  ;;  %5563 = vmatprep.subr.bf16.mxu1 %v9854_v12  ;;  %v585_v11 = vld [vmem:[%s11296_s2 + $0xd0] sm:$0xff] }
 0x1bd   : > { %v9909_v12 = vld [vmem:[#allocation10 + $0x600] ss:$16 sps:$4 sm:$0xff]  }
 0x1be   : > { %4597 = vmatmul.mubr.bf16.gmra.mrb[12].mxu0 %v8019_v14  ;;  %5501 = vmatmul.mubr.bf16.gmra.mrb[12].mxu1 %v8019_v14  ;;  %v9917_v14 = vld [vmem:[#allocation10 + $0x624] ss:$16 sps:$4 sm:$0xff]   ;;  %v9963_v1 = vld [vmem:[#allocation10 + $0x720] ss:$16 sps:$4 sm:$0xff]  }
 0x1bf   : > { %4660 = vmatpush1.bf16.msra.mxu0 %v9849_v16  ;;  %5564 = vmatpush1.bf16.msra.mxu1 %v9852_v17  ;;  %v7990_v16 = vcombine.high %v577_v9, %v585_v11  ;;  %v9915_v17 = vld [vmem:[#allocation10 + $0x620] ss:$16 sps:$4 sm:$0xff]  }
 0x1c0   : > { %4661 = vmatprep.subr.bf16.mxu0 %v9857_v18  ;;  %5565 = vmatprep.subr.bf16.mxu1 %v9860_v19  ;;  %v9918_v18 = vld [vmem:[#allocation10 + $0x628] ss:$16 sps:$4 sm:$0xff]   ;;  %v9923_v19 = vld [vmem:[#allocation10 + $0x644] ss:$16 sps:$4 sm:$0xff]  }
 0x1c1   : > { %4606 = vmatprep.mubr.bf16.mxu0 %v8036_v20  ;;  %5510 = vmatprep.mubr.bf16.mxu1 %v8036_v20  ;;  %v9926_v20 = vld [vmem:[#allocation10 + $0x64c] ss:$16 sps:$4 sm:$0xff]  }
 0x1c3   : > { %4662 = vmatpush1.bf16.msra.mxu0 %v9855_v21  ;;  %5566 = vmatpush1.bf16.msra.mxu1 %v9858_v22  ;;  %v593_v21 = vld [vmem:[%s11296_s2 + $0x110] sm:$0xff]  ;;  %v7989_v22 = vcombine.low %v577_v9, %v585_v11  ;;  %v9980_v11 = vld [vmem:[#allocation10 + $0x76c] ss:$16 sps:$4 sm:$0xff]  }
 0x1c4   : > { %4663 = vmatprep.subr.bf16.mxu0 %v9863_v23  ;;  %5567 = vmatprep.subr.bf16.mxu1 %v9866_v24  ;;  %v601_v23 = vld [vmem:[%s11296_s2 + $0x150] sm:$0xff] }
 0x1c5   : > { %v9921_v24 = vld [vmem:[#allocation10 + $0x640] ss:$16 sps:$4 sm:$0xff]   ;;  %v8006_v28 = vcombine.high %v593_v21, %v601_v23 }
 0x1c6   : > { %4607 = vmatmul.mubr.bf16.gmra.mrb[16].mxu0 %v8035_v27  ;;  %5511 = vmatmul.mubr.bf16.gmra.mrb[16].mxu1 %v8035_v27  ;;  %v9932_v27 = vld [vmem:[#allocation10 + $0x66c] ss:$16 sps:$4 sm:$0xff]   ;;  %v665_v9 = vld [vmem:[%s11296_s2 + $0x350] sm:$0xff] }
 0x1c7   : > { %4664 = vmatpush1.bf16.msra.mxu0 %v9861_v25  ;;  %5568 = vmatpush1.bf16.msra.mxu1 %v9864_v26  ;;  %v9924_v25 = vld [vmem:[#allocation10 + $0x648] ss:$16 sps:$4 sm:$0xff]   ;;  %v9929_v26 = vld [vmem:[#allocation10 + $0x664] ss:$16 sps:$4 sm:$0xff]  }
 0x1c8   : > { %4665 = vmatprep.subr.bf16.mxu0 %v9869_v30  ;;  %5569 = vmatprep.subr.bf16.mxu1 %v9872_v31  ;;  %v9930_v30 = vld [vmem:[#allocation10 + $0x668] ss:$16 sps:$4 sm:$0xff]   ;;  %v9935_v31 = vld [vmem:[#allocation10 + $0x684] ss:$16 sps:$4 sm:$0xff]  }
 0x1c9   : > { %4616 = vmatprep.mubr.bf16.mxu0 %v8052_v32  ;;  %5520 = vmatprep.mubr.bf16.mxu1 %v8052_v32  ;;  %v9938_v32 = vld [vmem:[#allocation10 + $0x68c] ss:$16 sps:$4 sm:$0xff]  }
 0x1cb   : > { %4666 = vmatpush1.bf16.msra.mxu0 %v9867_v33  ;;  %5570 = vmatpush1.bf16.msra.mxu1 %v9870_v34  ;;  %v9933_v33 = vld [vmem:[#allocation10 + $0x680] ss:$16 sps:$4 sm:$0xff]   ;;  %v9936_v34 = vld [vmem:[#allocation10 + $0x688] ss:$16 sps:$4 sm:$0xff]  }
 0x1cc   : > { %4667 = vmatprep.subr.bf16.mxu0 %v9875_v35  ;;  %5571 = vmatprep.subr.bf16.mxu1 %v9878_v36  ;;  %v8005_v35 = vcombine.low %v593_v21, %v601_v23  ;;  %v609_v36 = vld [vmem:[%s11296_s2 + $0x190] sm:$0xff]  ;;  %v9984_v21 = vld [vmem:[#allocation10 + $0x788] ss:$16 sps:$4 sm:$0xff]   ;;  %v9992_v23 = vld [vmem:[#allocation10 + $0x7ac] ss:$16 sps:$4 sm:$0xff]  }
 0x1ce   : > { %4617 = vmatmul.mubr.bf16.gmra.mrb[20].mxu0 %v8051_v38  ;;  %5521 = vmatmul.mubr.bf16.gmra.mrb[20].mxu1 %v8051_v38  ;;  %v9941_v38 = vld [vmem:[#allocation10 + $0x6a4] ss:$16 sps:$4 sm:$0xff]  }
 0x1cf   : > { %4668 = vmatpush1.bf16.msra.mxu0 %v9873_v40  ;;  %5572 = vmatpush1.bf16.msra.mxu1 %v9876_v41  ;;  %v8022_v40 = vcombine.high %v609_v36, %v617_v37  ;;  %v9939_v41 = vld [vmem:[#allocation10 + $0x6a0] ss:$16 sps:$4 sm:$0xff]  }
 0x1d0   : > { %4669 = vmatprep.subr.bf16.mxu0 %v9881_v42  ;;  %5573 = vmatprep.subr.bf16.mxu1 %v9884_v43  ;;  %v9942_v42 = vld [vmem:[#allocation10 + $0x6a8] ss:$16 sps:$4 sm:$0xff]   ;;  %v9947_v43 = vld [vmem:[#allocation10 + $0x6c4] ss:$16 sps:$4 sm:$0xff]  }
 0x1d1   : > { %4626 = vmatprep.mubr.bf16.mxu0 %v8068_v44  ;;  %5530 = vmatprep.mubr.bf16.mxu1 %v8068_v44  ;;  %v9950_v44 = vld [vmem:[#allocation10 + $0x6cc] ss:$16 sps:$4 sm:$0xff]  }
 0x1d3   : > { %4670 = vmatpush1.bf16.msra.mxu0 %v9879_v45  ;;  %5574 = vmatpush1.bf16.msra.mxu1 %v9882_v46  ;;  %v625_v45 = vld [vmem:[%s11296_s2 + $0x210] sm:$0xff]  ;;  %v8021_v46 = vcombine.low %v609_v36, %v617_v37 }
 0x1d4   : > { %4671 = vmatprep.subr.bf16.mxu0 %v9887_v47  ;;  %5575 = vmatprep.subr.bf16.mxu1 %v9890_v48  ;;  %v633_v47 = vld [vmem:[%s11296_s2 + $0x250] sm:$0xff] }
 0x1d5   : > { %v9945_v48 = vld [vmem:[#allocation10 + $0x6c0] ss:$16 sps:$4 sm:$0xff]  }
 0x1d6   : > { %4627 = vmatmul.mubr.bf16.gmra.mrb[24].mxu0 %v8067_v50  ;;  %5531 = vmatmul.mubr.bf16.gmra.mrb[24].mxu1 %v8067_v50  ;;  %v9953_v50 = vld [vmem:[#allocation10 + $0x6e4] ss:$16 sps:$4 sm:$0xff]   ;;  %v9999_v37 = vld [vmem:[#allocation10 + $0x7e0] ss:$16 sps:$4 sm:$0xff]  }
 0x1d7   : > { %4672 = vmatpush1.bf16.msra.mxu0 %v9885_v52  ;;  %5576 = vmatpush1.bf16.msra.mxu1 %v9888_v53  ;;  %v8038_v52 = vcombine.high %v625_v45, %v633_v47  ;;  %v9951_v53 = vld [vmem:[#allocation10 + $0x6e0] ss:$16 sps:$4 sm:$0xff]  }
 0x1d8   : > { %4673 = vmatprep.subr.bf16.mxu0 %v9893_v54  ;;  %5577 = vmatprep.subr.bf16.mxu1 %v9896_v55  ;;  %v9954_v54 = vld [vmem:[#allocation10 + $0x6e8] ss:$16 sps:$4 sm:$0xff]   ;;  %v9959_v55 = vld [vmem:[#allocation10 + $0x704] ss:$16 sps:$4 sm:$0xff]  }
 0x1d9   : > { %4636 = vmatprep.mubr.bf16.mxu0 %v8084_v56  ;;  %5540 = vmatprep.mubr.bf16.mxu1 %v8084_v56  ;;  %v9962_v56 = vld [vmem:[#allocation10 + $0x70c] ss:$16 sps:$4 sm:$0xff]  }
 0x1db   : > { %4674 = vmatpush1.bf16.msra.mxu0 %v9891_v57  ;;  %5578 = vmatpush1.bf16.msra.mxu1 %v9894_v58  ;;  %v641_v57 = vld [vmem:[%s11296_s2 + $0x290] sm:$0xff]  ;;  %v8037_v58 = vcombine.low %v625_v45, %v633_v47  ;;  %v586_v45 = vld [vmem:[%s11296_s2 + $0xd8] sm:$0xff] }
 0x1dc   : > { %4675 = vmatprep.subr.bf16.mxu0 %v9899_v59  ;;  %5579 = vmatprep.subr.bf16.mxu1 %v9902_v60  ;;  %v649_v59 = vld [vmem:[%s11296_s2 + $0x2d0] sm:$0xff]  ;;  %v10016_v47 = vld [vmem:[#allocation10 + $0x82c] ss:$16 sps:$4 sm:$0xff]  }
 0x1dd   : > { %v9957_v60 = vld [vmem:[#allocation10 + $0x700] ss:$16 sps:$4 sm:$0xff]   ;;  %v8054_v0 = vcombine.high %v641_v57, %v649_v59 }
 0x1de   : > { %4637 = vmatmul.mubr.bf16.gmra.mrb[28].mxu0 %v8083_v63  ;;  %5541 = vmatmul.mubr.bf16.gmra.mrb[28].mxu1 %v8083_v63  ;;  %v9968_v63 = vld [vmem:[#allocation10 + $0x72c] ss:$16 sps:$4 sm:$0xff]  }
 0x1df   : > { %4676 = vmatpush1.bf16.msra.mxu0 %v9897_v61  ;;  %5580 = vmatpush1.bf16.msra.mxu1 %v9900_v62  ;;  %v9960_v61 = vld [vmem:[#allocation10 + $0x708] ss:$16 sps:$4 sm:$0xff]   ;;  %v9965_v62 = vld [vmem:[#allocation10 + $0x724] ss:$16 sps:$4 sm:$0xff]  }
 0x1e0   : > { %4677 = vmatprep.subr.bf16.mxu0 %v9905_v2  ;;  %5581 = vmatprep.subr.bf16.mxu1 %v9908_v3  ;;  %v9966_v2 = vld [vmem:[#allocation10 + $0x728] ss:$16 sps:$4 sm:$0xff]   ;;  %v9971_v3 = vld [vmem:[#allocation10 + $0x744] ss:$16 sps:$4 sm:$0xff]  }
 0x1e1   : > { %4679 = vmatprep.mubr.bf16.mxu0 %v7974_v4  ;;  %5583 = vmatprep.mubr.bf16.mxu1 %v7974_v4  ;;  %v9974_v4 = vld [vmem:[#allocation10 + $0x74c] ss:$16 sps:$4 sm:$0xff]  }
 0x1e3   : > { %4678 = vmatpush1.bf16.msra.mxu0 %v9903_v5  ;;  %5582 = vmatpush1.bf16.msra.mxu1 %v9906_v6  ;;  %v9969_v5 = vld [vmem:[#allocation10 + $0x740] ss:$16 sps:$4 sm:$0xff]   ;;  %v9972_v6 = vld [vmem:[#allocation10 + $0x748] ss:$16 sps:$4 sm:$0xff]  }
 0x1e4   : > { %4760 = vmatprep.subr.bf16.mxu0 %v9911_v7  ;;  %5664 = vmatprep.subr.bf16.mxu1 %v9914_v8  ;;  %v8053_v7 = vcombine.low %v641_v57, %v649_v59  ;;  %v657_v8 = vld [vmem:[%s11296_s2 + $0x310] sm:$0xff]  ;;  %v10020_v57 = vld [vmem:[#allocation10 + $0x848] ss:$16 sps:$4 sm:$0xff]   ;;  %v10028_v59 = vld [vmem:[#allocation10 + $0x86c] ss:$16 sps:$4 sm:$0xff]  }
 0x1e6   : > { %4680 = vmatmul.mubr.bf16.vlgmr.msra.gmra.mrb[0].mxu0 %v7973_v10  ;;  %5584 = vmatmul.mubr.bf16.vlgmr.msra.gmra.mrb[0].mxu1 %v7973_v10  ;;  %v9977_v10 = vld [vmem:[#allocation10 + $0x764] ss:$16 sps:$4 sm:$0xff]  }
 0x1e7   : > { %4761 = vmatpush1.bf16.msra.mxu0 %v9909_v12  ;;  %5665 = vmatpush1.bf16.msra.mxu1 %v9912_v13  ;;  %v8070_v12 = vcombine.high %v657_v8, %v665_v9  ;;  %v9975_v13 = vld [vmem:[#allocation10 + $0x760] ss:$16 sps:$4 sm:$0xff]  }
 0x1e8   : > { %4762 = vmatprep.subr.bf16.mxu0 %v9917_v14  ;;  %5666 = vmatprep.subr.bf16.mxu1 %v9920_v15  ;;  %v9978_v14 = vld [vmem:[#allocation10 + $0x768] ss:$16 sps:$4 sm:$0xff]   ;;  %v9983_v15 = vld [vmem:[#allocation10 + $0x784] ss:$16 sps:$4 sm:$0xff]  }
 0x1e9   : > { %4689 = vmatprep.mubr.bf16.mxu0 %v7990_v16  ;;  %5593 = vmatprep.mubr.bf16.mxu1 %v7990_v16  ;;  %v9986_v16 = vld [vmem:[#allocation10 + $0x78c] ss:$16 sps:$4 sm:$0xff]  }
 0x1eb   : > { %4763 = vmatpush1.bf16.msra.mxu0 %v9915_v17  ;;  %5667 = vmatpush1.bf16.msra.mxu1 %v9918_v18  ;;  %v673_v17 = vld [vmem:[%s11296_s2 + $0x390] sm:$0xff]  ;;  %v8069_v18 = vcombine.low %v657_v8, %v665_v9 }
 0x1ec   : > { %4764 = vmatprep.subr.bf16.mxu0 %v9923_v19  ;;  %5668 = vmatprep.subr.bf16.mxu1 %v9926_v20  ;;  %v681_v19 = vld [vmem:[%s11296_s2 + $0x3d0] sm:$0xff] }
 0x1ed   : > { %v9981_v20 = vld [vmem:[#allocation10 + $0x780] ss:$16 sps:$4 sm:$0xff]  }
 0x1ee   : > { %4690 = vmatmul.mubr.bf16.gmra.mrb[4].mxu0 %v7989_v22  ;;  %5594 = vmatmul.mubr.bf16.gmra.mrb[4].mxu1 %v7989_v22  ;;  %v9989_v22 = vld [vmem:[#allocation10 + $0x7a4] ss:$16 sps:$4 sm:$0xff]   ;;  %v10035_v9 = vld [vmem:[#allocation10 + $0x8a0] ss:$16 sps:$4 sm:$0xff]  }
 0x1ef   : > { %4765 = vmatpush1.bf16.msra.mxu0 %v9921_v24  ;;  %5669 = vmatpush1.bf16.msra.mxu1 %v9924_v25  ;;  %v8086_v24 = vcombine.high %v673_v17, %v681_v19  ;;  %v9987_v25 = vld [vmem:[#allocation10 + $0x7a0] ss:$16 sps:$4 sm:$0xff]  }
 0x1f0   : > { %4766 = vmatprep.subr.bf16.mxu0 %v9929_v26  ;;  %5670 = vmatprep.subr.bf16.mxu1 %v9932_v27  ;;  %v9990_v26 = vld [vmem:[#allocation10 + $0x7a8] ss:$16 sps:$4 sm:$0xff]   ;;  %v9995_v27 = vld [vmem:[#allocation10 + $0x7c4] ss:$16 sps:$4 sm:$0xff]  }
 0x1f1   : > { %4699 = vmatprep.mubr.bf16.mxu0 %v8006_v28  ;;  %5603 = vmatprep.mubr.bf16.mxu1 %v8006_v28  ;;  %v9998_v28 = vld [vmem:[#allocation10 + $0x7cc] ss:$16 sps:$4 sm:$0xff]  }
 0x1f3   : > { %4767 = vmatpush1.bf16.msra.mxu0 %v9927_v29  ;;  %5671 = vmatpush1.bf16.msra.mxu1 %v9930_v30  ;;  %v562_v29 = vld [vmem:[%s11296_s2 + $0x18] sm:$0xff]  ;;  %v8085_v30 = vcombine.low %v673_v17, %v681_v19 }
 0x1f4   : > { %4768 = vmatprep.subr.bf16.mxu0 %v9935_v31  ;;  %5672 = vmatprep.subr.bf16.mxu1 %v9938_v32  ;;  %v570_v31 = vld [vmem:[%s11296_s2 + $0x58] sm:$0xff]  ;;  %v9993_v32 = vld [vmem:[#allocation10 + $0x7c0] ss:$16 sps:$4 sm:$0xff]  }
 0x1f5   : > { %v7976_v36 = vcombine.high %v562_v29, %v570_v31  ;;  %v634_v17 = vld [vmem:[%s11296_s2 + $0x258] sm:$0xff] }
 0x1f6   : > { %4700 = vmatmul.mubr.bf16.gmra.mrb[8].mxu0 %v8005_v35  ;;  %5604 = vmatmul.mubr.bf16.gmra.mrb[8].mxu1 %v8005_v35  ;;  %v10004_v35 = vld [vmem:[#allocation10 + $0x7ec] ss:$16 sps:$4 sm:$0xff]  }
 0x1f7   : > { %4769 = vmatpush1.bf16.msra.mxu0 %v9933_v33  ;;  %5673 = vmatpush1.bf16.msra.mxu1 %v9936_v34  ;;  %v9996_v33 = vld [vmem:[#allocation10 + $0x7c8] ss:$16 sps:$4 sm:$0xff]   ;;  %v10001_v34 = vld [vmem:[#allocation10 + $0x7e4] ss:$16 sps:$4 sm:$0xff]   ;;  %v10052_v19 = vld [vmem:[#allocation10 + $0x8ec] ss:$16 sps:$4 sm:$0xff]  }
 0x1f8   : > { %4770 = vmatprep.subr.bf16.mxu0 %v9941_v38  ;;  %5674 = vmatprep.subr.bf16.mxu1 %v9944_v39  ;;  %v10002_v38 = vld [vmem:[#allocation10 + $0x7e8] ss:$16 sps:$4 sm:$0xff]   ;;  %v10007_v39 = vld [vmem:[#allocation10 + $0x804] ss:$16 sps:$4 sm:$0xff]  }
 0x1f9   : > { %4709 = vmatprep.mubr.bf16.mxu0 %v8022_v40  ;;  %5613 = vmatprep.mubr.bf16.mxu1 %v8022_v40  ;;  %v10010_v40 = vld [vmem:[#allocation10 + $0x80c] ss:$16 sps:$4 sm:$0xff]  }
 0x1fb   : > { %4771 = vmatpush1.bf16.msra.mxu0 %v9939_v41  ;;  %5675 = vmatpush1.bf16.msra.mxu1 %v9942_v42  ;;  %v10005_v41 = vld [vmem:[#allocation10 + $0x800] ss:$16 sps:$4 sm:$0xff]   ;;  %v10008_v42 = vld [vmem:[#allocation10 + $0x808] ss:$16 sps:$4 sm:$0xff]  }
 0x1fc   : > { %4772 = vmatprep.subr.bf16.mxu0 %v9947_v43  ;;  %5676 = vmatprep.subr.bf16.mxu1 %v9950_v44  ;;  %v7975_v43 = vcombine.low %v562_v29, %v570_v31  ;;  %v578_v44 = vld [vmem:[%s11296_s2 + $0x98] sm:$0xff] }
 0x1fd   : > { %v10056_v29 = vld [vmem:[#allocation10 + $0x908] ss:$16 sps:$4 sm:$0xff]   ;;  %v10064_v31 = vld [vmem:[#allocation10 + $0x92c] ss:$16 sps:$4 sm:$0xff]  }
 0x1fe   : > { %4710 = vmatmul.mubr.bf16.gmra.mrb[12].mxu0 %v8021_v46  ;;  %5614 = vmatmul.mubr.bf16.gmra.mrb[12].mxu1 %v8021_v46  ;;  %v10013_v46 = vld [vmem:[#allocation10 + $0x824] ss:$16 sps:$4 sm:$0xff]  }
 0x1ff   : > { %4773 = vmatpush1.bf16.msra.mxu0 %v9945_v48  ;;  %5677 = vmatpush1.bf16.msra.mxu1 %v9948_v49  ;;  %v7992_v48 = vcombine.high %v578_v44, %v586_v45  ;;  %v10011_v49 = vld [vmem:[#allocation10 + $0x820] ss:$16 sps:$4 sm:$0xff]  }
 0x200   : > { %4774 = vmatprep.subr.bf16.mxu0 %v9953_v50  ;;  %5678 = vmatprep.subr.bf16.mxu1 %v9956_v51  ;;  %v10014_v50 = vld [vmem:[#allocation10 + $0x828] ss:$16 sps:$4 sm:$0xff]   ;;  %v10019_v51 = vld [vmem:[#allocation10 + $0x844] ss:$16 sps:$4 sm:$0xff]  }
 0x201   : > { %4719 = vmatprep.mubr.bf16.mxu0 %v8038_v52  ;;  %5623 = vmatprep.mubr.bf16.mxu1 %v8038_v52  ;;  %v10022_v52 = vld [vmem:[#allocation10 + $0x84c] ss:$16 sps:$4 sm:$0xff]  }
 0x203   : > { %4775 = vmatpush1.bf16.msra.mxu0 %v9951_v53  ;;  %5679 = vmatpush1.bf16.msra.mxu1 %v9954_v54  ;;  %v594_v53 = vld [vmem:[%s11296_s2 + $0x118] sm:$0xff]  ;;  %v7991_v54 = vcombine.low %v578_v44, %v586_v45  ;;  %v10071_v45 = vld [vmem:[#allocation10 + $0x960] ss:$16 sps:$4 sm:$0xff]  }
 0x204   : > { %4776 = vmatprep.subr.bf16.mxu0 %v9959_v55  ;;  %5680 = vmatprep.subr.bf16.mxu1 %v9962_v56  ;;  %v602_v55 = vld [vmem:[%s11296_s2 + $0x158] sm:$0xff]  ;;  %v10017_v56 = vld [vmem:[#allocation10 + $0x840] ss:$16 sps:$4 sm:$0xff]  }
 0x206   : > { %4720 = vmatmul.mubr.bf16.gmra.mrb[16].mxu0 %v8037_v58  ;;  %5624 = vmatmul.mubr.bf16.gmra.mrb[16].mxu1 %v8037_v58  ;;  %v10025_v58 = vld [vmem:[#allocation10 + $0x864] ss:$16 sps:$4 sm:$0xff]  }
 0x207   : > { %4777 = vmatpush1.bf16.msra.mxu0 %v9957_v60  ;;  %5681 = vmatpush1.bf16.msra.mxu1 %v9960_v61  ;;  %v8008_v60 = vcombine.high %v594_v53, %v602_v55  ;;  %v10023_v61 = vld [vmem:[#allocation10 + $0x860] ss:$16 sps:$4 sm:$0xff]  }
 0x208   : > { %4778 = vmatprep.subr.bf16.mxu0 %v9965_v62  ;;  %5682 = vmatprep.subr.bf16.mxu1 %v9968_v63  ;;  %v10026_v62 = vld [vmem:[#allocation10 + $0x868] ss:$16 sps:$4 sm:$0xff]   ;;  %v10031_v63 = vld [vmem:[#allocation10 + $0x884] ss:$16 sps:$4 sm:$0xff]  }
 0x209   : > { %4729 = vmatprep.mubr.bf16.mxu0 %v8054_v0  ;;  %5633 = vmatprep.mubr.bf16.mxu1 %v8054_v0  ;;  %v10034_v0 = vld [vmem:[#allocation10 + $0x88c] ss:$16 sps:$4 sm:$0xff]  }
 0x20b   : > { %4779 = vmatpush1.bf16.msra.mxu0 %v9963_v1  ;;  %5683 = vmatpush1.bf16.msra.mxu1 %v9966_v2  ;;  %v610_v1 = vld [vmem:[%s11296_s2 + $0x198] sm:$0xff]  ;;  %v8007_v2 = vcombine.low %v594_v53, %v602_v55 }
 0x20c   : > { %4780 = vmatprep.subr.bf16.mxu0 %v9971_v3  ;;  %5684 = vmatprep.subr.bf16.mxu1 %v9974_v4  ;;  %v618_v3 = vld [vmem:[%s11296_s2 + $0x1d8] sm:$0xff]  ;;  %v10029_v4 = vld [vmem:[#allocation10 + $0x880] ss:$16 sps:$4 sm:$0xff]  }
 0x20d   : > { %v8024_v8 = vcombine.high %v610_v1, %v618_v3  ;;  %v682_v53 = vld [vmem:[%s11296_s2 + $0x3d8] sm:$0xff] }
 0x20e   : > { %4730 = vmatmul.mubr.bf16.gmra.mrb[20].mxu0 %v8053_v7  ;;  %5634 = vmatmul.mubr.bf16.gmra.mrb[20].mxu1 %v8053_v7  ;;  %v10040_v7 = vld [vmem:[#allocation10 + $0x8ac] ss:$16 sps:$4 sm:$0xff]  }
 0x20f   : > { %4781 = vmatpush1.bf16.msra.mxu0 %v9969_v5  ;;  %5685 = vmatpush1.bf16.msra.mxu1 %v9972_v6  ;;  %v10032_v5 = vld [vmem:[#allocation10 + $0x888] ss:$16 sps:$4 sm:$0xff]   ;;  %v10037_v6 = vld [vmem:[#allocation10 + $0x8a4] ss:$16 sps:$4 sm:$0xff]   ;;  %v10088_v55 = vld [vmem:[#allocation10 + $0x9ac] ss:$16 sps:$4 sm:$0xff]  }
 0x210   : > { %4782 = vmatprep.subr.bf16.mxu0 %v9977_v10  ;;  %5686 = vmatprep.subr.bf16.mxu1 %v9980_v11  ;;  %v10038_v10 = vld [vmem:[#allocation10 + $0x8a8] ss:$16 sps:$4 sm:$0xff]   ;;  %v10043_v11 = vld [vmem:[#allocation10 + $0x8c4] ss:$16 sps:$4 sm:$0xff]  }
 0x211   : > { %4739 = vmatprep.mubr.bf16.mxu0 %v8070_v12  ;;  %5643 = vmatprep.mubr.bf16.mxu1 %v8070_v12  ;;  %v10046_v12 = vld [vmem:[#allocation10 + $0x8cc] ss:$16 sps:$4 sm:$0xff]  }
 0x213   : > { %4783 = vmatpush1.bf16.msra.mxu0 %v9975_v13  ;;  %5687 = vmatpush1.bf16.msra.mxu1 %v9978_v14  ;;  %v10041_v13 = vld [vmem:[#allocation10 + $0x8c0] ss:$16 sps:$4 sm:$0xff]   ;;  %v10044_v14 = vld [vmem:[#allocation10 + $0x8c8] ss:$16 sps:$4 sm:$0xff]  }
 0x214   : > { %4784 = vmatprep.subr.bf16.mxu0 %v9983_v15  ;;  %5688 = vmatprep.subr.bf16.mxu1 %v9986_v16  ;;  %v8023_v15 = vcombine.low %v610_v1, %v618_v3  ;;  %v626_v16 = vld [vmem:[%s11296_s2 + $0x218] sm:$0xff] }
 0x215   : > { %v10092_v1 = vld [vmem:[#allocation10 + $0x9c8] ss:$16 sps:$4 sm:$0xff]   ;;  %v10100_v3 = vld [vmem:[#allocation10 + $0x9ec] ss:$16 sps:$4 sm:$0xff]  }
 0x216   : > { %4740 = vmatmul.mubr.bf16.gmra.mrb[24].mxu0 %v8069_v18  ;;  %5644 = vmatmul.mubr.bf16.gmra.mrb[24].mxu1 %v8069_v18  ;;  %v10049_v18 = vld [vmem:[#allocation10 + $0x8e4] ss:$16 sps:$4 sm:$0xff]  }
 0x217   : > { %4785 = vmatpush1.bf16.msra.mxu0 %v9981_v20  ;;  %5689 = vmatpush1.bf16.msra.mxu1 %v9984_v21  ;;  %v8040_v20 = vcombine.high %v626_v16, %v634_v17  ;;  %v10047_v21 = vld [vmem:[#allocation10 + $0x8e0] ss:$16 sps:$4 sm:$0xff]  }
 0x218   : > { %4786 = vmatprep.subr.bf16.mxu0 %v9989_v22  ;;  %5690 = vmatprep.subr.bf16.mxu1 %v9992_v23  ;;  %v10050_v22 = vld [vmem:[#allocation10 + $0x8e8] ss:$16 sps:$4 sm:$0xff]   ;;  %v10055_v23 = vld [vmem:[#allocation10 + $0x904] ss:$16 sps:$4 sm:$0xff]  }
 0x219   : > { %4749 = vmatprep.mubr.bf16.mxu0 %v8086_v24  ;;  %5653 = vmatprep.mubr.bf16.mxu1 %v8086_v24  ;;  %v10058_v24 = vld [vmem:[#allocation10 + $0x90c] ss:$16 sps:$4 sm:$0xff]  }
 0x21b   : > { %4787 = vmatpush1.bf16.msra.mxu0 %v9987_v25  ;;  %5691 = vmatpush1.bf16.msra.mxu1 %v9990_v26  ;;  %v642_v25 = vld [vmem:[%s11296_s2 + $0x298] sm:$0xff]  ;;  %v8039_v26 = vcombine.low %v626_v16, %v634_v17  ;;  %v10107_v17 = vld [vmem:[#allocation10 + $0xa20] ss:$16 sps:$4 sm:$0xff]  }
 0x21c   : > { %4788 = vmatprep.subr.bf16.mxu0 %v9995_v27  ;;  %5692 = vmatprep.subr.bf16.mxu1 %v9998_v28  ;;  %v650_v27 = vld [vmem:[%s11296_s2 + $0x2d8] sm:$0xff]  ;;  %v10053_v28 = vld [vmem:[#allocation10 + $0x900] ss:$16 sps:$4 sm:$0xff]  }
 0x21e   : > { %4750 = vmatmul.mubr.bf16.gmra.mrb[28].mxu0 %v8085_v30  ;;  %5654 = vmatmul.mubr.bf16.gmra.mrb[28].mxu1 %v8085_v30  ;;  %v10061_v30 = vld [vmem:[#allocation10 + $0x924] ss:$16 sps:$4 sm:$0xff]  }
 0x21f   : > { %4789 = vmatpush1.bf16.msra.mxu0 %v9993_v32  ;;  %5693 = vmatpush1.bf16.msra.mxu1 %v9996_v33  ;;  %v8056_v32 = vcombine.high %v642_v25, %v650_v27  ;;  %v10059_v33 = vld [vmem:[#allocation10 + $0x920] ss:$16 sps:$4 sm:$0xff]  }
 0x220   : > { %4790 = vmatprep.subr.bf16.mxu0 %v10001_v34  ;;  %5694 = vmatprep.subr.bf16.mxu1 %v10004_v35  ;;  %v10062_v34 = vld [vmem:[#allocation10 + $0x928] ss:$16 sps:$4 sm:$0xff]   ;;  %v10067_v35 = vld [vmem:[#allocation10 + $0x944] ss:$16 sps:$4 sm:$0xff]  }
 0x221   : > { %4792 = vmatprep.mubr.bf16.mxu0 %v7976_v36  ;;  %5696 = vmatprep.mubr.bf16.mxu1 %v7976_v36  ;;  %v10070_v36 = vld [vmem:[#allocation10 + $0x94c] ss:$16 sps:$4 sm:$0xff]  }
 0x223   : > { %4791 = vmatpush1.bf16.msra.mxu0 %v9999_v37  ;;  %5695 = vmatpush1.bf16.msra.mxu1 %v10002_v38  ;;  %v658_v37 = vld [vmem:[%s11296_s2 + $0x318] sm:$0xff]  ;;  %v8055_v38 = vcombine.low %v642_v25, %v650_v27  ;;  %v603_v25 = vld [vmem:[%s11296_s2 + $0x160] sm:$0xff] }
 0x224   : > { %4873 = vmatprep.subr.bf16.mxu0 %v10007_v39  ;;  %5777 = vmatprep.subr.bf16.mxu1 %v10010_v40  ;;  %v666_v39 = vld [vmem:[%s11296_s2 + $0x358] sm:$0xff]  ;;  %v10065_v40 = vld [vmem:[#allocation10 + $0x940] ss:$16 sps:$4 sm:$0xff]  }
 0x225   : > { %v8072_v44 = vcombine.high %v658_v37, %v666_v39  ;;  %v10124_v27 = vld [vmem:[#allocation10 + $0xa6c] ss:$16 sps:$4 sm:$0xff]  }
 0x226   : > { %4793 = vmatmul.mubr.bf16.vlgmr.msra.gmra.mrb[0].mxu0 %v7975_v43  ;;  %5697 = vmatmul.mubr.bf16.vlgmr.msra.gmra.mrb[0].mxu1 %v7975_v43  ;;  %v10076_v43 = vld [vmem:[#allocation10 + $0x96c] ss:$16 sps:$4 sm:$0xff]  }
 0x227   : > { %4874 = vmatpush1.bf16.msra.mxu0 %v10005_v41  ;;  %5778 = vmatpush1.bf16.msra.mxu1 %v10008_v42  ;;  %v10068_v41 = vld [vmem:[#allocation10 + $0x948] ss:$16 sps:$4 sm:$0xff]   ;;  %v10073_v42 = vld [vmem:[#allocation10 + $0x964] ss:$16 sps:$4 sm:$0xff]  }
 0x228   : > { %4875 = vmatprep.subr.bf16.mxu0 %v10013_v46  ;;  %5779 = vmatprep.subr.bf16.mxu1 %v10016_v47  ;;  %v10074_v46 = vld [vmem:[#allocation10 + $0x968] ss:$16 sps:$4 sm:$0xff]   ;;  %v10079_v47 = vld [vmem:[#allocation10 + $0x984] ss:$16 sps:$4 sm:$0xff]  }
 0x229   : > { %4802 = vmatprep.mubr.bf16.mxu0 %v7992_v48  ;;  %5706 = vmatprep.mubr.bf16.mxu1 %v7992_v48  ;;  %v10082_v48 = vld [vmem:[#allocation10 + $0x98c] ss:$16 sps:$4 sm:$0xff]  }
 0x22b   : > { %4876 = vmatpush1.bf16.msra.mxu0 %v10011_v49  ;;  %5780 = vmatpush1.bf16.msra.mxu1 %v10014_v50  ;;  %v10077_v49 = vld [vmem:[#allocation10 + $0x980] ss:$16 sps:$4 sm:$0xff]   ;;  %v10080_v50 = vld [vmem:[#allocation10 + $0x988] ss:$16 sps:$4 sm:$0xff]  }
 0x22c   : > { %4877 = vmatprep.subr.bf16.mxu0 %v10019_v51  ;;  %5781 = vmatprep.subr.bf16.mxu1 %v10022_v52  ;;  %v8071_v51 = vcombine.low %v658_v37, %v666_v39  ;;  %v674_v52 = vld [vmem:[%s11296_s2 + $0x398] sm:$0xff] }
 0x22d   : > { %v10128_v37 = vld [vmem:[#allocation10 + $0xa88] ss:$16 sps:$4 sm:$0xff]   ;;  %v10136_v39 = vld [vmem:[#allocation10 + $0xaac] ss:$16 sps:$4 sm:$0xff]  }
 0x22e   : > { %4803 = vmatmul.mubr.bf16.gmra.mrb[4].mxu0 %v7991_v54  ;;  %5707 = vmatmul.mubr.bf16.gmra.mrb[4].mxu1 %v7991_v54  ;;  %v10085_v54 = vld [vmem:[#allocation10 + $0x9a4] ss:$16 sps:$4 sm:$0xff]  }
 0x22f   : > { %4878 = vmatpush1.bf16.msra.mxu0 %v10017_v56  ;;  %5782 = vmatpush1.bf16.msra.mxu1 %v10020_v57  ;;  %v8088_v56 = vcombine.high %v674_v52, %v682_v53  ;;  %v10083_v57 = vld [vmem:[#allocation10 + $0x9a0] ss:$16 sps:$4 sm:$0xff]  }
 0x230   : > { %4879 = vmatprep.subr.bf16.mxu0 %v10025_v58  ;;  %5783 = vmatprep.subr.bf16.mxu1 %v10028_v59  ;;  %v10086_v58 = vld [vmem:[#allocation10 + $0x9a8] ss:$16 sps:$4 sm:$0xff]   ;;  %v10091_v59 = vld [vmem:[#allocation10 + $0x9c4] ss:$16 sps:$4 sm:$0xff]  }
 0x231   : > { %4812 = vmatprep.mubr.bf16.mxu0 %v8008_v60  ;;  %5716 = vmatprep.mubr.bf16.mxu1 %v8008_v60  ;;  %v10094_v60 = vld [vmem:[#allocation10 + $0x9cc] ss:$16 sps:$4 sm:$0xff]  }
 0x233   : > { %4880 = vmatpush1.bf16.msra.mxu0 %v10023_v61  ;;  %5784 = vmatpush1.bf16.msra.mxu1 %v10026_v62  ;;  %v563_v61 = vld [vmem:[%s11296_s2 + $0x20] sm:$0xff]  ;;  %v8087_v62 = vcombine.low %v674_v52, %v682_v53 }
 0x234   : > { %4881 = vmatprep.subr.bf16.mxu0 %v10031_v63  ;;  %5785 = vmatprep.subr.bf16.mxu1 %v10034_v0  ;;  %v571_v63 = vld [vmem:[%s11296_s2 + $0x60] sm:$0xff] }
 0x235   : > { %v10089_v0 = vld [vmem:[#allocation10 + $0x9c0] ss:$16 sps:$4 sm:$0xff]  }
 0x236   : > { %4813 = vmatmul.mubr.bf16.gmra.mrb[8].mxu0 %v8007_v2  ;;  %5717 = vmatmul.mubr.bf16.gmra.mrb[8].mxu1 %v8007_v2  ;;  %v10097_v2 = vld [vmem:[#allocation10 + $0x9e4] ss:$16 sps:$4 sm:$0xff]   ;;  %v10143_v53 = vld [vmem:[#allocation10 + $0xae0] ss:$16 sps:$4 sm:$0xff]  }
 0x237   : > { %4882 = vmatpush1.bf16.msra.mxu0 %v10029_v4  ;;  %5786 = vmatpush1.bf16.msra.mxu1 %v10032_v5  ;;  %v7978_v4 = vcombine.high %v563_v61, %v571_v63  ;;  %v10095_v5 = vld [vmem:[#allocation10 + $0x9e0] ss:$16 sps:$4 sm:$0xff]  }
 0x238   : > { %4883 = vmatprep.subr.bf16.mxu0 %v10037_v6  ;;  %5787 = vmatprep.subr.bf16.mxu1 %v10040_v7  ;;  %v10098_v6 = vld [vmem:[#allocation10 + $0x9e8] ss:$16 sps:$4 sm:$0xff]   ;;  %v10103_v7 = vld [vmem:[#allocation10 + $0xa04] ss:$16 sps:$4 sm:$0xff]  }
 0x239   : > { %4822 = vmatprep.mubr.bf16.mxu0 %v8024_v8  ;;  %5726 = vmatprep.mubr.bf16.mxu1 %v8024_v8  ;;  %v10106_v8 = vld [vmem:[#allocation10 + $0xa0c] ss:$16 sps:$4 sm:$0xff]  }
 0x23b   : > { %4884 = vmatpush1.bf16.msra.mxu0 %v10035_v9  ;;  %5788 = vmatpush1.bf16.msra.mxu1 %v10038_v10  ;;  %v579_v9 = vld [vmem:[%s11296_s2 + $0xa0] sm:$0xff]  ;;  %v7977_v10 = vcombine.low %v563_v61, %v571_v63  ;;  %v10160_v63 = vld [vmem:[#allocation10 + $0xb2c] ss:$16 sps:$4 sm:$0xff]  }
 0x23c   : > { %4885 = vmatprep.subr.bf16.mxu0 %v10043_v11  ;;  %5789 = vmatprep.subr.bf16.mxu1 %v10046_v12  ;;  %v587_v11 = vld [vmem:[%s11296_s2 + $0xe0] sm:$0xff] }
 0x23d   : > { %v10101_v12 = vld [vmem:[#allocation10 + $0xa00] ss:$16 sps:$4 sm:$0xff]   ;;  %v7994_v16 = vcombine.high %v579_v9, %v587_v11 }
 0x23e   : > { %4823 = vmatmul.mubr.bf16.gmra.mrb[12].mxu0 %v8023_v15  ;;  %5727 = vmatmul.mubr.bf16.gmra.mrb[12].mxu1 %v8023_v15  ;;  %v10112_v15 = vld [vmem:[#allocation10 + $0xa2c] ss:$16 sps:$4 sm:$0xff]   ;;  %v651_v61 = vld [vmem:[%s11296_s2 + $0x2e0] sm:$0xff] }
 0x23f   : > { %4886 = vmatpush1.bf16.msra.mxu0 %v10041_v13  ;;  %5790 = vmatpush1.bf16.msra.mxu1 %v10044_v14  ;;  %v10104_v13 = vld [vmem:[#allocation10 + $0xa08] ss:$16 sps:$4 sm:$0xff]   ;;  %v10109_v14 = vld [vmem:[#allocation10 + $0xa24] ss:$16 sps:$4 sm:$0xff]  }
 0x240   : > { %4887 = vmatprep.subr.bf16.mxu0 %v10049_v18  ;;  %5791 = vmatprep.subr.bf16.mxu1 %v10052_v19  ;;  %v10110_v18 = vld [vmem:[#allocation10 + $0xa28] ss:$16 sps:$4 sm:$0xff]   ;;  %v10115_v19 = vld [vmem:[#allocation10 + $0xa44] ss:$16 sps:$4 sm:$0xff]  }
 0x241   : > { %4832 = vmatprep.mubr.bf16.mxu0 %v8040_v20  ;;  %5736 = vmatprep.mubr.bf16.mxu1 %v8040_v20  ;;  %v10118_v20 = vld [vmem:[#allocation10 + $0xa4c] ss:$16 sps:$4 sm:$0xff]  }
 0x243   : > { %4888 = vmatpush1.bf16.msra.mxu0 %v10047_v21  ;;  %5792 = vmatpush1.bf16.msra.mxu1 %v10050_v22  ;;  %v10113_v21 = vld [vmem:[#allocation10 + $0xa40] ss:$16 sps:$4 sm:$0xff]   ;;  %v10116_v22 = vld [vmem:[#allocation10 + $0xa48] ss:$16 sps:$4 sm:$0xff]  }
 0x244   : > { %4889 = vmatprep.subr.bf16.mxu0 %v10055_v23  ;;  %5793 = vmatprep.subr.bf16.mxu1 %v10058_v24  ;;  %v7993_v23 = vcombine.low %v579_v9, %v587_v11  ;;  %v595_v24 = vld [vmem:[%s11296_s2 + $0x120] sm:$0xff]  ;;  %v10164_v9 = vld [vmem:[#allocation10 + $0xb48] ss:$16 sps:$4 sm:$0xff]   ;;  %v10172_v11 = vld [vmem:[#allocation10 + $0xb6c] ss:$16 sps:$4 sm:$0xff]  }
 0x246   : > { %4833 = vmatmul.mubr.bf16.gmra.mrb[16].mxu0 %v8039_v26  ;;  %5737 = vmatmul.mubr.bf16.gmra.mrb[16].mxu1 %v8039_v26  ;;  %v10121_v26 = vld [vmem:[#allocation10 + $0xa64] ss:$16 sps:$4 sm:$0xff]  }
 0x247   : > { %4890 = vmatpush1.bf16.msra.mxu0 %v10053_v28  ;;  %5794 = vmatpush1.bf16.msra.mxu1 %v10056_v29  ;;  %v8010_v28 = vcombine.high %v595_v24, %v603_v25  ;;  %v10119_v29 = vld [vmem:[#allocation10 + $0xa60] ss:$16 sps:$4 sm:$0xff]  }
 0x248   : > { %4891 = vmatprep.subr.bf16.mxu0 %v10061_v30  ;;  %5795 = vmatprep.subr.bf16.mxu1 %v10064_v31  ;;  %v10122_v30 = vld [vmem:[#allocation10 + $0xa68] ss:$16 sps:$4 sm:$0xff]   ;;  %v10127_v31 = vld [vmem:[#allocation10 + $0xa84] ss:$16 sps:$4 sm:$0xff]  }
 0x249   : > { %4842 = vmatprep.mubr.bf16.mxu0 %v8056_v32  ;;  %5746 = vmatprep.mubr.bf16.mxu1 %v8056_v32  ;;  %v10130_v32 = vld [vmem:[#allocation10 + $0xa8c] ss:$16 sps:$4 sm:$0xff]  }
 0x24b   : > { %4892 = vmatpush1.bf16.msra.mxu0 %v10059_v33  ;;  %5796 = vmatpush1.bf16.msra.mxu1 %v10062_v34  ;;  %v611_v33 = vld [vmem:[%s11296_s2 + $0x1a0] sm:$0xff]  ;;  %v8009_v34 = vcombine.low %v595_v24, %v603_v25 }
 0x24c   : > { %4893 = vmatprep.subr.bf16.mxu0 %v10067_v35  ;;  %5797 = vmatprep.subr.bf16.mxu1 %v10070_v36  ;;  %v619_v35 = vld [vmem:[%s11296_s2 + $0x1e0] sm:$0xff] }
 0x24d   : > { %v10125_v36 = vld [vmem:[#allocation10 + $0xa80] ss:$16 sps:$4 sm:$0xff]  }
 0x24e   : > { %4843 = vmatmul.mubr.bf16.gmra.mrb[20].mxu0 %v8055_v38  ;;  %5747 = vmatmul.mubr.bf16.gmra.mrb[20].mxu1 %v8055_v38  ;;  %v10133_v38 = vld [vmem:[#allocation10 + $0xaa4] ss:$16 sps:$4 sm:$0xff]   ;;  %v10179_v25 = vld [vmem:[#allocation10 + $0xba0] ss:$16 sps:$4 sm:$0xff]  }
 0x24f   : > { %4894 = vmatpush1.bf16.msra.mxu0 %v10065_v40  ;;  %5798 = vmatpush1.bf16.msra.mxu1 %v10068_v41  ;;  %v8026_v40 = vcombine.high %v611_v33, %v619_v35  ;;  %v10131_v41 = vld [vmem:[#allocation10 + $0xaa0] ss:$16 sps:$4 sm:$0xff]  }
 0x250   : > { %4895 = vmatprep.subr.bf16.mxu0 %v10073_v42  ;;  %5799 = vmatprep.subr.bf16.mxu1 %v10076_v43  ;;  %v10134_v42 = vld [vmem:[#allocation10 + $0xaa8] ss:$16 sps:$4 sm:$0xff]   ;;  %v10139_v43 = vld [vmem:[#allocation10 + $0xac4] ss:$16 sps:$4 sm:$0xff]  }
 0x251   : > { %4852 = vmatprep.mubr.bf16.mxu0 %v8072_v44  ;;  %5756 = vmatprep.mubr.bf16.mxu1 %v8072_v44  ;;  %v10142_v44 = vld [vmem:[#allocation10 + $0xacc] ss:$16 sps:$4 sm:$0xff]  }
 0x253   : > { %4896 = vmatpush1.bf16.msra.mxu0 %v10071_v45  ;;  %5800 = vmatpush1.bf16.msra.mxu1 %v10074_v46  ;;  %v627_v45 = vld [vmem:[%s11296_s2 + $0x220] sm:$0xff]  ;;  %v8025_v46 = vcombine.low %v611_v33, %v619_v35  ;;  %v572_v33 = vld [vmem:[%s11296_s2 + $0x68] sm:$0xff] }
 0x254   : > { %4897 = vmatprep.subr.bf16.mxu0 %v10079_v47  ;;  %5801 = vmatprep.subr.bf16.mxu1 %v10082_v48  ;;  %v635_v47 = vld [vmem:[%s11296_s2 + $0x260] sm:$0xff]  ;;  %v10196_v35 = vld [vmem:[#allocation10 + $0xbec] ss:$16 sps:$4 sm:$0xff]  }
 0x255   : > { %v10137_v48 = vld [vmem:[#allocation10 + $0xac0] ss:$16 sps:$4 sm:$0xff]   ;;  %v8042_v52 = vcombine.high %v627_v45, %v635_v47 }
 0x256   : > { %4853 = vmatmul.mubr.bf16.gmra.mrb[24].mxu0 %v8071_v51  ;;  %5757 = vmatmul.mubr.bf16.gmra.mrb[24].mxu1 %v8071_v51  ;;  %v10148_v51 = vld [vmem:[#allocation10 + $0xaec] ss:$16 sps:$4 sm:$0xff]  }
 0x257   : > { %4898 = vmatpush1.bf16.msra.mxu0 %v10077_v49  ;;  %5802 = vmatpush1.bf16.msra.mxu1 %v10080_v50  ;;  %v10140_v49 = vld [vmem:[#allocation10 + $0xac8] ss:$16 sps:$4 sm:$0xff]   ;;  %v10145_v50 = vld [vmem:[#allocation10 + $0xae4] ss:$16 sps:$4 sm:$0xff]  }
 0x258   : > { %4899 = vmatprep.subr.bf16.mxu0 %v10085_v54  ;;  %5803 = vmatprep.subr.bf16.mxu1 %v10088_v55  ;;  %v10146_v54 = vld [vmem:[#allocation10 + $0xae8] ss:$16 sps:$4 sm:$0xff]   ;;  %v10151_v55 = vld [vmem:[#allocation10 + $0xb04] ss:$16 sps:$4 sm:$0xff]  }
 0x259   : > { %4862 = vmatprep.mubr.bf16.mxu0 %v8088_v56  ;;  %5766 = vmatprep.mubr.bf16.mxu1 %v8088_v56  ;;  %v10154_v56 = vld [vmem:[#allocation10 + $0xb0c] ss:$16 sps:$4 sm:$0xff]  }
 0x25b   : > { %4900 = vmatpush1.bf16.msra.mxu0 %v10083_v57  ;;  %5804 = vmatpush1.bf16.msra.mxu1 %v10086_v58  ;;  %v10149_v57 = vld [vmem:[#allocation10 + $0xb00] ss:$16 sps:$4 sm:$0xff]   ;;  %v10152_v58 = vld [vmem:[#allocation10 + $0xb08] ss:$16 sps:$4 sm:$0xff]  }
 0x25c   : > { %4901 = vmatprep.subr.bf16.mxu0 %v10091_v59  ;;  %5805 = vmatprep.subr.bf16.mxu1 %v10094_v60  ;;  %v8041_v59 = vcombine.low %v627_v45, %v635_v47  ;;  %v643_v60 = vld [vmem:[%s11296_s2 + $0x2a0] sm:$0xff]  ;;  %v10208_v45 = vld [vmem:[#allocation10 + $0xc2c] ss:$16 sps:$4 sm:$0xff]  }
 0x25d   : > { %v588_v47 = vld [vmem:[%s11296_s2 + $0xe8] sm:$0xff] }
 0x25e   : > { %4863 = vmatmul.mubr.bf16.gmra.mrb[28].mxu0 %v8087_v62  ;;  %5767 = vmatmul.mubr.bf16.gmra.mrb[28].mxu1 %v8087_v62  ;;  %v10157_v62 = vld [vmem:[#allocation10 + $0xb24] ss:$16 sps:$4 sm:$0xff]  }
 0x25f   : > { %4902 = vmatpush1.bf16.msra.mxu0 %v10089_v0  ;;  %5806 = vmatpush1.bf16.msra.mxu1 %v10092_v1  ;;  %v8058_v0 = vcombine.high %v643_v60, %v651_v61  ;;  %v10155_v1 = vld [vmem:[#allocation10 + $0xb20] ss:$16 sps:$4 sm:$0xff]  }
 0x260   : > { %4903 = vmatprep.subr.bf16.mxu0 %v10097_v2  ;;  %5807 = vmatprep.subr.bf16.mxu1 %v10100_v3  ;;  %v10158_v2 = vld [vmem:[#allocation10 + $0xb28] ss:$16 sps:$4 sm:$0xff]   ;;  %v10163_v3 = vld [vmem:[#allocation10 + $0xb44] ss:$16 sps:$4 sm:$0xff]  }
 0x261   : > { %4905 = vmatprep.mubr.bf16.mxu0 %v7978_v4  ;;  %5809 = vmatprep.mubr.bf16.mxu1 %v7978_v4  ;;  %v10166_v4 = vld [vmem:[#allocation10 + $0xb4c] ss:$16 sps:$4 sm:$0xff]  }
 0x263   : > { %4904 = vmatpush1.bf16.msra.mxu0 %v10095_v5  ;;  %5808 = vmatpush1.bf16.msra.mxu1 %v10098_v6  ;;  %v659_v5 = vld [vmem:[%s11296_s2 + $0x320] sm:$0xff]  ;;  %v8057_v6 = vcombine.low %v643_v60, %v651_v61  ;;  %v10218_v61 = vld [vmem:[#allocation10 + $0xc68] ss:$16 sps:$4 sm:$0xff]  }
 0x264   : > { %4986 = vmatprep.subr.bf16.mxu0 %v10103_v7  ;;  %5890 = vmatprep.subr.bf16.mxu1 %v10106_v8  ;;  %v667_v7 = vld [vmem:[%s11296_s2 + $0x360] sm:$0xff] }
 0x265   : > { %v10161_v8 = vld [vmem:[#allocation10 + $0xb40] ss:$16 sps:$4 sm:$0xff]  }
 0x266   : > { %4906 = vmatmul.mubr.bf16.vlgmr.msra.gmra.mrb[0].mxu0 %v7977_v10  ;;  %5810 = vmatmul.mubr.bf16.vlgmr.msra.gmra.mrb[0].mxu1 %v7977_v10  ;;  %v10169_v10 = vld [vmem:[#allocation10 + $0xb64] ss:$16 sps:$4 sm:$0xff]   ;;  %v10215_v60 = vld [vmem:[#allocation10 + $0xc60] ss:$16 sps:$4 sm:$0xff]  }
 0x267   : > { %4987 = vmatpush1.bf16.msra.mxu0 %v10101_v12  ;;  %5891 = vmatpush1.bf16.msra.mxu1 %v10104_v13  ;;  %v8074_v12 = vcombine.high %v659_v5, %v667_v7  ;;  %v10167_v13 = vld [vmem:[#allocation10 + $0xb60] ss:$16 sps:$4 sm:$0xff]  }
 0x268   : > { %4988 = vmatprep.subr.bf16.mxu0 %v10109_v14  ;;  %5892 = vmatprep.subr.bf16.mxu1 %v10112_v15  ;;  %v10170_v14 = vld [vmem:[#allocation10 + $0xb68] ss:$16 sps:$4 sm:$0xff]   ;;  %v10175_v15 = vld [vmem:[#allocation10 + $0xb84] ss:$16 sps:$4 sm:$0xff]  }
 0x269   : > { %4915 = vmatprep.mubr.bf16.mxu0 %v7994_v16  ;;  %5819 = vmatprep.mubr.bf16.mxu1 %v7994_v16  ;;  %v10178_v16 = vld [vmem:[#allocation10 + $0xb8c] ss:$16 sps:$4 sm:$0xff]  }
 0x26b   : > { %4989 = vmatpush1.bf16.msra.mxu0 %v10107_v17  ;;  %5893 = vmatpush1.bf16.msra.mxu1 %v10110_v18  ;;  %v10173_v17 = vld [vmem:[#allocation10 + $0xb80] ss:$16 sps:$4 sm:$0xff]   ;;  %v10176_v18 = vld [vmem:[#allocation10 + $0xb88] ss:$16 sps:$4 sm:$0xff]  }
 0x26c   : > { %4990 = vmatprep.subr.bf16.mxu0 %v10115_v19  ;;  %5894 = vmatprep.subr.bf16.mxu1 %v10118_v20  ;;  %v8073_v19 = vcombine.low %v659_v5, %v667_v7  ;;  %v675_v20 = vld [vmem:[%s11296_s2 + $0x3a0] sm:$0xff]  ;;  %v10232_v7 = vld [vmem:[#allocation10 + $0xcac] ss:$16 sps:$4 sm:$0xff]  }
 0x26e   : > { %4916 = vmatmul.mubr.bf16.gmra.mrb[4].mxu0 %v7993_v23  ;;  %5820 = vmatmul.mubr.bf16.gmra.mrb[4].mxu1 %v7993_v23  ;;  %v10184_v23 = vld [vmem:[#allocation10 + $0xbac] ss:$16 sps:$4 sm:$0xff]  }
 0x26f   : > { %4991 = vmatpush1.bf16.msra.mxu0 %v10113_v21  ;;  %5895 = vmatpush1.bf16.msra.mxu1 %v10116_v22  ;;  %v683_v21 = vld [vmem:[%s11296_s2 + $0x3e0] sm:$0xff] }
 0x270   : > { %4992 = vmatprep.subr.bf16.mxu0 %v10121_v26  ;;  %5896 = vmatprep.subr.bf16.mxu1 %v10124_v27  ;;  %v10181_v22 = vld [vmem:[#allocation10 + $0xba4] ss:$16 sps:$4 sm:$0xff]   ;;  %v8090_v24 = vcombine.high %v675_v20, %v683_v21  ;;  %v10182_v26 = vld [vmem:[#allocation10 + $0xba8] ss:$16 sps:$4 sm:$0xff]  }
 0x271   : > { %4925 = vmatprep.mubr.bf16.mxu0 %v8010_v28  ;;  %5829 = vmatprep.mubr.bf16.mxu1 %v8010_v28  ;;  %v10187_v27 = vld [vmem:[#allocation10 + $0xbc4] ss:$16 sps:$4 sm:$0xff]   ;;  %v10190_v28 = vld [vmem:[#allocation10 + $0xbcc] ss:$16 sps:$4 sm:$0xff]  }
 0x273   : > { %4993 = vmatpush1.bf16.msra.mxu0 %v10119_v29  ;;  %5897 = vmatpush1.bf16.msra.mxu1 %v10122_v30  ;;  %v10185_v29 = vld [vmem:[#allocation10 + $0xbc0] ss:$16 sps:$4 sm:$0xff]   ;;  %v10188_v30 = vld [vmem:[#allocation10 + $0xbc8] ss:$16 sps:$4 sm:$0xff]  }
 0x274   : > { %4994 = vmatprep.subr.bf16.mxu0 %v10127_v31  ;;  %5898 = vmatprep.subr.bf16.mxu1 %v10130_v32  ;;  %v8089_v31 = vcombine.low %v675_v20, %v683_v21  ;;  %v564_v32 = vld [vmem:[%s11296_s2 + $0x28] sm:$0xff]  ;;  %v10239_v21 = vld [vmem:[#allocation10 + $0xce0] ss:$16 sps:$4 sm:$0xff]  }
 0x276   : > { %4926 = vmatmul.mubr.bf16.gmra.mrb[8].mxu0 %v8009_v34  ;;  %5830 = vmatmul.mubr.bf16.gmra.mrb[8].mxu1 %v8009_v34  ;;  %v10193_v34 = vld [vmem:[#allocation10 + $0xbe4] ss:$16 sps:$4 sm:$0xff]  }
 0x277   : > { %4995 = vmatpush1.bf16.msra.mxu0 %v10125_v36  ;;  %5899 = vmatpush1.bf16.msra.mxu1 %v10128_v37  ;;  %v7980_v36 = vcombine.high %v564_v32, %v572_v33  ;;  %v10191_v37 = vld [vmem:[#allocation10 + $0xbe0] ss:$16 sps:$4 sm:$0xff]  }
 0x278   : > { %4996 = vmatprep.subr.bf16.mxu0 %v10133_v38  ;;  %5900 = vmatprep.subr.bf16.mxu1 %v10136_v39  ;;  %v10194_v38 = vld [vmem:[#allocation10 + $0xbe8] ss:$16 sps:$4 sm:$0xff]   ;;  %v10199_v39 = vld [vmem:[#allocation10 + $0xc04] ss:$16 sps:$4 sm:$0xff]  }
 0x279   : > { %4935 = vmatprep.mubr.bf16.mxu0 %v8026_v40  ;;  %5839 = vmatprep.mubr.bf16.mxu1 %v8026_v40  ;;  %v10202_v40 = vld [vmem:[#allocation10 + $0xc0c] ss:$16 sps:$4 sm:$0xff]  }
 0x27b   : > { %4997 = vmatpush1.bf16.msra.mxu0 %v10131_v41  ;;  %5901 = vmatpush1.bf16.msra.mxu1 %v10134_v42  ;;  %v10197_v41 = vld [vmem:[#allocation10 + $0xc00] ss:$16 sps:$4 sm:$0xff]   ;;  %v10200_v42 = vld [vmem:[#allocation10 + $0xc08] ss:$16 sps:$4 sm:$0xff]  }
 0x27c   : > { %4998 = vmatprep.subr.bf16.mxu0 %v10139_v43  ;;  %5902 = vmatprep.subr.bf16.mxu1 %v10142_v44  ;;  %v7979_v43 = vcombine.low %v564_v32, %v572_v33  ;;  %v10205_v44 = vld [vmem:[#allocation10 + $0xc24] ss:$16 sps:$4 sm:$0xff]   ;;  %v10251_v33 = vld [vmem:[#allocation10 + $0xd20] ss:$16 sps:$4 sm:$0xff]  }
 0x27e   : > { %4936 = vmatmul.mubr.bf16.gmra.mrb[12].mxu0 %v8025_v46  ;;  %5840 = vmatmul.mubr.bf16.gmra.mrb[12].mxu1 %v8025_v46  ;;  %v580_v46 = vld [vmem:[%s11296_s2 + $0xa8] sm:$0xff] }
 0x27f   : > { %4999 = vmatpush1.bf16.msra.mxu0 %v10137_v48  ;;  %5903 = vmatpush1.bf16.msra.mxu1 %v10140_v49  ;;  %v10203_v48 = vld [vmem:[#allocation10 + $0xc20] ss:$16 sps:$4 sm:$0xff]   ;;  %v10206_v49 = vld [vmem:[#allocation10 + $0xc28] ss:$16 sps:$4 sm:$0xff]  }
 0x280   : > { %5000 = vmatprep.subr.bf16.mxu0 %v10145_v50  ;;  %5904 = vmatprep.subr.bf16.mxu1 %v10148_v51  ;;  %v7996_v50 = vcombine.high %v580_v46, %v588_v47  ;;  %v10211_v51 = vld [vmem:[#allocation10 + $0xc44] ss:$16 sps:$4 sm:$0xff]  }
 0x281   : > { %4945 = vmatprep.mubr.bf16.mxu0 %v8042_v52  ;;  %5849 = vmatprep.mubr.bf16.mxu1 %v8042_v52  ;;  %v10214_v52 = vld [vmem:[#allocation10 + $0xc4c] ss:$16 sps:$4 sm:$0xff]  }
 0x283   : > { %5001 = vmatpush1.bf16.msra.mxu0 %v10143_v53  ;;  %5905 = vmatpush1.bf16.msra.mxu1 %v10146_v54  ;;  %v596_v53 = vld [vmem:[%s11296_s2 + $0x128] sm:$0xff] }
 0x284   : > { %5002 = vmatprep.subr.bf16.mxu0 %v10151_v55  ;;  %5906 = vmatprep.subr.bf16.mxu1 %v10154_v56  ;;  %v604_v54 = vld [vmem:[%s11296_s2 + $0x168] sm:$0xff]  ;;  %v10209_v55 = vld [vmem:[#allocation10 + $0xc40] ss:$16 sps:$4 sm:$0xff]  }
 0x285   : > { %v10212_v56 = vld [vmem:[#allocation10 + $0xc48] ss:$16 sps:$4 sm:$0xff]   ;;  %v8011_v5 = vcombine.low %v596_v53, %v604_v54 }
 0x286   : > { %4946 = vmatmul.mubr.bf16.gmra.mrb[16].mxu0 %v8041_v59  ;;  %5850 = vmatmul.mubr.bf16.gmra.mrb[16].mxu1 %v8041_v59  ;;  %v10220_v59 = vld [vmem:[#allocation10 + $0xc6c] ss:$16 sps:$4 sm:$0xff]  }
 0x287   : > { %5003 = vmatpush1.bf16.msra.mxu0 %v10149_v57  ;;  %5907 = vmatpush1.bf16.msra.mxu1 %v10152_v58  ;;  %v7995_v57 = vcombine.low %v580_v46, %v588_v47  ;;  %v10217_v58 = vld [vmem:[#allocation10 + $0xc64] ss:$16 sps:$4 sm:$0xff]   ;;  %v10266_v46 = vld [vmem:[#allocation10 + $0xd68] ss:$16 sps:$4 sm:$0xff]  }
 0x288   : > { %5004 = vmatprep.subr.bf16.mxu0 %v10157_v62  ;;  %5908 = vmatprep.subr.bf16.mxu1 %v10160_v63  ;;  %v8012_v62 = vcombine.high %v596_v53, %v604_v54  ;;  %v10223_v63 = vld [vmem:[#allocation10 + $0xc84] ss:$16 sps:$4 sm:$0xff]   ;;  %v10272_v53 = vld [vmem:[#allocation10 + $0xd88] ss:$16 sps:$4 sm:$0xff]  }
 0x289   : > { %4955 = vmatprep.mubr.bf16.mxu0 %v8058_v0  ;;  %5859 = vmatprep.mubr.bf16.mxu1 %v8058_v0  ;;  %v10226_v0 = vld [vmem:[#allocation10 + $0xc8c] ss:$16 sps:$4 sm:$0xff]   ;;  %v10271_v47 = vld [vmem:[#allocation10 + $0xd84] ss:$16 sps:$4 sm:$0xff]  }
 0x28a   : > { %v10277_v54 = vld [vmem:[#allocation10 + $0xda4] ss:$16 sps:$4 sm:$0xff]  }
 0x28b   : > { %5005 = vmatpush1.bf16.msra.mxu0 %v10155_v1  ;;  %5909 = vmatpush1.bf16.msra.mxu1 %v10158_v2  ;;  %v612_v1 = vld [vmem:[%s11296_s2 + $0x1a8] sm:$0xff] }
 0x28c   : > { %5006 = vmatprep.subr.bf16.mxu0 %v10163_v3  ;;  %5910 = vmatprep.subr.bf16.mxu1 %v10166_v4  ;;  %v620_v2 = vld [vmem:[%s11296_s2 + $0x1e8] sm:$0xff]  ;;  %v10221_v3 = vld [vmem:[#allocation10 + $0xc80] ss:$16 sps:$4 sm:$0xff]  }
 0x28d   : > { %v10224_v4 = vld [vmem:[#allocation10 + $0xc88] ss:$16 sps:$4 sm:$0xff]  }
 0x28e   : > { %4956 = vmatmul.mubr.bf16.gmra.mrb[20].mxu0 %v8057_v6  ;;  %5860 = vmatmul.mubr.bf16.gmra.mrb[20].mxu1 %v8057_v6  ;;  %v10229_v6 = vld [vmem:[#allocation10 + $0xca4] ss:$16 sps:$4 sm:$0xff]  }
 0x28f   : > { %5007 = vmatpush1.bf16.msra.mxu0 %v10161_v8  ;;  %5911 = vmatpush1.bf16.msra.mxu1 %v10164_v9  ;;  %v8028_v8 = vcombine.high %v612_v1, %v620_v2  ;;  %v10227_v9 = vld [vmem:[#allocation10 + $0xca0] ss:$16 sps:$4 sm:$0xff]  }
 0x290   : > { %5008 = vmatprep.subr.bf16.mxu0 %v10169_v10  ;;  %5912 = vmatprep.subr.bf16.mxu1 %v10172_v11  ;;  %v10230_v10 = vld [vmem:[#allocation10 + $0xca8] ss:$16 sps:$4 sm:$0xff]   ;;  %v10235_v11 = vld [vmem:[#allocation10 + $0xcc4] ss:$16 sps:$4 sm:$0xff]  }
 0x291   : > { %4965 = vmatprep.mubr.bf16.mxu0 %v8074_v12  ;;  %5869 = vmatprep.mubr.bf16.mxu1 %v8074_v12  ;;  %v10238_v12 = vld [vmem:[#allocation10 + $0xccc] ss:$16 sps:$4 sm:$0xff]  }
 0x293   : > { %5009 = vmatpush1.bf16.msra.mxu0 %v10167_v13  ;;  %5913 = vmatpush1.bf16.msra.mxu1 %v10170_v14  ;;  %v8027_v13 = vcombine.low %v612_v1, %v620_v2  ;;  %v628_v14 = vld [vmem:[%s11296_s2 + $0x228] sm:$0xff]  ;;  %v10289_v2 = vld [vmem:[#allocation10 + $0xde4] ss:$16 sps:$4 sm:$0xff]  }
 0x294   : > { %5010 = vmatprep.subr.bf16.mxu0 %v10175_v15  ;;  %5914 = vmatprep.subr.bf16.mxu1 %v10178_v16  ;;  %v636_v15 = vld [vmem:[%s11296_s2 + $0x268] sm:$0xff]  ;;  %v10233_v16 = vld [vmem:[#allocation10 + $0xcc0] ss:$16 sps:$4 sm:$0xff]  }
 0x295   : > { %v8044_v20 = vcombine.high %v628_v14, %v636_v15  ;;  %v10284_v1 = vld [vmem:[#allocation10 + $0xdc8] ss:$16 sps:$4 sm:$0xff]  }
 0x296   : > { %4966 = vmatmul.mubr.bf16.gmra.mrb[24].mxu0 %v8073_v19  ;;  %5870 = vmatmul.mubr.bf16.gmra.mrb[24].mxu1 %v8073_v19  ;;  %v10244_v19 = vld [vmem:[#allocation10 + $0xcec] ss:$16 sps:$4 sm:$0xff]  }
 0x297   : > { %5011 = vmatpush1.bf16.msra.mxu0 %v10173_v17  ;;  %5915 = vmatpush1.bf16.msra.mxu1 %v10176_v18  ;;  %v10236_v17 = vld [vmem:[#allocation10 + $0xcc8] ss:$16 sps:$4 sm:$0xff]   ;;  %v10241_v18 = vld [vmem:[#allocation10 + $0xce4] ss:$16 sps:$4 sm:$0xff]  }
 0x298   : > { %5012 = vmatprep.subr.bf16.mxu0 %v10181_v22  ;;  %5916 = vmatprep.subr.bf16.mxu1 %v10184_v23  ;;  %v10242_v22 = vld [vmem:[#allocation10 + $0xce8] ss:$16 sps:$4 sm:$0xff]   ;;  %v10247_v23 = vld [vmem:[#allocation10 + $0xd04] ss:$16 sps:$4 sm:$0xff]  }
 0x299   : > { %4975 = vmatprep.mubr.bf16.mxu0 %v8090_v24  ;;  %5879 = vmatprep.mubr.bf16.mxu1 %v8090_v24  ;;  %v10250_v24 = vld [vmem:[#allocation10 + $0xd0c] ss:$16 sps:$4 sm:$0xff]  }
 0x29b   : > { %5013 = vmatpush1.bf16.msra.mxu0 %v10179_v25  ;;  %5917 = vmatpush1.bf16.msra.mxu1 %v10182_v26  ;;  %v8043_v25 = vcombine.low %v628_v14, %v636_v15  ;;  %v644_v26 = vld [vmem:[%s11296_s2 + $0x2a8] sm:$0xff]  ;;  %v10301_v14 = vld [vmem:[#allocation10 + $0xe24] ss:$16 sps:$4 sm:$0xff]  }
 0x29c   : > { %5014 = vmatprep.subr.bf16.mxu0 %v10187_v27  ;;  %5918 = vmatprep.subr.bf16.mxu1 %v10190_v28  ;;  %v652_v27 = vld [vmem:[%s11296_s2 + $0x2e8] sm:$0xff]  ;;  %v10245_v28 = vld [vmem:[#allocation10 + $0xd00] ss:$16 sps:$4 sm:$0xff]  }
 0x29d   : > { %v8060_v32 = vcombine.high %v644_v26, %v652_v27  ;;  %v10304_v15 = vld [vmem:[#allocation10 + $0xe2c] ss:$16 sps:$4 sm:$0xff]  }
 0x29e   : > { %4976 = vmatmul.mubr.bf16.gmra.mrb[28].mxu0 %v8089_v31  ;;  %5880 = vmatmul.mubr.bf16.gmra.mrb[28].mxu1 %v8089_v31  ;;  %v10256_v31 = vld [vmem:[#allocation10 + $0xd2c] ss:$16 sps:$4 sm:$0xff]  }
 0x29f   : > { %5015 = vmatpush1.bf16.msra.mxu0 %v10185_v29  ;;  %5919 = vmatpush1.bf16.msra.mxu1 %v10188_v30  ;;  %v10248_v29 = vld [vmem:[#allocation10 + $0xd08] ss:$16 sps:$4 sm:$0xff]   ;;  %v10253_v30 = vld [vmem:[#allocation10 + $0xd24] ss:$16 sps:$4 sm:$0xff]  }
 0x2a0   : > { %5016 = vmatprep.subr.bf16.mxu0 %v10193_v34  ;;  %5920 = vmatprep.subr.bf16.mxu1 %v10196_v35  ;;  %v10254_v34 = vld [vmem:[#allocation10 + $0xd28] ss:$16 sps:$4 sm:$0xff]   ;;  %v10259_v35 = vld [vmem:[#allocation10 + $0xd44] ss:$16 sps:$4 sm:$0xff]  }
 0x2a1   : > { %5018 = vmatprep.mubr.bf16.mxu0 %v7980_v36  ;;  %5922 = vmatprep.mubr.bf16.mxu1 %v7980_v36  ;;  %v10262_v36 = vld [vmem:[#allocation10 + $0xd4c] ss:$16 sps:$4 sm:$0xff]  }
 0x2a3   : > { %5017 = vmatpush1.bf16.msra.mxu0 %v10191_v37  ;;  %5921 = vmatpush1.bf16.msra.mxu1 %v10194_v38  ;;  %v8059_v37 = vcombine.low %v644_v26, %v652_v27  ;;  %v660_v38 = vld [vmem:[%s11296_s2 + $0x328] sm:$0xff]  ;;  %v10313_v26 = vld [vmem:[#allocation10 + $0xe64] ss:$16 sps:$4 sm:$0xff]  }
 0x2a4   : > { %5099 = vmatprep.subr.bf16.mxu0 %v10199_v39  ;;  %6003 = vmatprep.subr.bf16.mxu1 %v10202_v40  ;;  %v668_v39 = vld [vmem:[%s11296_s2 + $0x368] sm:$0xff]  ;;  %v10257_v40 = vld [vmem:[#allocation10 + $0xd40] ss:$16 sps:$4 sm:$0xff]  }
 0x2a5   : > { %v10316_v27 = vld [vmem:[#allocation10 + $0xe6c] ss:$16 sps:$4 sm:$0xff]  }
 0x2a6   : > { %5019 = vmatmul.mubr.bf16.vlgmr.msra.gmra.mrb[0].mxu0 %v7979_v43  ;;  %5923 = vmatmul.mubr.bf16.vlgmr.msra.gmra.mrb[0].mxu1 %v7979_v43  ;;  %v10268_v43 = vld [vmem:[#allocation10 + $0xd6c] ss:$16 sps:$4 sm:$0xff]  }
 0x2a7   : > { %5100 = vmatpush1.bf16.msra.mxu0 %v10197_v41  ;;  %6004 = vmatpush1.bf16.msra.mxu1 %v10200_v42  ;;  %v10260_v41 = vld [vmem:[#allocation10 + $0xd48] ss:$16 sps:$4 sm:$0xff]   ;;  %v10265_v42 = vld [vmem:[#allocation10 + $0xd64] ss:$16 sps:$4 sm:$0xff]  }
 0x2a8   : > { %5101 = vmatprep.subr.bf16.mxu0 %v10205_v44  ;;  %6005 = vmatprep.subr.bf16.mxu1 %v10208_v45  ;;  %v8076_v44 = vcombine.high %v660_v38, %v668_v39  ;;  %v10263_v45 = vld [vmem:[#allocation10 + $0xd60] ss:$16 sps:$4 sm:$0xff]  }
 0x2a9   : > { %5028 = vmatprep.mubr.bf16.mxu0 %v7996_v50  ;;  %5932 = vmatprep.mubr.bf16.mxu1 %v7996_v50  ;;  %v676_v50 = vld [vmem:[%s11296_s2 + $0x3a8] sm:$0xff] }
 0x2ab   : > { %5102 = vmatpush1.bf16.msra.mxu0 %v10203_v48  ;;  %6006 = vmatpush1.bf16.msra.mxu1 %v10206_v49  ;;  %v10274_v48 = vld [vmem:[#allocation10 + $0xd8c] ss:$16 sps:$4 sm:$0xff]   ;;  %v8075_v49 = vcombine.low %v660_v38, %v668_v39  ;;  %v10325_v38 = vld [vmem:[#allocation10 + $0xea4] ss:$16 sps:$4 sm:$0xff]  }
 0x2ac   : > { %5103 = vmatprep.subr.bf16.mxu0 %v10211_v51  ;;  %6007 = vmatprep.subr.bf16.mxu1 %v10214_v52  ;;  %v684_v51 = vld [vmem:[%s11296_s2 + $0x3e8] sm:$0xff]  ;;  %v10269_v52 = vld [vmem:[#allocation10 + $0xd80] ss:$16 sps:$4 sm:$0xff]  }
 0x2ad   : > { %v10328_v39 = vld [vmem:[#allocation10 + $0xeac] ss:$16 sps:$4 sm:$0xff]  }
 0x2ae   : > { %5029 = vmatmul.mubr.bf16.gmra.mrb[4].mxu0 %v7995_v57  ;;  %5933 = vmatmul.mubr.bf16.gmra.mrb[4].mxu1 %v7995_v57  ;;  %v10275_v57 = vld [vmem:[#allocation10 + $0xda0] ss:$16 sps:$4 sm:$0xff]  }
 0x2af   : > { %5104 = vmatpush1.bf16.msra.mxu0 %v10209_v55  ;;  %6008 = vmatpush1.bf16.msra.mxu1 %v10212_v56  ;;  %v10280_v55 = vld [vmem:[#allocation10 + $0xdac] ss:$16 sps:$4 sm:$0xff]   ;;  %v8092_v56 = vcombine.high %v676_v50, %v684_v51 }
 0x2b0   : > { %5105 = vmatprep.subr.bf16.mxu0 %v10217_v58  ;;  %6009 = vmatprep.subr.bf16.mxu1 %v10220_v59  ;;  %v10278_v58 = vld [vmem:[#allocation10 + $0xda8] ss:$16 sps:$4 sm:$0xff]   ;;  %v10283_v59 = vld [vmem:[#allocation10 + $0xdc4] ss:$16 sps:$4 sm:$0xff]  }
 0x2b1   : > { %5038 = vmatprep.mubr.bf16.mxu0 %v8012_v62  ;;  %5942 = vmatprep.mubr.bf16.mxu1 %v8012_v62  ;;  %v565_v62 = vld [vmem:[%s11296_s2 + $0x30] sm:$0xff] }
 0x2b3   : > { %5106 = vmatpush1.bf16.msra.mxu0 %v10215_v60  ;;  %6010 = vmatpush1.bf16.msra.mxu1 %v10218_v61  ;;  %v10286_v60 = vld [vmem:[#allocation10 + $0xdcc] ss:$16 sps:$4 sm:$0xff]   ;;  %v8091_v61 = vcombine.low %v676_v50, %v684_v51  ;;  %v10337_v50 = vld [vmem:[#allocation10 + $0xee4] ss:$16 sps:$4 sm:$0xff]  }
 0x2b4   : > { %5107 = vmatprep.subr.bf16.mxu0 %v10223_v63  ;;  %6011 = vmatprep.subr.bf16.mxu1 %v10226_v0  ;;  %v573_v63 = vld [vmem:[%s11296_s2 + $0x70] sm:$0xff]  ;;  %v10340_v51 = vld [vmem:[#allocation10 + $0xeec] ss:$16 sps:$4 sm:$0xff]  }
 0x2b5   : > { %v10281_v0 = vld [vmem:[#allocation10 + $0xdc0] ss:$16 sps:$4 sm:$0xff]  }
 0x2b6   : > { %5039 = vmatmul.mubr.bf16.gmra.mrb[8].mxu0 %v8011_v5  ;;  %5943 = vmatmul.mubr.bf16.gmra.mrb[8].mxu1 %v8011_v5  ;;  %v10287_v5 = vld [vmem:[#allocation10 + $0xde0] ss:$16 sps:$4 sm:$0xff]  }
 0x2b7   : > { %5108 = vmatpush1.bf16.msra.mxu0 %v10221_v3  ;;  %6012 = vmatpush1.bf16.msra.mxu1 %v10224_v4  ;;  %v10292_v3 = vld [vmem:[#allocation10 + $0xdec] ss:$16 sps:$4 sm:$0xff]   ;;  %v7982_v4 = vcombine.high %v565_v62, %v573_v63 }
 0x2b8   : > { %5109 = vmatprep.subr.bf16.mxu0 %v10229_v6  ;;  %6013 = vmatprep.subr.bf16.mxu1 %v10232_v7  ;;  %v10290_v6 = vld [vmem:[#allocation10 + $0xde8] ss:$16 sps:$4 sm:$0xff]   ;;  %v10295_v7 = vld [vmem:[#allocation10 + $0xe04] ss:$16 sps:$4 sm:$0xff]  }
 0x2b9   : > { %5048 = vmatprep.mubr.bf16.mxu0 %v8028_v8  ;;  %5952 = vmatprep.mubr.bf16.mxu1 %v8028_v8  ;;  %v10298_v8 = vld [vmem:[#allocation10 + $0xe0c] ss:$16 sps:$4 sm:$0xff]  }
 0x2bb   : > { %5110 = vmatpush1.bf16.msra.mxu0 %v10227_v9  ;;  %6014 = vmatpush1.bf16.msra.mxu1 %v10230_v10  ;;  %v7981_v9 = vcombine.low %v565_v62, %v573_v63  ;;  %v581_v10 = vld [vmem:[%s11296_s2 + $0xb0] sm:$0xff]  ;;  %v10352_v63 = vld [vmem:[#allocation10 + $0xf2c] ss:$16 sps:$4 sm:$0xff]  }
 0x2bc   : > { %5111 = vmatprep.subr.bf16.mxu0 %v10235_v11  ;;  %6015 = vmatprep.subr.bf16.mxu1 %v10238_v12  ;;  %v589_v11 = vld [vmem:[%s11296_s2 + $0xf0] sm:$0xff] }
 0x2bd   : > { %v10293_v12 = vld [vmem:[#allocation10 + $0xe00] ss:$16 sps:$4 sm:$0xff]   ;;  %v10349_v62 = vld [vmem:[#allocation10 + $0xf24] ss:$16 sps:$4 sm:$0xff]  }
 0x2be   : > { %5049 = vmatmul.mubr.bf16.gmra.mrb[12].mxu0 %v8027_v13  ;;  %5953 = vmatmul.mubr.bf16.gmra.mrb[12].mxu1 %v8027_v13  ;;  %v10296_v13 = vld [vmem:[#allocation10 + $0xe08] ss:$16 sps:$4 sm:$0xff]  }
 0x2bf   : > { %5112 = vmatpush1.bf16.msra.mxu0 %v10233_v16  ;;  %6016 = vmatpush1.bf16.msra.mxu1 %v10236_v17  ;;  %v7998_v16 = vcombine.high %v581_v10, %v589_v11  ;;  %v10299_v17 = vld [vmem:[#allocation10 + $0xe20] ss:$16 sps:$4 sm:$0xff]  }
 0x2c0   : > { %5113 = vmatprep.subr.bf16.mxu0 %v10241_v18  ;;  %6017 = vmatprep.subr.bf16.mxu1 %v10244_v19  ;;  %v10302_v18 = vld [vmem:[#allocation10 + $0xe28] ss:$16 sps:$4 sm:$0xff]   ;;  %v10307_v19 = vld [vmem:[#allocation10 + $0xe44] ss:$16 sps:$4 sm:$0xff]  }
 0x2c1   : > { %5058 = vmatprep.mubr.bf16.mxu0 %v8044_v20  ;;  %5962 = vmatprep.mubr.bf16.mxu1 %v8044_v20  ;;  %v10310_v20 = vld [vmem:[#allocation10 + $0xe4c] ss:$16 sps:$4 sm:$0xff]  }
 0x2c3   : > { %5114 = vmatpush1.bf16.msra.mxu0 %v10239_v21  ;;  %6018 = vmatpush1.bf16.msra.mxu1 %v10242_v22  ;;  %v7997_v21 = vcombine.low %v581_v10, %v589_v11  ;;  %v597_v22 = vld [vmem:[%s11296_s2 + $0x130] sm:$0xff]  ;;  %v10364_v11 = vld [vmem:[#allocation10 + $0xf6c] ss:$16 sps:$4 sm:$0xff]  }
 0x2c4   : > { %5115 = vmatprep.subr.bf16.mxu0 %v10247_v23  ;;  %6019 = vmatprep.subr.bf16.mxu1 %v10250_v24  ;;  %v605_v23 = vld [vmem:[%s11296_s2 + $0x170] sm:$0xff] }
 0x2c5   : > { %v10305_v24 = vld [vmem:[#allocation10 + $0xe40] ss:$16 sps:$4 sm:$0xff]   ;;  %v10361_v10 = vld [vmem:[#allocation10 + $0xf64] ss:$16 sps:$4 sm:$0xff]  }
 0x2c6   : > { %5059 = vmatmul.mubr.bf16.gmra.mrb[16].mxu0 %v8043_v25  ;;  %5963 = vmatmul.mubr.bf16.gmra.mrb[16].mxu1 %v8043_v25  ;;  %v10308_v25 = vld [vmem:[#allocation10 + $0xe48] ss:$16 sps:$4 sm:$0xff]  }
 0x2c7   : > { %5116 = vmatpush1.bf16.msra.mxu0 %v10245_v28  ;;  %6020 = vmatpush1.bf16.msra.mxu1 %v10248_v29  ;;  %v8014_v28 = vcombine.high %v597_v22, %v605_v23  ;;  %v10311_v29 = vld [vmem:[#allocation10 + $0xe60] ss:$16 sps:$4 sm:$0xff]  }
 0x2c8   : > { %5117 = vmatprep.subr.bf16.mxu0 %v10253_v30  ;;  %6021 = vmatprep.subr.bf16.mxu1 %v10256_v31  ;;  %v10314_v30 = vld [vmem:[#allocation10 + $0xe68] ss:$16 sps:$4 sm:$0xff]   ;;  %v10319_v31 = vld [vmem:[#allocation10 + $0xe84] ss:$16 sps:$4 sm:$0xff]  }
 0x2c9   : > { %5068 = vmatprep.mubr.bf16.mxu0 %v8060_v32  ;;  %5972 = vmatprep.mubr.bf16.mxu1 %v8060_v32  ;;  %v10322_v32 = vld [vmem:[#allocation10 + $0xe8c] ss:$16 sps:$4 sm:$0xff]  }
 0x2cb   : > { %5118 = vmatpush1.bf16.msra.mxu0 %v10251_v33  ;;  %6022 = vmatpush1.bf16.msra.mxu1 %v10254_v34  ;;  %v8013_v33 = vcombine.low %v597_v22, %v605_v23  ;;  %v613_v34 = vld [vmem:[%s11296_s2 + $0x1b0] sm:$0xff]  ;;  %v10376_v23 = vld [vmem:[#allocation10 + $0xfac] ss:$16 sps:$4 sm:$0xff]  }
 0x2cc   : > { %5119 = vmatprep.subr.bf16.mxu0 %v10259_v35  ;;  %6023 = vmatprep.subr.bf16.mxu1 %v10262_v36  ;;  %v621_v35 = vld [vmem:[%s11296_s2 + $0x1f0] sm:$0xff] }
 0x2cd   : > { %v10317_v36 = vld [vmem:[#allocation10 + $0xe80] ss:$16 sps:$4 sm:$0xff]   ;;  %v10373_v22 = vld [vmem:[#allocation10 + $0xfa4] ss:$16 sps:$4 sm:$0xff]  }
 0x2ce   : > { %5069 = vmatmul.mubr.bf16.gmra.mrb[20].mxu0 %v8059_v37  ;;  %5973 = vmatmul.mubr.bf16.gmra.mrb[20].mxu1 %v8059_v37  ;;  %v10320_v37 = vld [vmem:[#allocation10 + $0xe88] ss:$16 sps:$4 sm:$0xff]  }
 0x2cf   : > { %5120 = vmatpush1.bf16.msra.mxu0 %v10257_v40  ;;  %6024 = vmatpush1.bf16.msra.mxu1 %v10260_v41  ;;  %v8030_v40 = vcombine.high %v613_v34, %v621_v35  ;;  %v10323_v41 = vld [vmem:[#allocation10 + $0xea0] ss:$16 sps:$4 sm:$0xff]  }
 0x2d0   : > { %5121 = vmatprep.subr.bf16.mxu0 %v10265_v42  ;;  %6025 = vmatprep.subr.bf16.mxu1 %v10268_v43  ;;  %v10326_v42 = vld [vmem:[#allocation10 + $0xea8] ss:$16 sps:$4 sm:$0xff]   ;;  %v10331_v43 = vld [vmem:[#allocation10 + $0xec4] ss:$16 sps:$4 sm:$0xff]  }
 0x2d1   : > { %5078 = vmatprep.mubr.bf16.mxu0 %v8076_v44  ;;  %5982 = vmatprep.mubr.bf16.mxu1 %v8076_v44  ;;  %v10334_v44 = vld [vmem:[#allocation10 + $0xecc] ss:$16 sps:$4 sm:$0xff]  }
 0x2d3   : > { %5122 = vmatpush1.bf16.msra.mxu0 %v10263_v45  ;;  %6026 = vmatpush1.bf16.msra.mxu1 %v10266_v46  ;;  %v8029_v45 = vcombine.low %v613_v34, %v621_v35  ;;  %v629_v46 = vld [vmem:[%s11296_s2 + $0x230] sm:$0xff]  ;;  %v10388_v35 = vld [vmem:[#allocation10 + $0xfec] ss:$16 sps:$4 sm:$0xff]  }
 0x2d4   : > { %5123 = vmatprep.subr.bf16.mxu0 %v10271_v47  ;;  %6027 = vmatprep.subr.bf16.mxu1 %v10274_v48  ;;  %v637_v47 = vld [vmem:[%s11296_s2 + $0x270] sm:$0xff] }
 0x2d5   : > { %v10329_v48 = vld [vmem:[#allocation10 + $0xec0] ss:$16 sps:$4 sm:$0xff]   ;;  %v10385_v34 = vld [vmem:[#allocation10 + $0xfe4] ss:$16 sps:$4 sm:$0xff]  }
 0x2d6   : > { %5079 = vmatmul.mubr.bf16.gmra.mrb[24].mxu0 %v8075_v49  ;;  %5983 = vmatmul.mubr.bf16.gmra.mrb[24].mxu1 %v8075_v49  ;;  %v10332_v49 = vld [vmem:[#allocation10 + $0xec8] ss:$16 sps:$4 sm:$0xff]  }
 0x2d7   : > { %5124 = vmatpush1.bf16.msra.mxu0 %v10269_v52  ;;  %6028 = vmatpush1.bf16.msra.mxu1 %v10272_v53  ;;  %v8046_v52 = vcombine.high %v629_v46, %v637_v47  ;;  %v10335_v53 = vld [vmem:[#allocation10 + $0xee0] ss:$16 sps:$4 sm:$0xff]  }
 0x2d8   : > { %5125 = vmatprep.subr.bf16.mxu0 %v10277_v54  ;;  %6029 = vmatprep.subr.bf16.mxu1 %v10280_v55  ;;  %v10338_v54 = vld [vmem:[#allocation10 + $0xee8] ss:$16 sps:$4 sm:$0xff]   ;;  %v10343_v55 = vld [vmem:[#allocation10 + $0xf04] ss:$16 sps:$4 sm:$0xff]  }
 0x2d9   : > { %5088 = vmatprep.mubr.bf16.mxu0 %v8092_v56  ;;  %5992 = vmatprep.mubr.bf16.mxu1 %v8092_v56  ;;  %v10346_v56 = vld [vmem:[#allocation10 + $0xf0c] ss:$16 sps:$4 sm:$0xff]  }
 0x2db   : > { %5126 = vmatpush1.bf16.msra.mxu0 %v10275_v57  ;;  %6030 = vmatpush1.bf16.msra.mxu1 %v10278_v58  ;;  %v8045_v57 = vcombine.low %v629_v46, %v637_v47  ;;  %v645_v58 = vld [vmem:[%s11296_s2 + $0x2b0] sm:$0xff]  ;;  %v10392_v46 = vld [vmem:[#allocation13 + $0x80] sm:$0xff]  }
 0x2dc   : > { %5127 = vmatprep.subr.bf16.mxu0 %v10283_v59  ;;  %6031 = vmatprep.subr.bf16.mxu1 %v10286_v60  ;;  %v653_v59 = vld [vmem:[%s11296_s2 + $0x2f0] sm:$0xff] }
 0x2dd   : > { %v10341_v60 = vld [vmem:[#allocation10 + $0xf00] ss:$16 sps:$4 sm:$0xff]  }
 0x2de   : > { %5089 = vmatmul.mubr.bf16.gmra.mrb[28].mxu0 %v8091_v61  ;;  %5993 = vmatmul.mubr.bf16.gmra.mrb[28].mxu1 %v8091_v61  ;;  %v10344_v61 = vld [vmem:[#allocation10 + $0xf08] ss:$16 sps:$4 sm:$0xff]   ;;  %v10393_v47 = vld [vmem:[#allocation13 + $0x48] sm:$0xff]  }
 0x2df   : > { %5128 = vmatpush1.bf16.msra.mxu0 %v10281_v0  ;;  %6032 = vmatpush1.bf16.msra.mxu1 %v10284_v1  ;;  %v8062_v0 = vcombine.high %v645_v58, %v653_v59  ;;  %v10347_v1 = vld [vmem:[#allocation10 + $0xf20] ss:$16 sps:$4 sm:$0xff]  }
 0x2e0   : > { %5129 = vmatprep.subr.bf16.mxu0 %v10289_v2  ;;  %6033 = vmatprep.subr.bf16.mxu1 %v10292_v3  ;;  %v10350_v2 = vld [vmem:[#allocation10 + $0xf28] ss:$16 sps:$4 sm:$0xff]   ;;  %v10355_v3 = vld [vmem:[#allocation10 + $0xf44] ss:$16 sps:$4 sm:$0xff]  }
 0x2e1   : > { %5131 = vmatprep.mubr.bf16.mxu0 %v7982_v4  ;;  %6035 = vmatprep.mubr.bf16.mxu1 %v7982_v4  ;;  %v10358_v4 = vld [vmem:[#allocation10 + $0xf4c] ss:$16 sps:$4 sm:$0xff]  }
 0x2e3   : > { %5130 = vmatpush1.bf16.msra.mxu0 %v10287_v5  ;;  %6034 = vmatpush1.bf16.msra.mxu1 %v10290_v6  ;;  %v8061_v5 = vcombine.low %v645_v58, %v653_v59  ;;  %v661_v6 = vld [vmem:[%s11296_s2 + $0x330] sm:$0xff]  ;;  %v10401_v59 = vld [vmem:[#allocation13 + $0x58] sm:$0xff]  }
 0x2e4   : > { %5212 = vmatprep.subr.bf16.mxu0 %v10295_v7  ;;  %6116 = vmatprep.subr.bf16.mxu1 %v10298_v8  ;;  %v669_v7 = vld [vmem:[%s11296_s2 + $0x370] sm:$0xff] }
 0x2e5   : > { %v10353_v8 = vld [vmem:[#allocation10 + $0xf40] ss:$16 sps:$4 sm:$0xff]   ;;  %v10400_v58 = vld [vmem:[#allocation13 + $0x90] sm:$0xff]  }
 0x2e6   : > { %5132 = vmatmul.mubr.bf16.vlgmr.msra.gmra.mrb[0].mxu0 %v7981_v9  ;;  %6036 = vmatmul.mubr.bf16.vlgmr.msra.gmra.mrb[0].mxu1 %v7981_v9  ;;  %v10356_v9 = vld [vmem:[#allocation10 + $0xf48] ss:$16 sps:$4 sm:$0xff]  }
 0x2e7   : > { %5213 = vmatpush1.bf16.msra.mxu0 %v10293_v12  ;;  %6117 = vmatpush1.bf16.msra.mxu1 %v10296_v13  ;;  %v8078_v12 = vcombine.high %v661_v6, %v669_v7  ;;  %v10359_v13 = vld [vmem:[#allocation10 + $0xf60] ss:$16 sps:$4 sm:$0xff]  }
 0x2e8   : > { %5214 = vmatprep.subr.bf16.mxu0 %v10301_v14  ;;  %6118 = vmatprep.subr.bf16.mxu1 %v10304_v15  ;;  %v10362_v14 = vld [vmem:[#allocation10 + $0xf68] ss:$16 sps:$4 sm:$0xff]   ;;  %v10367_v15 = vld [vmem:[#allocation10 + $0xf84] ss:$16 sps:$4 sm:$0xff]  }
 0x2e9   : > { %5141 = vmatprep.mubr.bf16.mxu0 %v7998_v16  ;;  %6045 = vmatprep.mubr.bf16.mxu1 %v7998_v16  ;;  %v10370_v16 = vld [vmem:[#allocation10 + $0xf8c] ss:$16 sps:$4 sm:$0xff]  }
 0x2eb   : > { %5215 = vmatpush1.bf16.msra.mxu0 %v10299_v17  ;;  %6119 = vmatpush1.bf16.msra.mxu1 %v10302_v18  ;;  %v8077_v17 = vcombine.low %v661_v6, %v669_v7  ;;  %v677_v18 = vld [vmem:[%s11296_s2 + $0x3b0] sm:$0xff]  ;;  %v10408_v6 = vld [vmem:[#allocation13 + $0xa0] sm:$0xff]  }
 0x2ec   : > { %5216 = vmatprep.subr.bf16.mxu0 %v10307_v19  ;;  %6120 = vmatprep.subr.bf16.mxu1 %v10310_v20  ;;  %v685_v19 = vld [vmem:[%s11296_s2 + $0x3f0] sm:$0xff] }
 0x2ed   : > { %v10365_v20 = vld [vmem:[#allocation10 + $0xf80] ss:$16 sps:$4 sm:$0xff]  }
 0x2ee   : > { %5142 = vmatmul.mubr.bf16.gmra.mrb[4].mxu0 %v7997_v21  ;;  %6046 = vmatmul.mubr.bf16.gmra.mrb[4].mxu1 %v7997_v21  ;;  %v10368_v21 = vld [vmem:[#allocation10 + $0xf88] ss:$16 sps:$4 sm:$0xff]   ;;  %v10409_v7 = vld [vmem:[#allocation13 + $0x68] sm:$0xff]  }
 0x2ef   : > { %5217 = vmatpush1.bf16.msra.mxu0 %v10305_v24  ;;  %6121 = vmatpush1.bf16.msra.mxu1 %v10308_v25  ;;  %v8094_v24 = vcombine.high %v677_v18, %v685_v19  ;;  %v10371_v25 = vld [vmem:[#allocation10 + $0xfa0] ss:$16 sps:$4 sm:$0xff]  }
 0x2f0   : > { %5218 = vmatprep.subr.bf16.mxu0 %v10313_v26  ;;  %6122 = vmatprep.subr.bf16.mxu1 %v10316_v27  ;;  %v10374_v26 = vld [vmem:[#allocation10 + $0xfa8] ss:$16 sps:$4 sm:$0xff]   ;;  %v10379_v27 = vld [vmem:[#allocation10 + $0xfc4] ss:$16 sps:$4 sm:$0xff]  }
 0x2f1   : > { %5151 = vmatprep.mubr.bf16.mxu0 %v8014_v28  ;;  %6055 = vmatprep.mubr.bf16.mxu1 %v8014_v28  ;;  %v10382_v28 = vld [vmem:[#allocation10 + $0xfcc] ss:$16 sps:$4 sm:$0xff]  }
 0x2f3   : > { %5219 = vmatpush1.bf16.msra.mxu0 %v10311_v29  ;;  %6123 = vmatpush1.bf16.msra.mxu1 %v10314_v30  ;;  %v8093_v29 = vcombine.low %v677_v18, %v685_v19  ;;  %v566_v30 = vld [vmem:[%s11296_s2 + $0x38] sm:$0xff] }
 0x2f4   : > { %5220 = vmatprep.subr.bf16.mxu0 %v10319_v31  ;;  %6124 = vmatprep.subr.bf16.mxu1 %v10322_v32  ;;  %v574_v31 = vld [vmem:[%s11296_s2 + $0x78] sm:$0xff]  ;;  %v10377_v32 = vld [vmem:[#allocation10 + $0xfc0] ss:$16 sps:$4 sm:$0xff]  }
 0x2f5   : > { %v10416_v18 = vld [vmem:[#allocation13 + $0xb0] sm:$0xff]  }
 0x2f6   : > { %5152 = vmatmul.mubr.bf16.gmra.mrb[8].mxu0 %v8013_v33  ;;  %6056 = vmatmul.mubr.bf16.gmra.mrb[8].mxu1 %v8013_v33  ;;  %v10380_v33 = vld [vmem:[#allocation10 + $0xfc8] ss:$16 sps:$4 sm:$0xff]  }
 0x2f7   : > { %5221 = vmatpush1.bf16.msra.mxu0 %v10317_v36  ;;  %6125 = vmatpush1.bf16.msra.mxu1 %v10320_v37  ;;  %v7984_v36 = vcombine.high %v566_v30, %v574_v31  ;;  %v10383_v37 = vld [vmem:[#allocation10 + $0xfe0] ss:$16 sps:$4 sm:$0xff]   ;;  %v646_v19 = vld [vmem:[%s11296_s2 + $0x2b8] sm:$0xff] }
 0x2f8   : > { %5222 = vmatprep.subr.bf16.mxu0 %v10325_v38  ;;  %6126 = vmatprep.subr.bf16.mxu1 %v10328_v39  ;;  %v10386_v38 = vld [vmem:[#allocation10 + $0xfe8] ss:$16 sps:$4 sm:$0xff]  }
 0x2f9   : > { %5161 = vmatprep.mubr.bf16.mxu0 %v8030_v40  ;;  %6065 = vmatprep.mubr.bf16.mxu1 %v8030_v40  ;;  %v582_v39 = vld [vmem:[%s11296_s2 + $0xb8] sm:$0xff] }
 0x2fa   : > { %v590_v40 = vld [vmem:[%s11296_s2 + $0xf8] sm:$0xff] }
 0x2fb   : > { %5223 = vmatpush1.bf16.msra.mxu0 %v10323_v41  ;;  %6127 = vmatpush1.bf16.msra.mxu1 %v10326_v42  ;;  %v10389_v41 = vld [vmem:[#allocation13 + $0x40] sm:$0xff]  }
 0x2fc   : > { %5224 = vmatprep.subr.bf16.mxu0 %v10331_v43  ;;  %6128 = vmatprep.subr.bf16.mxu1 %v10334_v44  ;;  %v10391_v42 = vld [vmem:[#allocation13 + $0xc0] sm:$0xff]   ;;  %v7983_v43 = vcombine.low %v566_v30, %v574_v31  ;;  %v8000_v44 = vcombine.high %v582_v39, %v590_v40 }
 0x2fe   : > { %5162 = vmatmul.mubr.bf16.gmra.mrb[12].mxu0 %v8029_v45  ;;  %6066 = vmatmul.mubr.bf16.gmra.mrb[12].mxu1 %v8029_v45  ;;  %v10390_v45 = vld [vmem:[#allocation13] sm:$0xff]  }
 0x2ff   : > { %5225 = vmatpush1.bf16.msra.mxu0 %v10329_v48  ;;  %6129 = vmatpush1.bf16.msra.mxu1 %v10332_v49  ;;  %v10395_v48 = vld [vmem:[#allocation13 + $0xc8] sm:$0xff]   ;;  %v598_v49 = vld [vmem:[%s11296_s2 + $0x138] sm:$0xff] }
 0x300   : > { %5226 = vmatprep.subr.bf16.mxu0 %v10337_v50  ;;  %6130 = vmatprep.subr.bf16.mxu1 %v10340_v51  ;;  %v606_v50 = vld [vmem:[%s11296_s2 + $0x178] sm:$0xff]  ;;  %v10394_v51 = vld [vmem:[#allocation13 + $0x8] sm:$0xff]  }
 0x301   : > { %5171 = vmatprep.mubr.bf16.mxu0 %v8046_v52  ;;  %6075 = vmatprep.mubr.bf16.mxu1 %v8046_v52  ;;  %v10396_v52 = vld [vmem:[#allocation13 + $0x88] sm:$0xff]  }
 0x303   : > { %5227 = vmatpush1.bf16.msra.mxu0 %v10335_v53  ;;  %6131 = vmatpush1.bf16.msra.mxu1 %v10338_v54  ;;  %v10397_v53 = vld [vmem:[#allocation13 + $0x50] sm:$0xff]  }
 0x304   : > { %5228 = vmatprep.subr.bf16.mxu0 %v10343_v55  ;;  %6132 = vmatprep.subr.bf16.mxu1 %v10346_v56  ;;  %v10399_v54 = vld [vmem:[#allocation13 + $0xd0] sm:$0xff]   ;;  %v7999_v55 = vcombine.low %v582_v39, %v590_v40  ;;  %v8016_v56 = vcombine.high %v598_v49, %v606_v50  ;;  %v1199_v40 = vld [vmem:[#allocation12] sm:$0xf] }
 0x306   : > { %5172 = vmatmul.mubr.bf16.gmra.mrb[16].mxu0 %v8045_v57  ;;  %6076 = vmatmul.mubr.bf16.gmra.mrb[16].mxu1 %v8045_v57  ;;  %v10398_v57 = vld [vmem:[#allocation13 + $0x10] sm:$0xff]  }
 0x307   : > { %5229 = vmatpush1.bf16.msra.mxu0 %v10341_v60  ;;  %6133 = vmatpush1.bf16.msra.mxu1 %v10344_v61  ;;  %v10403_v60 = vld [vmem:[#allocation13 + $0xd8] sm:$0xff]  }
 0x308   : > { %5230 = vmatprep.subr.bf16.mxu0 %v10349_v62  ;;  %6134 = vmatprep.subr.bf16.mxu1 %v10352_v63  ;;  %v614_v61 = vld [vmem:[%s11296_s2 + $0x1b8] sm:$0xff] }
 0x309   : > { %5181 = vmatprep.mubr.bf16.mxu0 %v8062_v0  ;;  %6085 = vmatprep.mubr.bf16.mxu1 %v8062_v0  ;;  %v622_v62 = vld [vmem:[%s11296_s2 + $0x1f8] sm:$0xff] }
 0x30a   : > { %v10402_v63 = vld [vmem:[#allocation13 + $0x18] sm:$0xff]  }
 0x30b   : > { %5231 = vmatpush1.bf16.msra.mxu0 %v10347_v1  ;;  %6135 = vmatpush1.bf16.msra.mxu1 %v10350_v2  ;;  %v10404_v0 = vld [vmem:[#allocation13 + $0x98] sm:$0xff]   ;;  %v10405_v1 = vld [vmem:[#allocation13 + $0x60] sm:$0xff]  }
 0x30c   : > { %5232 = vmatprep.subr.bf16.mxu0 %v10355_v3  ;;  %6136 = vmatprep.subr.bf16.mxu1 %v10358_v4  ;;  %v10407_v2 = vld [vmem:[#allocation13 + $0xe0] sm:$0xff]   ;;  %v8015_v3 = vcombine.low %v598_v49, %v606_v50  ;;  %v8032_v4 = vcombine.high %v614_v61, %v622_v62 }
 0x30e   : > { %5182 = vmatmul.mubr.bf16.gmra.mrb[20].mxu0 %v8061_v5  ;;  %6086 = vmatmul.mubr.bf16.gmra.mrb[20].mxu1 %v8061_v5  ;;  %v10406_v5 = vld [vmem:[#allocation13 + $0x20] sm:$0xff]  }
 0x30f   : > { %5233 = vmatpush1.bf16.msra.mxu0 %v10353_v8  ;;  %6137 = vmatpush1.bf16.msra.mxu1 %v10356_v9  ;;  %v10411_v8 = vld [vmem:[#allocation13 + $0xe8] sm:$0xff]   ;;  %v630_v9 = vld [vmem:[%s11296_s2 + $0x238] sm:$0xff] }
 0x310   : > { %5234 = vmatprep.subr.bf16.mxu0 %v10361_v10  ;;  %6138 = vmatprep.subr.bf16.mxu1 %v10364_v11  ;;  %v638_v10 = vld [vmem:[%s11296_s2 + $0x278] sm:$0xff]  ;;  %v10410_v11 = vld [vmem:[#allocation13 + $0x28] sm:$0xff]  }
 0x311   : > { %5191 = vmatprep.mubr.bf16.mxu0 %v8078_v12  ;;  %6095 = vmatprep.mubr.bf16.mxu1 %v8078_v12  ;;  %v10412_v12 = vld [vmem:[#allocation13 + $0xa8] sm:$0xff]  }
 0x313   : > { %5235 = vmatpush1.bf16.msra.mxu0 %v10359_v13  ;;  %6139 = vmatpush1.bf16.msra.mxu1 %v10362_v14  ;;  %v10413_v13 = vld [vmem:[#allocation13 + $0x70] sm:$0xff]  }
 0x314   : > { %5236 = vmatprep.subr.bf16.mxu0 %v10367_v15  ;;  %6140 = vmatprep.subr.bf16.mxu1 %v10370_v16  ;;  %v10415_v14 = vld [vmem:[#allocation13 + $0xf0] sm:$0xff]   ;;  %v8031_v15 = vcombine.low %v614_v61, %v622_v62  ;;  %v8048_v16 = vcombine.high %v630_v9, %v638_v10 }
 0x316   : > { %5192 = vmatmul.mubr.bf16.gmra.mrb[24].mxu0 %v8077_v17  ;;  %6096 = vmatmul.mubr.bf16.gmra.mrb[24].mxu1 %v8077_v17  ;;  %v10414_v17 = vld [vmem:[#allocation13 + $0x30] sm:$0xff]  }
 0x317   : > { %5237 = vmatpush1.bf16.msra.mxu0 %v10365_v20  ;;  %6141 = vmatpush1.bf16.msra.mxu1 %v10368_v21  ;;  %v654_v20 = vld [vmem:[%s11296_s2 + $0x2f8] sm:$0xff]  ;;  %v8047_v21 = vcombine.low %v630_v9, %v638_v10 }
 0x318   : > { %5238 = vmatprep.subr.bf16.mxu0 %v10373_v22  ;;  %6142 = vmatprep.subr.bf16.mxu1 %v10376_v23  ;;  %v8064_v22 = vcombine.high %v646_v19, %v654_v20  ;;  %v662_v23 = vld [vmem:[%s11296_s2 + $0x338] sm:$0xff] }
 0x319   : > { %5201 = vmatprep.mubr.bf16.mxu0 %v8094_v24  ;;  %6105 = vmatprep.mubr.bf16.mxu1 %v8094_v24  ;;  %v670_v24 = vld [vmem:[%s11296_s2 + $0x378] sm:$0xff] }
 0x31b   : > { %5239 = vmatpush1.bf16.msra.mxu0 %v10371_v25  ;;  %6143 = vmatpush1.bf16.msra.mxu1 %v10374_v26  ;;  %v8063_v25 = vcombine.low %v646_v19, %v654_v20  ;;  %v8080_v26 = vcombine.high %v662_v23, %v670_v24 }
 0x31c   : > { %5240 = vmatprep.subr.bf16.mxu0 %v10379_v27  ;;  %6144 = vmatprep.subr.bf16.mxu1 %v10382_v28  ;;  %v678_v27 = vld [vmem:[%s11296_s2 + $0x3b8] sm:$0xff] }
 0x31d   : > { %v686_v28 = vld [vmem:[%s11296_s2 + $0x3f8] sm:$0xff] }
 0x31e   : > { %5202 = vmatmul.mubr.bf16.gmra.mrb[28].mxu0 %v8093_v29  ;;  %6106 = vmatmul.mubr.bf16.gmra.mrb[28].mxu1 %v8093_v29  ;;  %v8079_v29 = vcombine.low %v662_v23, %v670_v24  ;;  %v8096_v30 = vcombine.high %v678_v27, %v686_v28  ;;  %v8095_v31 = vcombine.low %v678_v27, %v686_v28 }
 0x31f   : > { %5241 = vmatpush1.bf16.msra.mxu0 %v10377_v32  ;;  %6145 = vmatpush1.bf16.msra.mxu1 %v10380_v33  ;;  %v10417_v32 = vld [vmem:[#allocation13 + $0x78] sm:$0xff]  }
 0x320   : > { %5242 = vmatprep.subr.bf16.mxu0 %v10385_v34  ;;  %6146 = vmatprep.subr.bf16.mxu1 %v10388_v35  ;;  %v10419_v33 = vld [vmem:[#allocation13 + $0xf8] sm:$0xff]  }
 0x321   : > { %5244 = vmatprep.mubr.bf16.mxu0 %v7984_v36  ;;  %6148 = vmatprep.mubr.bf16.mxu1 %v7984_v36  ;;  %v10418_v34 = vld [vmem:[#allocation13 + $0x38] sm:$0xff]   ;;  %v1201_v36 = vlaneseq }
 0x322   : > { %v10420_v35 = vld [vmem:[#allocation13 + $0xb8] sm:$0xff]  }
 0x323   : > { %5243 = vmatpush1.bf16.msra.mxu0 %v10383_v37  ;;  %6147 = vmatpush1.bf16.msra.mxu1 %v10386_v38  ;;  %v11453_v37 = vshrl.u32 %v1201_v36, 7 }
 0x324   : > { %8692 = vmatprep.subr.bf16.mxu0 %v10389_v41  ;;  %8756 = vmatprep.subr.bf16.mxu1 %v10391_v42 }
 0x325   : > { %v11456_v38 = vsub.s32 0, %v11453_v37  ;;  %v1211_v39 = vsub.s32 2, %v11453_v37  ;;  %v1207_v41 = vsub.s32 1, %v11453_v37  ;;  %v1215_v42 = vsub.s32 3, %v11453_v37 }
 0x326   : > { %5245 = vmatmul.mubr.bf16.vlgmr.msra.gmra.mrb[0].mxu0 %v7983_v43  ;;  %6149 = vmatmul.mubr.bf16.vlgmr.msra.gmra.mrb[0].mxu1 %v7983_v43 }
 0x327   : > { %5254 = vmatprep.mubr.bf16.mxu0 %v8000_v44  ;;  %6158 = vmatprep.mubr.bf16.mxu1 %v8000_v44  ;;  %v11462_v43 = vrot.slane %v1199_v40, %v11456_v38  ;;  %v11466_v44 = vrot.slane %v1199_v40, %v1211_v39 }
 0x328   : > { %8693 = vmatpush3.bf16.msra.mxu0 %v10390_v45  ;;  %8757 = vmatpush3.bf16.msra.mxu1 %v10392_v46  ;;  %v11470_v45 = vrot.slane %v1199_v40, %v1207_v41  ;;  %v11474_v46 = vrot.slane %v1199_v40, %v1215_v42 }
 0x329   : > { %8694 = vmatprep.subr.bf16.mxu0 %v10393_v47  ;;  %8758 = vmatprep.subr.bf16.mxu1 %v10395_v48 }
 0x32c   : > { %8695 = vmatpush3.bf16.msra.mxu0 %v10394_v51  ;;  %8759 = vmatpush3.bf16.msra.mxu1 %v10396_v52 }
 0x32d   : > { %8696 = vmatprep.subr.bf16.mxu0 %v10397_v53  ;;  %8760 = vmatprep.subr.bf16.mxu1 %v10399_v54 }
 0x32e   : > { %5255 = vmatmul.mubr.bf16.gmra.mrb[4].mxu0 %v7999_v55  ;;  %6159 = vmatmul.mubr.bf16.gmra.mrb[4].mxu1 %v7999_v55 }
 0x32f   : > { %5264 = vmatprep.mubr.bf16.mxu0 %v8016_v56  ;;  %6168 = vmatprep.mubr.bf16.mxu1 %v8016_v56 }
 0x330   : > { %8697 = vmatpush3.bf16.msra.mxu0 %v10398_v57  ;;  %8761 = vmatpush3.bf16.msra.mxu1 %v10400_v58 }
 0x331   : > { %8698 = vmatprep.subr.bf16.mxu0 %v10401_v59  ;;  %8762 = vmatprep.subr.bf16.mxu1 %v10403_v60 }
 0x334   : > { %8699 = vmatpush3.bf16.msra.mxu0 %v10402_v63  ;;  %8763 = vmatpush3.bf16.msra.mxu1 %v10404_v0 }
 0x335   : > { %8700 = vmatprep.subr.bf16.mxu0 %v10405_v1  ;;  %8764 = vmatprep.subr.bf16.mxu1 %v10407_v2 }
 0x336   : > { %5265 = vmatmul.mubr.bf16.gmra.mrb[8].mxu0 %v8015_v3  ;;  %6169 = vmatmul.mubr.bf16.gmra.mrb[8].mxu1 %v8015_v3 }
 0x337   : > { %5274 = vmatprep.mubr.bf16.mxu0 %v8032_v4  ;;  %6178 = vmatprep.mubr.bf16.mxu1 %v8032_v4 }
 0x338   : > { %8701 = vmatpush3.bf16.msra.mxu0 %v10406_v5  ;;  %8765 = vmatpush3.bf16.msra.mxu1 %v10408_v6 }
 0x339   : > { %8702 = vmatprep.subr.bf16.mxu0 %v10409_v7  ;;  %8766 = vmatprep.subr.bf16.mxu1 %v10411_v8 }
 0x33c   : > { %8703 = vmatpush3.bf16.msra.mxu0 %v10410_v11  ;;  %8767 = vmatpush3.bf16.msra.mxu1 %v10412_v12 }
 0x33d   : > { %8704 = vmatprep.subr.bf16.mxu0 %v10413_v13  ;;  %8768 = vmatprep.subr.bf16.mxu1 %v10415_v14 }
 0x33e   : > { %5275 = vmatmul.mubr.bf16.gmra.mrb[12].mxu0 %v8031_v15  ;;  %6179 = vmatmul.mubr.bf16.gmra.mrb[12].mxu1 %v8031_v15 }
 0x33f   : > { %5284 = vmatprep.mubr.bf16.mxu0 %v8048_v16  ;;  %6188 = vmatprep.mubr.bf16.mxu1 %v8048_v16 }
 0x340   : > { %8705 = vmatpush3.bf16.msra.mxu0 %v10414_v17  ;;  %8769 = vmatpush3.bf16.msra.mxu1 %v10416_v18 }
 0x341   : > { %8706 = vmatprep.subr.bf16.mxu0 %v10417_v32  ;;  %8770 = vmatprep.subr.bf16.mxu1 %v10419_v33 }
 0x344   : > { %8707 = vmatpush3.bf16.msra.mxu0 %v10418_v34  ;;  %8771 = vmatpush3.bf16.msra.mxu1 %v10420_v35 }
 0x346   : > { %5285 = vmatmul.mubr.bf16.gmra.mrb[16].mxu0 %v8047_v21  ;;  %6189 = vmatmul.mubr.bf16.gmra.mrb[16].mxu1 %v8047_v21 }
 0x347   : > { %5294 = vmatprep.mubr.bf16.mxu0 %v8064_v22  ;;  %6198 = vmatprep.mubr.bf16.mxu1 %v8064_v22 }
 0x34e   : > { %5295 = vmatmul.mubr.bf16.gmra.mrb[20].mxu0 %v8063_v25  ;;  %6199 = vmatmul.mubr.bf16.gmra.mrb[20].mxu1 %v8063_v25 }
 0x34f   : > { %5304 = vmatprep.mubr.bf16.mxu0 %v8080_v26  ;;  %6208 = vmatprep.mubr.bf16.mxu1 %v8080_v26 }
 0x356   : > { %5305 = vmatmul.mubr.bf16.gmra.mrb[24].mxu0 %v8079_v29  ;;  %6209 = vmatmul.mubr.bf16.gmra.mrb[24].mxu1 %v8079_v29 }
 0x357   : > { %5314 = vmatprep.mubr.bf16.mxu0 %v8096_v30  ;;  %6218 = vmatprep.mubr.bf16.mxu1 %v8096_v30 }
 0x35e   : > { %5315 = vmatmul.mubr.bf16.gmra.mrb[28].mxu0 %v8095_v31  ;;  %6219 = vmatmul.mubr.bf16.gmra.mrb[28].mxu1 %v8095_v31 }
 0x3f9   : > { %v5246_v47 = vpop.f32.mrb[0].mxu0  ;;  %v6150_v48 = vpop.f32.mrb[0].mxu1 }
 0x3fa   : > { %v8957_v49 = vadd.f32 %v5246_v47, %v11462_v43  ;;  %v8989_v50 = vadd.f32 %v6150_v48, %v11466_v44  ;;  %v5248_v51 = vpop.f32.mrb[1].mxu0  ;;  %v6152_v52 = vpop.f32.mrb[1].mxu1 }
 0x3fb   : > { %v8958_v53 = vadd.f32 %v5248_v51, %v11470_v45  ;;  %v8990_v54 = vadd.f32 %v6152_v52, %v11474_v46  ;;  %v5250_v55 = vpop.f32.mrb[2].mxu0  ;;  %v6154_v56 = vpop.f32.mrb[2].mxu1 }
 0x3fc   : > { %v8959_v57 = vadd.f32 %v5250_v55, %v11462_v43  ;;  %v8991_v58 = vadd.f32 %v6154_v56, %v11466_v44  ;;  %v5252_v59 = vpop.f32.mrb[3].mxu0  ;;  %v6156_v60 = vpop.f32.mrb[3].mxu1  ;;  %v6229_v63 = vmax.f32 %v8957_v49, 0.0  ;;  %v6231_v0 = vmax.f32 %v8989_v50, 0.0 }
 0x3fd   : > { %v8960_v61 = vadd.f32 %v5252_v59, %v11470_v45  ;;  %v8992_v62 = vadd.f32 %v6156_v60, %v11474_v46  ;;  %v6230_v3 = vmax.f32 %v8958_v53, 0.0  ;;  %v6232_v4 = vmax.f32 %v8990_v54, 0.0 }
 0x3fe   : > { %v6233_v1 = vmax.f32 %v8959_v57, 0.0  ;;  %v6235_v2 = vmax.f32 %v8991_v58, 0.0 }
 0x3ff   : > { %v6234_v5 = vmax.f32 %v8960_v61, 0.0  ;;  %v6236_v6 = vmax.f32 %v8992_v62, 0.0 }
 0x400   : > { %v6293_v7 = vpack.c.bf16 %v6233_v1, %v6229_v63  ;;  %v6295_v8 = vpack.c.bf16 %v6235_v2, %v6231_v0 }
 0x401   : > { %v6294_v9 = vpack.c.bf16 %v6234_v5, %v6230_v3  ;;  %v6296_v10 = vpack.c.bf16 %v6236_v6, %v6232_v4  ;;  %v5256_v11 = vpop.f32.mrb[4].mxu0  ;;  %v6160_v12 = vpop.f32.mrb[4].mxu1 }
 0x402   : > { %v8961_v13 = vadd.f32 %v5256_v11, %v11462_v43  ;;  %v8993_v14 = vadd.f32 %v6160_v12, %v11466_v44  ;;  %v5258_v15 = vpop.f32.mrb[5].mxu0  ;;  %v6162_v16 = vpop.f32.mrb[5].mxu1 }
 0x403   : > { %v8962_v17 = vadd.f32 %v5258_v15, %v11470_v45  ;;  %v8994_v18 = vadd.f32 %v6162_v16, %v11474_v46  ;;  %v5260_v19 = vpop.f32.mrb[6].mxu0  ;;  %v6164_v20 = vpop.f32.mrb[6].mxu1  ;;  %6620 = vmatprep.mubr.bf16.mxu0 %v6294_v9  ;;  %6717 = vmatprep.mubr.bf16.mxu1 %v6296_v10 }
 0x404   : > { %v8963_v21 = vadd.f32 %v5260_v19, %v11462_v43  ;;  %v8995_v22 = vadd.f32 %v6164_v20, %v11466_v44  ;;  %8894 = vmatprep.subr.bf16.mxu0 %v6294_v9  ;;  %8926 = vmatprep.subr.bf16.mxu1 %v6296_v10  ;;  %v5262_v23 = vpop.f32.mrb[7].mxu0  ;;  %v6166_v24 = vpop.f32.mrb[7].mxu1  ;;  %v6237_v27 = vmax.f32 %v8961_v13, 0.0  ;;  %v6239_v28 = vmax.f32 %v8993_v14, 0.0 }
 0x405   : > { %v8964_v25 = vadd.f32 %v5262_v23, %v11470_v45  ;;  %v8996_v26 = vadd.f32 %v6166_v24, %v11474_v46  ;;  %6621 = vmatmul.mubr.bf16.vlgmr.msra.gmra.mrb[32].mxu0 %v6293_v7  ;;  %6718 = vmatmul.mubr.bf16.vlgmr.msra.gmra.mrb[32].mxu1 %v6295_v8  ;;  %v6238_v31 = vmax.f32 %v8962_v17, 0.0  ;;  %v6240_v32 = vmax.f32 %v8994_v18, 0.0 }
 0x406   : > { %v6241_v29 = vmax.f32 %v8963_v21, 0.0  ;;  %v6243_v30 = vmax.f32 %v8995_v22, 0.0  ;;  %8896 = vmatpush1.bf16.msra.mxu0 %v6293_v7  ;;  %8928 = vmatpush1.bf16.msra.mxu1 %v6295_v8 }
 0x407   : > { %v6242_v33 = vmax.f32 %v8964_v25, 0.0  ;;  %v6244_v34 = vmax.f32 %v8996_v26, 0.0 }
 0x408   : > { %v6297_v35 = vpack.c.bf16 %v6241_v29, %v6237_v27  ;;  %v6299_v40 = vpack.c.bf16 %v6243_v30, %v6239_v28 }
 0x409   : > { %v6298_v47 = vpack.c.bf16 %v6242_v33, %v6238_v31  ;;  %v6300_v48 = vpack.c.bf16 %v6244_v34, %v6240_v32  ;;  %v5266_v49 = vpop.f32.mrb[8].mxu0  ;;  %v6170_v50 = vpop.f32.mrb[8].mxu1 }
 0x40a   : > { %v8965_v51 = vadd.f32 %v5266_v49, %v11462_v43  ;;  %v8997_v52 = vadd.f32 %v6170_v50, %v11466_v44  ;;  %v5268_v53 = vpop.f32.mrb[9].mxu0  ;;  %v6172_v54 = vpop.f32.mrb[9].mxu1 }
 0x40b   : > { %v8966_v55 = vadd.f32 %v5268_v53, %v11470_v45  ;;  %v8998_v56 = vadd.f32 %v6172_v54, %v11474_v46  ;;  %v5270_v57 = vpop.f32.mrb[10].mxu0  ;;  %v6174_v58 = vpop.f32.mrb[10].mxu1  ;;  %6628 = vmatprep.mubr.bf16.mxu0 %v6298_v47  ;;  %6725 = vmatprep.mubr.bf16.mxu1 %v6300_v48 }
 0x40c   : > { %v8967_v59 = vadd.f32 %v5270_v57, %v11462_v43  ;;  %v8999_v60 = vadd.f32 %v6174_v58, %v11466_v44  ;;  %8898 = vmatprep.subr.bf16.mxu0 %v6298_v47  ;;  %8930 = vmatprep.subr.bf16.mxu1 %v6300_v48  ;;  %v5272_v61 = vpop.f32.mrb[11].mxu0  ;;  %v6176_v62 = vpop.f32.mrb[11].mxu1  ;;  %v6245_v1 = vmax.f32 %v8965_v51, 0.0  ;;  %v6247_v2 = vmax.f32 %v8997_v52, 0.0 }
 0x40d   : > { %v8968_v63 = vadd.f32 %v5272_v61, %v11470_v45  ;;  %v9000_v0 = vadd.f32 %v6176_v62, %v11474_v46  ;;  %6629 = vmatmul.mubr.bf16.gmra.mrb[36].mxu0 %v6297_v35  ;;  %6726 = vmatmul.mubr.bf16.gmra.mrb[36].mxu1 %v6299_v40  ;;  %v6246_v5 = vmax.f32 %v8966_v55, 0.0  ;;  %v6248_v6 = vmax.f32 %v8998_v56, 0.0 }
 0x40e   : > { %v6249_v3 = vmax.f32 %v8967_v59, 0.0  ;;  %v6251_v4 = vmax.f32 %v8999_v60, 0.0  ;;  %8900 = vmatpush1.bf16.msra.mxu0 %v6297_v35  ;;  %8932 = vmatpush1.bf16.msra.mxu1 %v6299_v40 }
 0x40f   : > { %v6250_v7 = vmax.f32 %v8968_v63, 0.0  ;;  %v6252_v8 = vmax.f32 %v9000_v0, 0.0 }
 0x410   : > { %v6301_v9 = vpack.c.bf16 %v6249_v3, %v6245_v1  ;;  %v6303_v10 = vpack.c.bf16 %v6251_v4, %v6247_v2 }
 0x411   : > { %v6302_v11 = vpack.c.bf16 %v6250_v7, %v6246_v5  ;;  %v6304_v12 = vpack.c.bf16 %v6252_v8, %v6248_v6  ;;  %v5276_v13 = vpop.f32.mrb[12].mxu0  ;;  %v6180_v14 = vpop.f32.mrb[12].mxu1 }
 0x412   : > { %v8969_v15 = vadd.f32 %v5276_v13, %v11462_v43  ;;  %v9001_v16 = vadd.f32 %v6180_v14, %v11466_v44  ;;  %v5278_v17 = vpop.f32.mrb[13].mxu0  ;;  %v6182_v18 = vpop.f32.mrb[13].mxu1 }
 0x413   : > { %v8970_v19 = vadd.f32 %v5278_v17, %v11470_v45  ;;  %v9002_v20 = vadd.f32 %v6182_v18, %v11474_v46  ;;  %v5280_v21 = vpop.f32.mrb[14].mxu0  ;;  %v6184_v22 = vpop.f32.mrb[14].mxu1  ;;  %6636 = vmatprep.mubr.bf16.mxu0 %v6302_v11  ;;  %6733 = vmatprep.mubr.bf16.mxu1 %v6304_v12 }
 0x414   : > { %v8971_v23 = vadd.f32 %v5280_v21, %v11462_v43  ;;  %v9003_v24 = vadd.f32 %v6184_v22, %v11466_v44  ;;  %8902 = vmatprep.subr.bf16.mxu0 %v6302_v11  ;;  %8934 = vmatprep.subr.bf16.mxu1 %v6304_v12  ;;  %v5282_v25 = vpop.f32.mrb[15].mxu0  ;;  %v6186_v26 = vpop.f32.mrb[15].mxu1  ;;  %v6253_v29 = vmax.f32 %v8969_v15, 0.0  ;;  %v6255_v30 = vmax.f32 %v9001_v16, 0.0 }
 0x415   : > { %v8972_v27 = vadd.f32 %v5282_v25, %v11470_v45  ;;  %v9004_v28 = vadd.f32 %v6186_v26, %v11474_v46  ;;  %6637 = vmatmul.mubr.bf16.gmra.mrb[40].mxu0 %v6301_v9  ;;  %6734 = vmatmul.mubr.bf16.gmra.mrb[40].mxu1 %v6303_v10  ;;  %v6254_v33 = vmax.f32 %v8970_v19, 0.0  ;;  %v6256_v34 = vmax.f32 %v9002_v20, 0.0 }
 0x416   : > { %v6257_v31 = vmax.f32 %v8971_v23, 0.0  ;;  %v6259_v32 = vmax.f32 %v9003_v24, 0.0  ;;  %8904 = vmatpush1.bf16.msra.mxu0 %v6301_v9  ;;  %8936 = vmatpush1.bf16.msra.mxu1 %v6303_v10 }
 0x417   : > { %v6258_v35 = vmax.f32 %v8972_v27, 0.0  ;;  %v6260_v40 = vmax.f32 %v9004_v28, 0.0 }
 0x418   : > { %v6305_v47 = vpack.c.bf16 %v6257_v31, %v6253_v29  ;;  %v6307_v48 = vpack.c.bf16 %v6259_v32, %v6255_v30 }
 0x419   : > { %v6306_v49 = vpack.c.bf16 %v6258_v35, %v6254_v33  ;;  %v6308_v50 = vpack.c.bf16 %v6260_v40, %v6256_v34  ;;  %v5286_v51 = vpop.f32.mrb[16].mxu0  ;;  %v6190_v52 = vpop.f32.mrb[16].mxu1 }
 0x41a   : > { %v8973_v53 = vadd.f32 %v5286_v51, %v11462_v43  ;;  %v9005_v54 = vadd.f32 %v6190_v52, %v11466_v44  ;;  %v5288_v55 = vpop.f32.mrb[17].mxu0  ;;  %v6192_v56 = vpop.f32.mrb[17].mxu1 }
 0x41b   : > { %v8974_v57 = vadd.f32 %v5288_v55, %v11470_v45  ;;  %v9006_v58 = vadd.f32 %v6192_v56, %v11474_v46  ;;  %v5290_v59 = vpop.f32.mrb[18].mxu0  ;;  %v6194_v60 = vpop.f32.mrb[18].mxu1  ;;  %6644 = vmatprep.mubr.bf16.mxu0 %v6306_v49  ;;  %6741 = vmatprep.mubr.bf16.mxu1 %v6308_v50 }
 0x41c   : > { %v8975_v61 = vadd.f32 %v5290_v59, %v11462_v43  ;;  %v9007_v62 = vadd.f32 %v6194_v60, %v11466_v44  ;;  %8906 = vmatprep.subr.bf16.mxu0 %v6306_v49  ;;  %8938 = vmatprep.subr.bf16.mxu1 %v6308_v50  ;;  %v5292_v63 = vpop.f32.mrb[19].mxu0  ;;  %v6196_v0 = vpop.f32.mrb[19].mxu1  ;;  %v6261_v3 = vmax.f32 %v8973_v53, 0.0  ;;  %v6263_v4 = vmax.f32 %v9005_v54, 0.0 }
 0x41d   : > { %v8976_v1 = vadd.f32 %v5292_v63, %v11470_v45  ;;  %v9008_v2 = vadd.f32 %v6196_v0, %v11474_v46  ;;  %6645 = vmatmul.mubr.bf16.gmra.mrb[44].mxu0 %v6305_v47  ;;  %6742 = vmatmul.mubr.bf16.gmra.mrb[44].mxu1 %v6307_v48  ;;  %v6262_v7 = vmax.f32 %v8974_v57, 0.0  ;;  %v6264_v8 = vmax.f32 %v9006_v58, 0.0 }
 0x41e   : > { %v6265_v5 = vmax.f32 %v8975_v61, 0.0  ;;  %v6267_v6 = vmax.f32 %v9007_v62, 0.0  ;;  %8908 = vmatpush1.bf16.msra.mxu0 %v6305_v47  ;;  %8940 = vmatpush1.bf16.msra.mxu1 %v6307_v48 }
 0x41f   : > { %v6266_v9 = vmax.f32 %v8976_v1, 0.0  ;;  %v6268_v10 = vmax.f32 %v9008_v2, 0.0 }
 0x420   : > { %v6309_v11 = vpack.c.bf16 %v6265_v5, %v6261_v3  ;;  %v6311_v12 = vpack.c.bf16 %v6267_v6, %v6263_v4 }
 0x421   : > { %v6310_v13 = vpack.c.bf16 %v6266_v9, %v6262_v7  ;;  %v6312_v14 = vpack.c.bf16 %v6268_v10, %v6264_v8  ;;  %v5296_v15 = vpop.f32.mrb[20].mxu0  ;;  %v6200_v16 = vpop.f32.mrb[20].mxu1 }
 0x422   : > { %v8977_v17 = vadd.f32 %v5296_v15, %v11462_v43  ;;  %v9009_v18 = vadd.f32 %v6200_v16, %v11466_v44  ;;  %v5298_v19 = vpop.f32.mrb[21].mxu0  ;;  %v6202_v20 = vpop.f32.mrb[21].mxu1 }
 0x423   : > { %v8978_v21 = vadd.f32 %v5298_v19, %v11470_v45  ;;  %v9010_v22 = vadd.f32 %v6202_v20, %v11474_v46  ;;  %v5300_v23 = vpop.f32.mrb[22].mxu0  ;;  %v6204_v24 = vpop.f32.mrb[22].mxu1  ;;  %6652 = vmatprep.mubr.bf16.mxu0 %v6310_v13  ;;  %6749 = vmatprep.mubr.bf16.mxu1 %v6312_v14 }
 0x424   : > { %v8979_v25 = vadd.f32 %v5300_v23, %v11462_v43  ;;  %v9011_v26 = vadd.f32 %v6204_v24, %v11466_v44  ;;  %8910 = vmatprep.subr.bf16.mxu0 %v6310_v13  ;;  %8942 = vmatprep.subr.bf16.mxu1 %v6312_v14  ;;  %v5302_v27 = vpop.f32.mrb[23].mxu0  ;;  %v6206_v28 = vpop.f32.mrb[23].mxu1  ;;  %v6269_v31 = vmax.f32 %v8977_v17, 0.0  ;;  %v6271_v32 = vmax.f32 %v9009_v18, 0.0 }
 0x425   : > { %v8980_v29 = vadd.f32 %v5302_v27, %v11470_v45  ;;  %v9012_v30 = vadd.f32 %v6206_v28, %v11474_v46  ;;  %6653 = vmatmul.mubr.bf16.gmra.mrb[48].mxu0 %v6309_v11  ;;  %6750 = vmatmul.mubr.bf16.gmra.mrb[48].mxu1 %v6311_v12  ;;  %v6270_v35 = vmax.f32 %v8978_v21, 0.0  ;;  %v6272_v40 = vmax.f32 %v9010_v22, 0.0 }
 0x426   : > { %v6273_v33 = vmax.f32 %v8979_v25, 0.0  ;;  %v6275_v34 = vmax.f32 %v9011_v26, 0.0  ;;  %8912 = vmatpush1.bf16.msra.mxu0 %v6309_v11  ;;  %8944 = vmatpush1.bf16.msra.mxu1 %v6311_v12 }
 0x427   : > { %v6274_v47 = vmax.f32 %v8980_v29, 0.0  ;;  %v6276_v48 = vmax.f32 %v9012_v30, 0.0 }
 0x428   : > { %v6313_v49 = vpack.c.bf16 %v6273_v33, %v6269_v31  ;;  %v6315_v50 = vpack.c.bf16 %v6275_v34, %v6271_v32 }
 0x429   : > { %v6314_v51 = vpack.c.bf16 %v6274_v47, %v6270_v35  ;;  %v6316_v52 = vpack.c.bf16 %v6276_v48, %v6272_v40  ;;  %v5306_v53 = vpop.f32.mrb[24].mxu0  ;;  %v6210_v54 = vpop.f32.mrb[24].mxu1 }
 0x42a   : > { %v8981_v55 = vadd.f32 %v5306_v53, %v11462_v43  ;;  %v9013_v56 = vadd.f32 %v6210_v54, %v11466_v44  ;;  %v5308_v57 = vpop.f32.mrb[25].mxu0  ;;  %v6212_v58 = vpop.f32.mrb[25].mxu1  ;;  %v11540_v53 = vld [vmem:[#allocation15] ss:$0 sm:$0xff] }
 0x42b   : > { %v8982_v59 = vadd.f32 %v5308_v57, %v11470_v45  ;;  %v9014_v60 = vadd.f32 %v6212_v58, %v11474_v46  ;;  %v5310_v61 = vpop.f32.mrb[26].mxu0  ;;  %v6214_v62 = vpop.f32.mrb[26].mxu1  ;;  %6660 = vmatprep.mubr.bf16.mxu0 %v6314_v51  ;;  %6757 = vmatprep.mubr.bf16.mxu1 %v6316_v52 }
 0x42c   : > { %v8983_v63 = vadd.f32 %v5310_v61, %v11462_v43  ;;  %v9015_v0 = vadd.f32 %v6214_v62, %v11466_v44  ;;  %8914 = vmatprep.subr.bf16.mxu0 %v6314_v51  ;;  %8946 = vmatprep.subr.bf16.mxu1 %v6316_v52  ;;  %v5312_v1 = vpop.f32.mrb[27].mxu0  ;;  %v6216_v2 = vpop.f32.mrb[27].mxu1  ;;  %v6277_v5 = vmax.f32 %v8981_v55, 0.0  ;;  %v6279_v6 = vmax.f32 %v9013_v56, 0.0 }
 0x42d   : > { %v8984_v3 = vadd.f32 %v5312_v1, %v11470_v45  ;;  %v9016_v4 = vadd.f32 %v6216_v2, %v11474_v46  ;;  %6661 = vmatmul.mubr.bf16.gmra.mrb[52].mxu0 %v6313_v49  ;;  %6758 = vmatmul.mubr.bf16.gmra.mrb[52].mxu1 %v6315_v50  ;;  %v6278_v9 = vmax.f32 %v8982_v59, 0.0  ;;  %v6280_v10 = vmax.f32 %v9014_v60, 0.0 }
 0x42e   : > { %v6281_v7 = vmax.f32 %v8983_v63, 0.0  ;;  %v6283_v8 = vmax.f32 %v9015_v0, 0.0  ;;  %8916 = vmatpush1.bf16.msra.mxu0 %v6313_v49  ;;  %8948 = vmatpush1.bf16.msra.mxu1 %v6315_v50 }
 0x42f   : > { %v6282_v11 = vmax.f32 %v8984_v3, 0.0  ;;  %v6284_v12 = vmax.f32 %v9016_v4, 0.0 }
 0x430   : > { %v6317_v13 = vpack.c.bf16 %v6281_v7, %v6277_v5  ;;  %v6319_v14 = vpack.c.bf16 %v6283_v8, %v6279_v6 }
 0x431   : > { %v6318_v15 = vpack.c.bf16 %v6282_v11, %v6278_v9  ;;  %v6320_v16 = vpack.c.bf16 %v6284_v12, %v6280_v10  ;;  %v5316_v17 = vpop.f32.mrb[28].mxu0  ;;  %v6220_v18 = vpop.f32.mrb[28].mxu1 }
 0x432   : > { %v8985_v19 = vadd.f32 %v5316_v17, %v11462_v43  ;;  %v9017_v20 = vadd.f32 %v6220_v18, %v11466_v44  ;;  %v5318_v21 = vpop.f32.mrb[29].mxu0  ;;  %v6222_v22 = vpop.f32.mrb[29].mxu1 }
 0x433   : > { %v8986_v23 = vadd.f32 %v5318_v21, %v11470_v45  ;;  %v9018_v24 = vadd.f32 %v6222_v22, %v11474_v46  ;;  %v5320_v25 = vpop.f32.mrb[30].mxu0  ;;  %v6224_v26 = vpop.f32.mrb[30].mxu1  ;;  %6668 = vmatprep.mubr.bf16.mxu0 %v6318_v15  ;;  %6765 = vmatprep.mubr.bf16.mxu1 %v6320_v16  ;;  %v11546_v22 = vld [vmem:[#allocation16] ss:$0 sm:$0xff] }
 0x434   : > { %v8987_v27 = vadd.f32 %v5320_v25, %v11462_v43  ;;  %v9019_v28 = vadd.f32 %v6224_v26, %v11466_v44  ;;  %8918 = vmatprep.subr.bf16.mxu0 %v6318_v15  ;;  %8950 = vmatprep.subr.bf16.mxu1 %v6320_v16  ;;  %v5322_v29 = vpop.f32.mrb[31].mxu0  ;;  %v6226_v30 = vpop.f32.mrb[31].mxu1  ;;  %v6285_v33 = vmax.f32 %v8985_v19, 0.0  ;;  %v6287_v34 = vmax.f32 %v9017_v20, 0.0 }
 0x435   : > { %v8988_v31 = vadd.f32 %v5322_v29, %v11470_v45  ;;  %v9020_v32 = vadd.f32 %v6226_v30, %v11474_v46  ;;  %6669 = vmatmul.mubr.bf16.gmra.mrb[56].mxu0 %v6317_v13  ;;  %6766 = vmatmul.mubr.bf16.gmra.mrb[56].mxu1 %v6319_v14  ;;  %v6286_v47 = vmax.f32 %v8986_v23, 0.0  ;;  %v6288_v43 = vmax.f32 %v9018_v24, 0.0 }
 0x436   : > { %v6289_v35 = vmax.f32 %v8987_v27, 0.0  ;;  %v6291_v40 = vmax.f32 %v9019_v28, 0.0  ;;  %8920 = vmatpush1.bf16.msra.mxu0 %v6317_v13  ;;  %8952 = vmatpush1.bf16.msra.mxu1 %v6319_v14 }
 0x437   : > { %v6290_v48 = vmax.f32 %v8988_v31, 0.0  ;;  %v6292_v44 = vmax.f32 %v9020_v32, 0.0 }
 0x438   : > { %v6321_v49 = vpack.c.bf16 %v6289_v35, %v6285_v33  ;;  %v6323_v50 = vpack.c.bf16 %v6291_v40, %v6287_v34 }
 0x439   : > { %v6322_v51 = vpack.c.bf16 %v6290_v48, %v6286_v47  ;;  %v6324_v52 = vpack.c.bf16 %v6292_v44, %v6288_v43 }
 0x43b   : > { %6676 = vmatprep.mubr.bf16.mxu0 %v6322_v51  ;;  %6773 = vmatprep.mubr.bf16.mxu1 %v6324_v52 }
 0x43c   : > { %8922 = vmatprep.subr.bf16.mxu0 %v6322_v51  ;;  %8954 = vmatprep.subr.bf16.mxu1 %v6324_v52 }
 0x43d   : > { %6677 = vmatmul.mubr.bf16.gmra.mrb[60].mxu0 %v6321_v49  ;;  %6774 = vmatmul.mubr.bf16.gmra.mrb[60].mxu1 %v6323_v50 }
 0x43e   : > { %8924 = vmatpush1.bf16.msra.mxu0 %v6321_v49  ;;  %8956 = vmatpush1.bf16.msra.mxu1 %v6323_v50 }
 0x4d8   : > { %v8708_v45 = vpop.f32.mrb[32].mxu0  ;;  %v8772_v46 = vpop.f32.mrb[32].mxu1 }
 0x4d9   : > { %v8709_v54 = vpop.f32.mrb[33].mxu0  ;;  %v8773_v55 = vpop.f32.mrb[33].mxu1 }
 0x4da   : > { %v8710_v56 = vadd.f32 %v8709_v54, %v8708_v45  ;;  %v8774_v57 = vadd.f32 %v8773_v55, %v8772_v46  ;;  %v8711_v58 = vpop.f32.mrb[34].mxu0  ;;  %v8775_v59 = vpop.f32.mrb[34].mxu1 }
 0x4db   : > { %v8712_v60 = vpop.f32.mrb[35].mxu0  ;;  %v8776_v61 = vpop.f32.mrb[35].mxu1 }
 0x4dc   : > { %v6623_v62 = vadd.f32 %v8710_v56, %v11540_v53  ;;  %v8713_v63 = vadd.f32 %v8712_v60, %v8711_v58  ;;  %v8777_v0 = vadd.f32 %v8776_v61, %v8775_v59 }
 0x4de   : > { %v6720_v1 = vadd.f32 %v8774_v57, %v6623_v62  ;;  %v6626_v2 = vadd.f32 %v8713_v63, %v11540_v53 }
 0x4e0   : > { %10421 = vtanh.f32 %v6720_v1  ;;  %v6723_v3 = vadd.f32 %v8777_v0, %v6626_v2  ;;  %v8714_v4 = vpop.f32.mrb[36].mxu0  ;;  %v8778_v5 = vpop.f32.mrb[36].mxu1 }
 0x4e1   : > { %v8715_v6 = vpop.f32.mrb[37].mxu0  ;;  %v8779_v7 = vpop.f32.mrb[37].mxu1 }
 0x4e2   : > { %10423 = vtanh.f32 %v6723_v3  ;;  %v8716_v8 = vadd.f32 %v8715_v6, %v8714_v4  ;;  %v8780_v9 = vadd.f32 %v8779_v7, %v8778_v5  ;;  %v8717_v10 = vpop.f32.mrb[38].mxu0  ;;  %v8781_v11 = vpop.f32.mrb[38].mxu1 }
 0x4e3   : > { %v8718_v12 = vpop.f32.mrb[39].mxu0  ;;  %v8782_v13 = vpop.f32.mrb[39].mxu1 }
 0x4e4   : > { %v6631_v14 = vadd.f32 %v8716_v8, %v11540_v53  ;;  %v8719_v15 = vadd.f32 %v8718_v12, %v8717_v10  ;;  %v8783_v16 = vadd.f32 %v8782_v13, %v8781_v11 }
 0x4e6   : > { %v6728_v17 = vadd.f32 %v8780_v9, %v6631_v14  ;;  %v6634_v18 = vadd.f32 %v8719_v15, %v11540_v53 }
 0x4e8   : > { %10425 = vtanh.f32 %v6728_v17  ;;  %v6731_v19 = vadd.f32 %v8783_v16, %v6634_v18  ;;  %v8720_v20 = vpop.f32.mrb[40].mxu0  ;;  %v8784_v21 = vpop.f32.mrb[40].mxu1 }
 0x4e9   : > { %v8721_v23 = vpop.f32.mrb[41].mxu0  ;;  %v8785_v24 = vpop.f32.mrb[41].mxu1 }
 0x4ea   : > { %v10422_v25 = vpop.eup %10421  ;;  %10427 = vtanh.f32 %v6731_v19  ;;  %v8722_v26 = vadd.f32 %v8721_v23, %v8720_v20  ;;  %v8786_v27 = vadd.f32 %v8785_v24, %v8784_v21  ;;  %v8723_v28 = vpop.f32.mrb[42].mxu0 }
 0x4eb   : > { %v8787_v29 = vpop.f32.mrb[42].mxu1  ;;  %v8724_v30 = vpop.f32.mrb[43].mxu0  ;;  %v6805_v32 = vmul.f32 %v10422_v25, %v11546_v22 }
 0x4ec   : > { %v8788_v31 = vpop.f32.mrb[43].mxu1  ;;  %v10424_v33 = vpop.eup %10423  ;;  %v6639_v34 = vadd.f32 %v8722_v26, %v11540_v53  ;;  %v8725_v35 = vadd.f32 %v8724_v30, %v8723_v28 }
 0x4ed   : > { %v8789_v40 = vadd.f32 %v8788_v31, %v8787_v29  ;;  %6821 = vadd.xlane.f32.xlu0 %v6805_v32  ;;  %v6806_v48 = vmul.f32 %v10424_v33, %v11546_v22 }
 0x4ee   : > { %v6736_v47 = vadd.f32 %v8786_v27, %v6639_v34  ;;  %v6642_v43 = vadd.f32 %v8725_v35, %v11540_v53 }
 0x4f0   : > { %10429 = vtanh.f32 %v6736_v47  ;;  %v6739_v44 = vadd.f32 %v8789_v40, %v6642_v43  ;;  %v8726_v49 = vpop.f32.mrb[44].mxu0  ;;  %v8790_v50 = vpop.f32.mrb[44].mxu1 }
 0x4f1   : > { %v8727_v51 = vpop.f32.mrb[45].mxu0  ;;  %v8791_v52 = vpop.f32.mrb[45].mxu1  ;;  %6823 = vadd.xlane.f32.xlu0 %v6806_v48 }
 0x4f2   : > { %v10426_v45 = vpop.eup %10425  ;;  %10431 = vtanh.f32 %v6739_v44  ;;  %v8728_v46 = vadd.f32 %v8727_v51, %v8726_v49  ;;  %v8792_v54 = vadd.f32 %v8791_v52, %v8790_v50  ;;  %v8729_v55 = vpop.f32.mrb[46].mxu0 }
 0x4f3   : > { %v8793_v56 = vpop.f32.mrb[46].mxu1  ;;  %v8730_v57 = vpop.f32.mrb[47].mxu0  ;;  %v6807_v59 = vmul.f32 %v10426_v45, %v11546_v22 }
 0x4f4   : > { %v8794_v58 = vpop.f32.mrb[47].mxu1  ;;  %v10428_v60 = vpop.eup %10427  ;;  %v6647_v61 = vadd.f32 %v8728_v46, %v11540_v53  ;;  %v8731_v62 = vadd.f32 %v8730_v57, %v8729_v55 }
 0x4f5   : > { %v8795_v63 = vadd.f32 %v8794_v58, %v8793_v56  ;;  %6825 = vadd.xlane.f32.xlu1 %v6807_v59  ;;  %v6808_v2 = vmul.f32 %v10428_v60, %v11546_v22 }
 0x4f6   : > { %v6744_v0 = vadd.f32 %v8792_v54, %v6647_v61  ;;  %v6650_v1 = vadd.f32 %v8731_v62, %v11540_v53 }
 0x4f8   : > { %10433 = vtanh.f32 %v6744_v0  ;;  %v6747_v3 = vadd.f32 %v8795_v63, %v6650_v1  ;;  %v8732_v4 = vpop.f32.mrb[48].mxu0  ;;  %v8796_v5 = vpop.f32.mrb[48].mxu1 }
 0x4f9   : > { %v8733_v6 = vpop.f32.mrb[49].mxu0  ;;  %v8797_v7 = vpop.f32.mrb[49].mxu1  ;;  %6827 = vadd.xlane.f32.xlu1 %v6808_v2 }
 0x4fa   : > { %v10430_v8 = vpop.eup %10429  ;;  %10435 = vtanh.f32 %v6747_v3  ;;  %v8734_v9 = vadd.f32 %v8733_v6, %v8732_v4  ;;  %v8798_v10 = vadd.f32 %v8797_v7, %v8796_v5  ;;  %v8735_v11 = vpop.f32.mrb[50].mxu0 }
 0x4fb   : > { %v8799_v12 = vpop.f32.mrb[50].mxu1  ;;  %v8736_v13 = vpop.f32.mrb[51].mxu0  ;;  %v6809_v15 = vmul.f32 %v10430_v8, %v11546_v22 }
 0x4fc   : > { %v8800_v14 = vpop.f32.mrb[51].mxu1  ;;  %v10432_v16 = vpop.eup %10431  ;;  %v6655_v17 = vadd.f32 %v8734_v9, %v11540_v53  ;;  %v8737_v18 = vadd.f32 %v8736_v13, %v8735_v11 }
 0x4fd   : > { %v8801_v19 = vadd.f32 %v8800_v14, %v8799_v12  ;;  %6829 = vadd.xlane.f32.xlu0 %v6809_v15  ;;  %v6810_v20 = vmul.f32 %v10432_v16, %v11546_v22 }
 0x4fe   : > { %v6752_v21 = vadd.f32 %v8798_v10, %v6655_v17  ;;  %v6658_v23 = vadd.f32 %v8737_v18, %v11540_v53 }
 0x4ff   : > { %6831 = vadd.xlane.f32.xlu1 %v6810_v20 }
 0x500   : > { %10437 = vtanh.f32 %v6752_v21  ;;  %v6755_v24 = vadd.f32 %v8801_v19, %v6658_v23  ;;  %v8738_v25 = vpop.f32.mrb[52].mxu0  ;;  %v8802_v26 = vpop.f32.mrb[52].mxu1 }
 0x501   : > { %v8739_v27 = vpop.f32.mrb[53].mxu0  ;;  %v8803_v28 = vpop.f32.mrb[53].mxu1 }
 0x502   : > { %v10434_v29 = vpop.eup %10433  ;;  %10439 = vtanh.f32 %v6755_v24  ;;  %v8740_v30 = vadd.f32 %v8739_v27, %v8738_v25  ;;  %v8804_v31 = vadd.f32 %v8803_v28, %v8802_v26  ;;  %v8741_v32 = vpop.f32.mrb[54].mxu0 }
 0x503   : > { %v8805_v33 = vpop.f32.mrb[54].mxu1  ;;  %v8742_v34 = vpop.f32.mrb[55].mxu0  ;;  %v6811_v40 = vmul.f32 %v10434_v29, %v11546_v22 }
 0x504   : > { %v8806_v35 = vpop.f32.mrb[55].mxu1  ;;  %v10436_v47 = vpop.eup %10435  ;;  %v6663_v43 = vadd.f32 %v8740_v30, %v11540_v53  ;;  %v8743_v48 = vadd.f32 %v8742_v34, %v8741_v32 }
 0x505   : > { %v8807_v44 = vadd.f32 %v8806_v35, %v8805_v33  ;;  %6833 = vadd.xlane.f32.xlu0 %v6811_v40  ;;  %v6812_v49 = vmul.f32 %v10436_v47, %v11546_v22  ;;  %v10919_v40 = vmov 0  }
 0x506   : > { %v6760_v50 = vadd.f32 %v8804_v31, %v6663_v43  ;;  %v6666_v51 = vadd.f32 %v8743_v48, %v11540_v53  ;;  %9619 = vset.pattern.permute.xlu1 %v10919_v40 }
 0x507   : > { %6835 = vadd.xlane.f32.xlu1 %v6812_v49  ;;  %v11578_v49 = vstv %s8644_s12 }
 0x508   : > { %10441 = vtanh.f32 %v6760_v50  ;;  %v6763_v52 = vadd.f32 %v8807_v44, %v6666_v51  ;;  %v8744_v45 = vpop.f32.mrb[56].mxu0  ;;  %v8808_v46 = vpop.f32.mrb[56].mxu1  ;;  %v6879_v50 = vadd.s32 8, %v11453_v37  ;;  %v6880_v51 = vadd.s32 16, %v11453_v37 }
 0x509   : > { %v8745_v54 = vpop.f32.mrb[57].mxu0  ;;  %v8809_v55 = vpop.f32.mrb[57].mxu1 }
 0x50a   : > { %v10438_v56 = vpop.eup %10437  ;;  %10443 = vtanh.f32 %v6763_v52  ;;  %v8746_v57 = vadd.f32 %v8745_v54, %v8744_v45  ;;  %v8810_v58 = vadd.f32 %v8809_v55, %v8808_v46  ;;  %v8747_v59 = vpop.f32.mrb[58].mxu0  ;;  %v6881_v52 = vadd.s32 24, %v11453_v37 }
 0x50b   : > { %v8811_v60 = vpop.f32.mrb[58].mxu1  ;;  %v8748_v61 = vpop.f32.mrb[59].mxu0  ;;  %v6813_v63 = vmul.f32 %v10438_v56, %v11546_v22  ;;  %v6882_v46 = vadd.s32 32, %v11453_v37  ;;  %v6883_v54 = vadd.s32 40, %v11453_v37  ;;  %v6884_v55 = vadd.s32 48, %v11453_v37 }
 0x50c   : > { %v8812_v62 = vpop.f32.mrb[59].mxu1  ;;  %v10440_v0 = vpop.eup %10439  ;;  %v6671_v1 = vadd.f32 %v8746_v57, %v11540_v53  ;;  %v8749_v2 = vadd.f32 %v8748_v61, %v8747_v59  ;;  %v6895_v56 = vadd.s32 %v11578_v49, %v11453_v37  ;;  %v11588_v57 = vstv %s6911_s21 }
 0x50d   : > { %v8813_v3 = vadd.f32 %v8812_v62, %v8811_v60  ;;  %6837 = vadd.xlane.f32.xlu0 %v6813_v63  ;;  %v6814_v4 = vmul.f32 %v10440_v0, %v11546_v22  ;;  %v6886_v59 = vadd.s32 64, %v11453_v37  ;;  %v6896_v60 = vadd.s32 %v11578_v49, %v6879_v50 }
 0x50e   : > { %v6768_v5 = vadd.f32 %v8810_v58, %v6671_v1  ;;  %v6674_v6 = vadd.f32 %v8749_v2, %v11540_v53  ;;  %v6885_v58 = vadd.s32 56, %v11453_v37  ;;  %v6897_v61 = vadd.s32 %v11578_v49, %v6880_v51 }
 0x50f   : > { %6839 = vadd.xlane.f32.xlu1 %v6814_v4  ;;  %v11595_v62 = vadd.s32 %v11578_v49, %v6881_v52  ;;  %v6887_v1 = vadd.s32 72, %v11453_v37  ;;  %v6899_v2 = vadd.s32 %v11578_v49, %v6882_v46  ;;  %v6889_v4 = vadd.s32 88, %v11453_v37 }
 0x510   : > { %10445 = vtanh.f32 %v6768_v5  ;;  %v6771_v7 = vadd.f32 %v8813_v3, %v6674_v6  ;;  %v8750_v8 = vpop.f32.mrb[60].mxu0  ;;  %v8814_v9 = vpop.f32.mrb[60].mxu1  ;;  %v6888_v3 = vadd.s32 80, %v11453_v37  ;;  %v6890_v5 = vadd.s32 96, %v11453_v37 }
 0x511   : > { %v8751_v10 = vpop.f32.mrb[61].mxu0  ;;  %v8815_v11 = vpop.f32.mrb[61].mxu1  ;;  %v6900_v6 = vadd.s32 %v11578_v49, %v6883_v54  ;;  %vm6913_vm2 = vcmp.lt.s32.totalorder %v6895_v56, %v11588_v57  ;;  %vm6914_vm4 = vcmp.lt.s32.totalorder %v6896_v60, %v11588_v57  ;;  %vm6915_vm5 = vcmp.lt.s32.totalorder %v6897_v61, %v11588_v57 }
 0x512   : > { %v10442_v12 = vpop.eup %10441  ;;  %10447 = vtanh.f32 %v6771_v7  ;;  %v8752_v13 = vadd.f32 %v8751_v10, %v8750_v8  ;;  %v8816_v14 = vadd.f32 %v8815_v11, %v8814_v9  ;;  %v8753_v15 = vpop.f32.mrb[62].mxu0  ;;  %v6901_v7 = vadd.s32 %v11578_v49, %v6884_v55 }
 0x513   : > { %v8817_v16 = vpop.f32.mrb[62].mxu1  ;;  %v8754_v17 = vpop.f32.mrb[63].mxu0  ;;  %v6815_v19 = vmul.f32 %v10442_v12, %v11546_v22  ;;  %v6891_v8 = vadd.s32 104, %v11453_v37  ;;  %v6902_v9 = vadd.s32 %v11578_v49, %v6885_v58  ;;  %v6903_v10 = vadd.s32 %v11578_v49, %v6886_v59  ;;  %v11609_v12 = vld [vmem:[#allocation6] ss:$0 sm:$0xff] }
 0x514   : > { %v8818_v18 = vpop.f32.mrb[63].mxu1  ;;  %v10444_v20 = vpop.eup %10443  ;;  %v6679_v21 = vadd.f32 %v8752_v13, %v11540_v53  ;;  %v8755_v23 = vadd.f32 %v8754_v17, %v8753_v15  ;;  %v6892_v11 = vadd.s32 112, %v11453_v37  ;;  %vm6916_vm6 = vcmp.lt.s32.totalorder %v11595_v62, %v11588_v57 }
 0x515   : > { %v8819_v24 = vadd.f32 %v8818_v18, %v8817_v16  ;;  %6841 = vadd.xlane.f32.xlu0 %v6815_v19  ;;  %v6816_v25 = vmul.f32 %v10444_v20, %v11546_v22  ;;  %vm6917_vm7 = vcmp.lt.s32.totalorder %v6899_v2, %v11588_v57  ;;  %v6905_v16 = vadd.s32 %v11578_v49, %v6888_v3 }
 0x516   : > { %v6776_v26 = vadd.f32 %v8816_v14, %v6679_v21  ;;  %v6682_v27 = vadd.f32 %v8755_v23, %v11540_v53  ;;  %v6904_v14 = vadd.s32 %v11578_v49, %v6887_v1  ;;  %v6906_v17 = vadd.s32 %v11578_v49, %v6889_v4 }
 0x517   : > { %6843 = vadd.xlane.f32.xlu1 %v6816_v25  ;;  %v6907_v18 = vadd.s32 %v11578_v49, %v6890_v5  ;;  %vm6918_vm8 = vcmp.lt.s32.totalorder %v6900_v6, %v11588_v57  ;;  %vm6919_vm9 = vcmp.lt.s32.totalorder %v6901_v7, %v11588_v57  ;;  %v6908_v19 = vadd.s32 %v11578_v49, %v6891_v8 }
 0x518   : > { %10449 = vtanh.f32 %v6776_v26  ;;  %v6779_v28 = vadd.f32 %v8819_v24, %v6682_v27  ;;  %v6893_v20 = vadd.s32 120, %v11453_v37  ;;  %vm6920_vm10 = vcmp.lt.s32.totalorder %v6902_v9, %v11588_v57 }
 0x519   : > { %vm6921_vm11 = vcmp.lt.s32.totalorder %v6903_v10, %v11588_v57  ;;  %v6909_v23 = vadd.s32 %v11578_v49, %v6892_v11  ;;  %vm6922_vm12 = vcmp.lt.s32.totalorder %v6904_v14, %v11588_v57  ;;  %vm6923_vm13 = vcmp.lt.s32.totalorder %v6905_v16, %v11588_v57 }
 0x51a   : > { %v10446_v29 = vpop.eup %10445  ;;  %10451 = vtanh.f32 %v6779_v28  ;;  %vm6924_vm14 = vcmp.lt.s32.totalorder %v6906_v17, %v11588_v57  ;;  %vm6925_vm15 = vcmp.lt.s32.totalorder %v6907_v18, %v11588_v57  ;;  %vm6926_vm0 = vcmp.lt.s32.totalorder %v6908_v19, %v11588_v57 }
 0x51b   : > { %v6817_v30 = vmul.f32 %v10446_v29, %v11546_v22  ;;  %vm6927_vm1 = vcmp.lt.s32.totalorder %v6909_v23, %v11588_v57 }
 0x51c   : > { %v10448_v31 = vpop.eup %10447 }
 0x51d   : > { %6845 = vadd.xlane.f32.xlu0 %v6817_v30  ;;  %v6818_v32 = vmul.f32 %v10448_v31, %v11546_v22 }
 0x51f   : > { %6847 = vadd.xlane.f32.xlu1 %v6818_v32  ;;  %v6910_v32 = vadd.s32 %v11578_v49, %v6893_v20 }
 0x522   : > { %v10450_v33 = vpop.eup %10449 }
 0x523   : > { %v6819_v34 = vmul.f32 %v10450_v33, %v11546_v22 }
 0x524   : > { %v10452_v35 = vpop.eup %10451 }
 0x525   : > { %6849 = vadd.xlane.f32.xlu0 %v6819_v34  ;;  %v6820_v53 = vmul.f32 %v10452_v35, %v11546_v22 }
 0x527   : > { %6851 = vadd.xlane.f32.xlu1 %v6820_v53 }
 0x57a   : > { %v6822_v47 = vpop.xlane.xlu0 %6821 }
 0x57b   : > { %v6860_v21 = vadd.f32 %v11609_v12, %v6822_v47 }
 0x57d   : > { %v11642_v33 = vsel %vm6913_vm2, %v6860_v21, -inf  ;;  %vm6928_vm2 = vcmp.lt.s32.totalorder %v6910_v32, %v11588_v57 }
 0x57e   : > { %v6824_v48 = vpop.xlane.xlu0 %6823 }
 0x57f   : > { %v6861_v24 = vadd.f32 %v11609_v12, %v6824_v48 }
 0x581   : > { %v11649_v53 = vsel %vm6914_vm4, %v6861_v24, -inf  ;;  %vm7082_vm4 = vcmask 0  }
 0x582   : > { %v6826_v43 = vpop.xlane.xlu1 %6825  ;;  %v6948_v60 = vsel %vm6946_vm3, %v11649_v53, -inf }
 0x583   : > { %v6862_v25 = vadd.f32 %v11609_v12, %v6826_v43 }
 0x585   : > { %v11653_v47 = vsel %vm6915_vm5, %v6862_v25, -inf  ;;  %vm10924_vm5 = vmmov (!%p8645_p8), 0  }
 0x586   : > { %v6828_v44 = vpop.xlane.xlu1 %6827  ;;  %v6949_v61 = vsel %vm6946_vm3, %v11653_v47, -inf }
 0x587   : > { %v6863_v30 = vadd.f32 %v11609_v12, %v6828_v44 }
 0x589   : > { %v11672_v46 = vsel %vm6916_vm6, %v6863_v30, -inf }
 0x58a   : > { %v6830_v45 = vpop.xlane.xlu0 %6829  ;;  %v6950_v4 = vsel %vm6946_vm3, %v11672_v46, -inf }
 0x58b   : > { %v6864_v26 = vadd.f32 %v11609_v12, %v6830_v45 }
 0x58c   : > { %v6832_v22 = vpop.xlane.xlu1 %6831 }
 0x58d   : > { %v6865_v29 = vadd.f32 %v11609_v12, %v6832_v22  ;;  %v11657_v43 = vsel %vm6917_vm7, %v6864_v26, -inf  ;;  %v6947_v22 = vsel %vm6946_vm3, %v11642_v33, -inf }
 0x58e   : > { %v6951_v55 = vsel %vm6946_vm3, %v11657_v43, -inf }
 0x58f   : > { %v11662_v50 = vsel %vm6918_vm8, %v6865_v29, -inf  ;;  %v6952_v5 = vmax.f32 %v6947_v22, %v6951_v55 }
 0x590   : > { %v6953_v62 = vsel %vm6946_vm3, %v11662_v50, -inf }
 0x591   : > { %v6954_v9 = vmax.f32 %v6948_v60, %v6953_v62 }
 0x592   : > { %v6834_v63 = vpop.xlane.xlu0 %6833 }
 0x593   : > { %v6866_v31 = vadd.f32 %v11609_v12, %v6834_v63 }
 0x594   : > { %v6836_v0 = vpop.xlane.xlu1 %6835 }
 0x595   : > { %v6867_v34 = vadd.f32 %v11609_v12, %v6836_v0  ;;  %v11676_v54 = vsel %vm6919_vm9, %v6866_v31, -inf }
 0x596   : > { %v6955_v0 = vsel %vm6946_vm3, %v11676_v54, -inf }
 0x597   : > { %v11683_v56 = vsel %vm6920_vm10, %v6867_v34, -inf  ;;  %v6956_v14 = vmax.f32 %v6949_v61, %v6955_v0 }
 0x598   : > { %v6957_v6 = vsel %vm6946_vm3, %v11683_v56, -inf }
 0x599   : > { %v6958_v20 = vmax.f32 %v6950_v4, %v6957_v6 }
 0x59a   : > { %v6838_v13 = vpop.xlane.xlu0 %6837 }
 0x59b   : > { %v6868_v48 = vadd.f32 %v11609_v12, %v6838_v13 }
 0x59c   : > { %v6840_v15 = vpop.xlane.xlu1 %6839 }
 0x59d   : > { %v6869_v35 = vadd.f32 %v11609_v12, %v6840_v15  ;;  %v11698_v63 = vsel %vm6921_vm11, %v6868_v48, -inf }
 0x59e   : > { %v6959_v10 = vsel %vm6946_vm3, %v11698_v63, -inf }
 0x59f   : > { %v11687_v58 = vsel %vm6922_vm12, %v6869_v35, -inf  ;;  %v6960_v25 = vmax.f32 %v6952_v5, %v6959_v10 }
 0x5a0   : > { %v6961_v7 = vsel %vm6946_vm3, %v11687_v58, -inf }
 0x5a1   : > { %v6962_v21 = vmax.f32 %v6954_v9, %v6961_v7 }
 0x5a2   : > { %v6842_v27 = vpop.xlane.xlu0 %6841 }
 0x5a3   : > { %v6870_v51 = vadd.f32 %v11609_v12, %v6842_v27 }
 0x5a4   : > { %v6844_v28 = vpop.xlane.xlu1 %6843 }
 0x5a5   : > { %v6871_v52 = vadd.f32 %v11609_v12, %v6844_v28  ;;  %v11704_v1 = vsel %vm6923_vm13, %v6870_v51, -inf }
 0x5a6   : > { %v6963_v15 = vsel %vm6946_vm3, %v11704_v1, -inf }
 0x5a7   : > { %v11708_v2 = vsel %vm6924_vm14, %v6871_v52, -inf  ;;  %v6964_v28 = vmax.f32 %v6956_v14, %v6963_v15 }
 0x5a8   : > { %v6965_v16 = vsel %vm6946_vm3, %v11708_v2, -inf }
 0x5a9   : > { %v6966_v29 = vmax.f32 %v6958_v20, %v6965_v16 }
 0x5aa   : > { %v6846_v44 = vpop.xlane.xlu0 %6845 }
 0x5ab   : > { %v6872_v59 = vadd.f32 %v11609_v12, %v6846_v44 }
 0x5ac   : > { %v6848_v49 = vpop.xlane.xlu1 %6847 }
 0x5ad   : > { %v6873_v45 = vadd.f32 %v11609_v12, %v6848_v49  ;;  %v11724_v11 = vsel %vm6925_vm15, %v6872_v59, -inf  ;;  %v6945_v59 = vld [vmem:[#allocation2] sm:$0x1] }
 0x5ae   : > { %v6967_v26 = vsel %vm6946_vm3, %v11724_v11, -inf }
 0x5af   : > { %v11712_v3 = vsel %vm6926_vm0, %v6873_v45, -inf  ;;  %v6968_v34 = vmax.f32 %v6960_v25, %v6967_v26 }
 0x5b0   : > { %v6969_v17 = vsel %vm6946_vm3, %v11712_v3, -inf }
 0x5b1   : > { %v6970_v30 = vmax.f32 %v6962_v21, %v6969_v17 }
 0x5b2   : > { %v6850_v8 = vpop.xlane.xlu0 %6849 }
 0x5b3   : > { %v6874_v13 = vadd.f32 %v11609_v12, %v6850_v8  ;;  %v6975_v48 = vmax.f32 %v6968_v34, %v6970_v30 }
 0x5b4   : > { %v6852_v19 = vpop.xlane.xlu1 %6851 }
 0x5b5   : > { %v11735_v18 = vsel %vm6927_vm1, %v6874_v13, -inf  ;;  %v6875_v24 = vadd.f32 %v11609_v12, %v6852_v19  ;;  %v10920_v19 = vmov 0.0  }
 0x5b6   : > { %v6971_v27 = vsel %vm6946_vm3, %v11735_v18, -inf  ;;  %7191 = vmatprep.mubr.f32.mxu0 %v10920_v19  ;;  %7262 = vmatprep.mubr.f32.mxu1 %v10920_v19 }
 0x5b7   : > { %v11744_v31 = vsel %vm6928_vm2, %v6875_v24, -inf  ;;  %v6972_v35 = vmax.f32 %v6964_v28, %v6971_v27 }
 0x5b8   : > { %v6973_v23 = vsel %vm6946_vm3, %v11744_v31, -inf }
 0x5b9   : > { %v6974_v12 = vmax.f32 %v6966_v29, %v6973_v23 }
 0x5bb   : > { %v6976_v44 = vmax.f32 %v6972_v35, %v6974_v12 }
 0x5bd   : > { %v6977_v49 = vmax.f32 %v6975_v48, %v6976_v44 }
 0x5bf   : > { %v6978_v51 = vrot.slane %v6977_v49, 4 }
 0x5c1   : > { %v6979_v52 = vmax.f32 %v6977_v49, %v6978_v51 }
 0x5c3   : > { %v6980_v45 = vrot.slane %v6979_v52, 2 }
 0x5c5   : > { %v6981_v22 = vmax.f32 %v6979_v52, %v6980_v45 }
 0x5c7   : > { %v6982_v55 = vrot.slane %v6981_v22, 1 }
 0x5c9   : > { %v6983_v60 = vmax.f32 %v6981_v22, %v6982_v55 }
 0x5cb   : > { %v6984_v57 = vmax.f32 %v6945_v59, %v6983_v60 }
 0x5cd   : > { %v6985_v32 = vsub.f32 %v6945_v59, %v6984_v57  ;;  %v11749_v61 = vrot.slane %v6984_v57, %v11456_v38  ;;  %7304 = vst.msk [vmem:[#allocation2] sm:$0x1] %vm7082_vm4, %v6984_v57 }
 0x5cf   : > { %v6986_v62 = vmul.f32 1.442695, %v6985_v32  ;;  %v6994_v0 = vsub.f32 %v11642_v33, %v11749_v61  ;;  %v6995_v4 = vsub.f32 %v11649_v53, %v11749_v61  ;;  %v6996_v5 = vsub.f32 %v11653_v47, %v11749_v61 }
 0x5d0   : > { %v6997_v6 = vsub.f32 %v11672_v46, %v11749_v61  ;;  %v6998_v7 = vsub.f32 %v11657_v43, %v11749_v61  ;;  %v6999_v13 = vsub.f32 %v11662_v50, %v11749_v61  ;;  %v7000_v53 = vsub.f32 %v11676_v54, %v11749_v61 }
 0x5d1   : > { %10453 = vpow2.f32 %v6986_v62  ;;  %v7010_v8 = vmul.f32 1.442695, %v6994_v0  ;;  %v7012_v9 = vmul.f32 1.442695, %v6995_v4  ;;  %v7014_v10 = vmul.f32 1.442695, %v6996_v5 }
 0x5d2   : > { %v7016_v33 = vmul.f32 1.442695, %v6997_v6  ;;  %v7018_v47 = vmul.f32 1.442695, %v6998_v7  ;;  %v7001_v46 = vsub.f32 %v11683_v56, %v11749_v61  ;;  %v7020_v14 = vmul.f32 1.442695, %v6999_v13 }
 0x5d3   : > { %10455 = vpow2.f32 %v7010_v8  ;;  %v7002_v15 = vsub.f32 %v11698_v63, %v11749_v61  ;;  %v7022_v50 = vmul.f32 1.442695, %v7000_v53  ;;  %v7003_v54 = vsub.f32 %v11687_v58, %v11749_v61 }
 0x5d4   : > { %10457 = vpow2.f32 %v7012_v9  ;;  %v7024_v16 = vmul.f32 1.442695, %v7001_v46  ;;  %v7004_v17 = vsub.f32 %v11704_v1, %v11749_v61  ;;  %v7005_v63 = vsub.f32 %v11708_v2, %v11749_v61 }
 0x5d5   : > { %10459 = vpow2.f32 %v7014_v10  ;;  %v7026_v56 = vmul.f32 1.442695, %v7002_v15  ;;  %v7028_v24 = vmul.f32 1.442695, %v7003_v54  ;;  %v7006_v1 = vsub.f32 %v11724_v11, %v11749_v61 }
 0x5d6   : > { %10461 = vpow2.f32 %v7016_v33  ;;  %v7030_v28 = vmul.f32 1.442695, %v7004_v17  ;;  %v7007_v2 = vsub.f32 %v11712_v3, %v11749_v61  ;;  %v7032_v34 = vmul.f32 1.442695, %v7005_v63 }
 0x5d7   : > { %10463 = vpow2.f32 %v7018_v47  ;;  %v7008_v44 = vsub.f32 %v11735_v18, %v11749_v61  ;;  %v7034_v11 = vmul.f32 1.442695, %v7006_v1  ;;  %v7009_v45 = vsub.f32 %v11744_v31, %v11749_v61 }
 0x5d8   : > { %10465 = vpow2.f32 %v7020_v14  ;;  %v7036_v3 = vmul.f32 1.442695, %v7007_v2  ;;  %v10921_v2 = vmov 1966171168  }
 0x5d9   : > { %10467 = vpow2.f32 %v7022_v50  ;;  %v7038_v60 = vmul.f32 1.442695, %v7008_v44  ;;  %v7040_v62 = vmul.f32 1.442695, %v7009_v45 }
 0x5da   : > { %10469 = vpow2.f32 %v7024_v16 }
 0x5db   : > { %v11768_v43 = vpop.eup %10453  ;;  %10471 = vpow2.f32 %v7026_v56 }
 0x5dc   : > { %7087 = vperm.xlu1 %9619, %v11768_v43   ;;  %10473 = vpow2.f32 %v7028_v24 }
 0x5dd   : > { %v10456_v20 = vpop.eup %10455  ;;  %10475 = vpow2.f32 %v7030_v28 }
 0x5de   : > { %v10458_v21 = vpop.eup %10457  ;;  %7095 = vxpose.xlu0.b32.start [1/16] (narrow) %v10456_v20, 8  ;;  %v7044_v58 = vsel %vm6946_vm3, %v10456_v20, 0.0  ;;  %10477 = vpow2.f32 %v7032_v34  ;;  %v7276_v34 = vunpack.c.l.s4 %v10921_v2 }
 0x5df   : > { %v10460_v25 = vpop.eup %10459  ;;  %v7045_v26 = vsel %vm6946_vm3, %v10458_v21, 0.0  ;;  %10479 = vpow2.f32 %v7034_v11 }
 0x5e0   : > { %v10462_v27 = vpop.eup %10461  ;;  %v7046_v29 = vadd.f32 %v7045_v26, %v7044_v58  ;;  %v7047_v30 = vsel %vm6946_vm3, %v10460_v25, 0.0  ;;  %10481 = vpow2.f32 %v7036_v3 }
 0x5e1   : > { %v10464_v23 = vpop.eup %10463  ;;  %v7049_v12 = vsel %vm6946_vm3, %v10462_v27, 0.0  ;;  %10483 = vpow2.f32 %v7038_v60 }
 0x5e2   : > { %v7048_v35 = vadd.f32 %v7047_v30, %v7046_v29  ;;  %7096 = vxpose.xlu0.b32.cont [2/16] (narrow) %v10458_v21, 8  ;;  %v10466_v48 = vpop.eup %10465  ;;  %v7051_v51 = vsel %vm6946_vm3, %v10464_v23, 0.0  ;;  %10485 = vpow2.f32 %v7040_v62  ;;  %v10922_v62 = vmov (!%p8645_p8), 0  }
 0x5e3   : > { %v10468_v52 = vpop.eup %10467  ;;  %v7053_v55 = vsel %vm6946_vm3, %v10466_v48, 0.0 }
 0x5e4   : > { %v7050_v49 = vadd.f32 %v7049_v12, %v7048_v35  ;;  %v10470_v59 = vpop.eup %10469  ;;  %v7055_v18 = vsel %vm6946_vm3, %v10468_v52, 0.0  ;;  %v7277_v35 = vunpack.c.0.s8 %v7276_v34 }
 0x5e5   : > { %v10472_v32 = vpop.eup %10471  ;;  %v7057_v4 = vsel %vm6946_vm3, %v10470_v59, 0.0 }
 0x5e6   : > { %v7052_v22 = vadd.f32 %v7051_v51, %v7050_v49  ;;  %7097 = vxpose.xlu0.b32.cont [3/16] (narrow) %v10460_v25, 8  ;;  %v10474_v31 = vpop.eup %10473  ;;  %v7059_v5 = vsel %vm6946_vm3, %v10472_v32, 0.0  ;;  %v7280_v44 = vsub.s32 %v7277_v35, %v11453_v37  ;;  %v10524_v37 = vld [vmem:[#allocation21 + $0x20] sm:$0xff] (!%p8645_p8)  }
 0x5e7   : > { %v10476_v6 = vpop.eup %10475  ;;  %v7061_v8 = vsel %vm6946_vm3, %v10474_v31, 0.0 }
 0x5e8   : > { %v7054_v57 = vadd.f32 %v7053_v55, %v7052_v22  ;;  %v10478_v9 = vpop.eup %10477  ;;  %v7063_v13 = vsel %vm6946_vm3, %v10476_v6, 0.0 }
 0x5e9   : > { %v10480_v33 = vpop.eup %10479  ;;  %v7065_v47 = vsel %vm6946_vm3, %v10478_v9, 0.0 }
 0x5ea   : > { %v7056_v0 = vadd.f32 %v7055_v18, %v7054_v57  ;;  %7098 = vxpose.xlu0.b32.cont [4/16] (narrow) %v10462_v27, 8  ;;  %v10482_v46 = vpop.eup %10481  ;;  %v7067_v15 = vsel %vm6946_vm3, %v10480_v33, 0.0  ;;  %v7042_v27 = vld [vmem:[#allocation3] sm:$0x1] }
 0x5eb   : > { %v10484_v50 = vpop.eup %10483  ;;  %v7069_v16 = vsel %vm6946_vm3, %v10482_v46, 0.0  ;;  %v7043_v28 = vmul.f32 %v11768_v43, %v7042_v27  ;;  %v10519_v27 = vld [vmem:[#allocation18 + $0xb8] sm:$0xff] (!%p8645_p8)  }
 0x5ec   : > { %v7058_v61 = vadd.f32 %v7057_v4, %v7056_v0  ;;  %v10486_v17 = vpop.eup %10485  ;;  %v7071_v19 = vsel %vm6946_vm3, %v10484_v50, 0.0  ;;  %v10489_v0 = vld [vmem:[#allocation18 + $0xc0] sm:$0xff] (!%p8645_p8)  }
 0x5ed   : > { %v7073_v21 = vsel %vm6946_vm3, %v10486_v17, 0.0  ;;  %vm7301_vm3 = vcmp.lt.s32.totalorder %v1201_v36, 512  ;;  %v10490_v4 = vld [vmem:[#allocation18] sm:$0xff] (!%p8645_p8)   ;;  %8842 = vmatprep.subr.bf16.mxu1 (!%p8645_p8), %v10489_v0  ;;  %v10494_v36 = vld [vmem:[#allocation18 + $0x8] sm:$0xff] (!%p8645_p8)  }
 0x5ee   : > { %v7060_v7 = vadd.f32 %v7059_v5, %v7058_v61  ;;  %7099 = vxpose.xlu0.b32.cont [5/16] (narrow) %v10464_v23, 8  ;;  %v10492_v61 = vld [vmem:[#allocation18 + $0x48] sm:$0xff] (!%p8645_p8)  }
 0x5ef   : > { %v10493_v5 = vld [vmem:[#allocation18 + $0xc8] sm:$0xff] (!%p8645_p8)  }
 0x5f0   : > { %v7062_v10 = vadd.f32 %v7061_v8, %v7060_v7  ;;  %v10496_v7 = vld [vmem:[#allocation18 + $0x50] sm:$0xff] (!%p8645_p8)  }
 0x5f1   : > { %v10497_v8 = vld [vmem:[#allocation18 + $0xd0] sm:$0xff] (!%p8645_p8)  }
 0x5f2   : > { %v7064_v53 = vadd.f32 %v7063_v13, %v7062_v10  ;;  %7100 = vxpose.xlu0.b32.cont [6/16] (narrow) %v10466_v48, 8  ;;  %v10498_v10 = vld [vmem:[#allocation18 + $0x10] sm:$0xff] (!%p8645_p8)  }
 0x5f3   : > { %v10499_v13 = vld [vmem:[#allocation18 + $0x90] sm:$0xff] (!%p8645_p8)  }
 0x5f4   : > { %v7066_v14 = vadd.f32 %v7065_v47, %v7064_v53  ;;  %v10501_v53 = vld [vmem:[#allocation18 + $0xd8] sm:$0xff] (!%p8645_p8)  }
 0x5f5   : > { %v10502_v47 = vld [vmem:[#allocation18 + $0x18] sm:$0xff] (!%p8645_p8)  }
 0x5f6   : > { %v7068_v54 = vadd.f32 %v7067_v15, %v7066_v14  ;;  %7101 = vxpose.xlu0.b32.cont [7/16] (narrow) %v10468_v52, 8  ;;  %v10504_v14 = vld [vmem:[#allocation18 + $0x60] sm:$0xff] (!%p8645_p8)  }
 0x5f7   : > { %v10505_v15 = vld [vmem:[#allocation18 + $0xe0] sm:$0xff] (!%p8645_p8)  }
 0x5f8   : > { %v7070_v56 = vadd.f32 %v7069_v16, %v7068_v54  ;;  %v10507_v54 = vld [vmem:[#allocation18 + $0xa0] sm:$0xff] (!%p8645_p8)   ;;  %v10508_v16 = vld [vmem:[#allocation18 + $0x68] sm:$0xff] (!%p8645_p8)  }
 0x5fa   : > { %v7072_v20 = vadd.f32 %v7071_v19, %v7070_v56  ;;  %7102 = vxpose.xlu0.b32.cont [8/16] (narrow) %v10470_v59, 8  ;;  %v10510_v56 = vld [vmem:[#allocation18 + $0x28] sm:$0xff] (!%p8645_p8)  }
 0x5fb   : > { %v10511_v19 = vld [vmem:[#allocation18 + $0xa8] sm:$0xff] (!%p8645_p8)  }
 0x5fc   : > { %v7074_v63 = vadd.f32 %v7073_v21, %v7072_v20  ;;  %v10512_v20 = vld [vmem:[#allocation18 + $0x70] sm:$0xff] (!%p8645_p8)  }
 0x5fd   : > { %v10513_v21 = vld [vmem:[#allocation18 + $0xf0] sm:$0xff] (!%p8645_p8)  }
 0x5fe   : > { %v7075_v24 = vrot.slane %v7074_v63, 4  ;;  %7103 = vxpose.xlu0.b32.cont [9/16] (narrow) %v10472_v32, 8  ;;  %v10488_v32 = vld [vmem:[#allocation18 + $0x40] sm:$0xff] (!%p8645_p8)  }
 0x5ff   : > { %8820 = vmatprep.subr.bf16.mxu0 (!%p8645_p8), %v10488_v32 }
 0x600   : > { %v7076_v58 = vadd.f32 %v7075_v24, %v7074_v63  ;;  %v10514_v63 = vld [vmem:[#allocation18 + $0x30] sm:$0xff] (!%p8645_p8)  }
 0x601   : > { %v10515_v24 = vld [vmem:[#allocation18 + $0xb0] sm:$0xff] (!%p8645_p8)  }
 0x602   : > { %v7077_v25 = vrot.slane %v7076_v58, 2  ;;  %7104 = vxpose.xlu0.b32.cont [10/16] (narrow) %v10474_v31, 8  ;;  %v10491_v31 = vld [vmem:[#allocation18 + $0x80] sm:$0xff] (!%p8645_p8)  }
 0x604   : > { %v7078_v26 = vadd.f32 %v7077_v25, %v7076_v58  ;;  %v10516_v58 = vld [vmem:[#allocation18 + $0x78] sm:$0xff] (!%p8645_p8)  }
 0x605   : > { %v10517_v25 = vld [vmem:[#allocation18 + $0xf8] sm:$0xff] (!%p8645_p8)  }
 0x606   : > { %v7079_v1 = vrot.slane %v7078_v26, 1  ;;  %7105 = vxpose.xlu0.b32.cont [11/16] (narrow) %v10476_v6, 8  ;;  %v10495_v6 = vld [vmem:[#allocation18 + $0x88] sm:$0xff] (!%p8645_p8)  }
 0x608   : > { %v7080_v29 = vadd.f32 %v7079_v1, %v7078_v26  ;;  %v10518_v26 = vld [vmem:[#allocation18 + $0x38] sm:$0xff] (!%p8645_p8)   ;;  %v10923_v1 = vmov (!%p8645_p8), 0.0  }
 0x60a   : > { %v7081_v30 = vadd.f32 %v7080_v29, %v7043_v28  ;;  %7106 = vxpose.xlu0.b32.cont [12/16] (narrow) %v10478_v9, 8 }
 0x60c   : > { %7083 = vst.msk [vmem:[#allocation3] sm:$0x1] %vm7082_vm4, %v7081_v30 }
 0x60e   : > { %7107 = vxpose.xlu0.b32.cont [13/16] (narrow) %v10480_v33, 8  ;;  %v10500_v33 = vld [vmem:[#allocation18 + $0x58] sm:$0xff] (!%p8645_p8)  }
 0x612   : > { %7108 = vxpose.xlu0.b32.cont [14/16] (narrow) %v10482_v46, 8  ;;  %v10503_v46 = vld [vmem:[#allocation18 + $0x98] sm:$0xff] (!%p8645_p8)  }
 0x613   : > { %v7310_v18 = vld [vmem:[#allocation3] sm:$0x1] (!%p8645_p8) }
 0x614   : > { %10528 = vrcp.f32 (!%p8645_p8), %v7310_v18 }
 0x616   : > { %7109 = vxpose.xlu0.b32.cont [15/16] (narrow) %v10484_v50, 8  ;;  %v10506_v50 = vld [vmem:[#allocation18 + $0x20] sm:$0xff] (!%p8645_p8)  }
 0x61a   : > { %7110 = vxpose.xlu0.b32.end [16/16] (narrow) %v10486_v17, 8  ;;  %v10509_v17 = vld [vmem:[#allocation18 + $0xe8] sm:$0xff] (!%p8645_p8)  }
 0x61e   : > { %v10529_v9 = vpop.eup (!%p8645_p8), %10528 }
 0x643   : > { %9620 = vset.pattern.permute.xlu0 %v10919_v40  ;;  %v7084_v40 = vld [vmem:[#allocation4] sm:$0xf] }
 0x644   : > { %10487 = vset.pattern.permute.xlu0 (!%p8645_p8), %v10922_v62 }
 0x645   : > { %7314 = vperm.xlu0 (!%p8645_p8), %10487, %v10529_v9  }
 0x65b   : > { %v7088_v12 = vpop.permute.xlu1 %7087 }
 0x65c   : > { %v7093_v45 = vrot.slane %v7088_v12, %v11456_v38 }
 0x65e   : > { %v7111_v23 = vpop.trf.xlu0  ;;  %v7094_v59 = vmul.f32 %v7093_v45, %v7084_v40 }
 0x65f   : > { %7192 = vmatmul.mubr.f32.vlgmr.msra.gmra.mrb[64].mxu0 %v7111_v23  ;;  %7263 = vmatmul.mubr.f32.vlgmr.msra.gmra.mrb[64].mxu1 %v7111_v23 }
 0x660   : > { %8821 = vmatpush3.bf16.msra.mxu0 (!%p8645_p8), %v10490_v4  ;;  %8843 = vmatpush3.bf16.msra.mxu1 (!%p8645_p8), %v10491_v31 }
 0x661   : > { %8822 = vmatprep.subr.bf16.mxu0 (!%p8645_p8), %v10492_v61  ;;  %8844 = vmatprep.subr.bf16.mxu1 (!%p8645_p8), %v10493_v5  ;;  %v7702_v5 = vld [vmem:[#allocation22] sm:$0x1] (!%p8645_p8) }
 0x664   : > { %8823 = vmatpush3.bf16.msra.mxu0 (!%p8645_p8), %v10494_v36  ;;  %8845 = vmatpush3.bf16.msra.mxu1 (!%p8645_p8), %v10495_v6 }
 0x665   : > { %8824 = vmatprep.subr.bf16.mxu0 (!%p8645_p8), %v10496_v7  ;;  %8846 = vmatprep.subr.bf16.mxu1 (!%p8645_p8), %v10497_v8 }
 0x668   : > { %8825 = vmatpush3.bf16.msra.mxu0 (!%p8645_p8), %v10498_v10  ;;  %8847 = vmatpush3.bf16.msra.mxu1 (!%p8645_p8), %v10499_v13 }
 0x669   : > { %8826 = vmatprep.subr.bf16.mxu0 (!%p8645_p8), %v10500_v33  ;;  %8848 = vmatprep.subr.bf16.mxu1 (!%p8645_p8), %v10501_v53 }
 0x66c   : > { %8827 = vmatpush3.bf16.msra.mxu0 (!%p8645_p8), %v10502_v47  ;;  %8849 = vmatpush3.bf16.msra.mxu1 (!%p8645_p8), %v10503_v46 }
 0x66d   : > { %8828 = vmatprep.subr.bf16.mxu0 (!%p8645_p8), %v10504_v14  ;;  %8850 = vmatprep.subr.bf16.mxu1 (!%p8645_p8), %v10505_v15 }
 0x670   : > { %8829 = vmatpush3.bf16.msra.mxu0 (!%p8645_p8), %v10506_v50  ;;  %8851 = vmatpush3.bf16.msra.mxu1 (!%p8645_p8), %v10507_v54 }
 0x671   : > { %8830 = vmatprep.subr.bf16.mxu0 (!%p8645_p8), %v10508_v16  ;;  %8852 = vmatprep.subr.bf16.mxu1 (!%p8645_p8), %v10509_v17 }
 0x674   : > { %8831 = vmatpush3.bf16.msra.mxu0 (!%p8645_p8), %v10510_v56  ;;  %8853 = vmatpush3.bf16.msra.mxu1 (!%p8645_p8), %v10511_v19 }
 0x675   : > { %8832 = vmatprep.subr.bf16.mxu0 (!%p8645_p8), %v10512_v20  ;;  %8854 = vmatprep.subr.bf16.mxu1 (!%p8645_p8), %v10513_v21 }
 0x678   : > { %8833 = vmatpush3.bf16.msra.mxu0 (!%p8645_p8), %v10514_v63  ;;  %8855 = vmatpush3.bf16.msra.mxu1 (!%p8645_p8), %v10515_v24 }
 0x679   : > { %8834 = vmatprep.subr.bf16.mxu0 (!%p8645_p8), %v10516_v58  ;;  %8856 = vmatprep.subr.bf16.mxu1 (!%p8645_p8), %v10517_v25 }
 0x67c   : > { %8835 = vmatpush3.bf16.msra.mxu0 (!%p8645_p8), %v10518_v26  ;;  %8857 = vmatpush3.bf16.msra.mxu1 (!%p8645_p8), %v10519_v27 }
 0x67d   : > { %8873 = vmatprep.subr.bf16.mxu0 (!%p8645_p8), %v10923_v1 }
 0x6c4   : > { %v7315_v28 = vpop.permute.xlu0 (!%p8645_p8), %7314 }
 0x6c5   : > { %v7320_v30 = vrot.slane (!%p8645_p8), %v7315_v28, %v11456_v38 }
 0x732   : > { %v7193_v48 = vpop.f32.mrb[64].mxu0  ;;  %v7264_v43 = vpop.f32.mrb[64].mxu1 }
 0x733   : > { %v7195_v11 = vpop.f32.mrb[65].mxu0  ;;  %v7266_v49 = vpop.f32.mrb[65].mxu1 }
 0x734   : > { %v7273_v51 = vcombine.low %v7193_v48, %v7195_v11  ;;  %v7274_v52 = vcombine.low %v7264_v43, %v7266_v49  ;;  %v10520_v49 = vld [vmem:[#allocation21] sm:$0xff] (!%p8645_p8)  }
 0x736   : > { %v7281_v3 = vrot.slane %v7273_v51, %v7280_v44  ;;  %v7288_v22 = vrot.slane %v7274_v52, %v7280_v44  ;;  %v10521_v51 = vld [vmem:[#allocation21 + $0x8] sm:$0xff] (!%p8645_p8)   ;;  %v10527_v52 = vld [vmem:[#allocation21 + $0x38] sm:$0xff] (!%p8645_p8)  }
 0x738   : > { %v7289_v55 = vcombine.low %v7281_v3, %v7288_v22  ;;  %7308 = sbr.rel (%p8645_p8) target bundleno = 2335 (0x91f), region = 116  ;;  %v7411_v22 = vld [vmem:[#allocation19] sm:$0x1] (!%p8645_p8) }
 0x73a   : > { %v7296_v60 = vrot.slane %v7289_v55, %v7280_v44 }
 0x73c   : > { %v7298_v57 = vadd.f32 %v7296_v60, %v7094_v59 }
 0x73e   : > { %7303 = vst.msk [vmem:[#allocation4] sm:$0xf] %vm7301_vm3, %v7298_v57 }
 0x745   : > { %v7309_v29 = vld [vmem:[#allocation4] sm:$0xf] }
 0x746   : > { %v7321_v23 = vmul.f32 %v7320_v30, %v7309_v29 }
 0x748   : > { %v7330_v2 = vrot.slane %v7321_v23, %v1207_v41  ;;  %v7338_v34 = vrot.slane %v7321_v23, %v1215_v42  ;;  %v7326_v35 = vrot.slane %v7321_v23, %v11456_v38  ;;  %v7334_v12 = vrot.slane %v7321_v23, %v1211_v39  ;;  %v10522_v41 = vld [vmem:[#allocation21 + $0x10] sm:$0xff]   ;;  %v10523_v38 = vld [vmem:[#allocation21 + $0x18] sm:$0xff]   ;;  %v10525_v39 = vld [vmem:[#allocation21 + $0x28] sm:$0xff]  }
 0x749   : > { %v10526_v42 = vld [vmem:[#allocation21 + $0x30] sm:$0xff]  }
 0x74a   : > { %v7344_v48 = vpack.c.bf16 %v7330_v2, %v7330_v2  ;;  %v7346_v43 = vpack.c.bf16 %v7338_v34, %v7338_v34  ;;  %v7343_v44 = vpack.c.bf16 %v7326_v35, %v7326_v35  ;;  %v7345_v11 = vpack.c.bf16 %v7334_v12, %v7334_v12 }
 0x74c   : > { %7636 = vmatprep.mubr.bf16.mxu0 %v7344_v48  ;;  %7676 = vmatprep.mubr.bf16.mxu1 %v7346_v43 }
 0x74d   : > { %7637 = vmatmul.mubr.bf16.vlgmr.msra.gmra.mrb[0].mxu0 %v7343_v44  ;;  %7677 = vmatmul.mubr.bf16.vlgmr.msra.gmra.mrb[0].mxu1 %v7345_v11 }
 0x74e   : > { %8874 = vmatpush3.bf16.msra.mxu0 %v10520_v49  ;;  %8889 = vmatprep.mubr.msk.bf16.mxu0 %vm10924_vm5, %v10923_v1 }
 0x74f   : > { %8875 = vmatprep.subr.bf16.mxu0 %v10923_v1 }
 0x752   : > { %8876 = vmatpush3.bf16.msra.mxu0 %v10521_v51 }
 0x753   : > { %8877 = vmatprep.subr.bf16.mxu0 %v10923_v1 }
 0x756   : > { %8878 = vmatpush3.bf16.msra.mxu0 %v10522_v41 }
 0x757   : > { %8879 = vmatprep.subr.bf16.mxu0 %v10923_v1 }
 0x75a   : > { %8880 = vmatpush3.bf16.msra.mxu0 %v10523_v38 }
 0x75b   : > { %8881 = vmatprep.subr.bf16.mxu0 %v10923_v1 }
 0x75e   : > { %8882 = vmatpush3.bf16.msra.mxu0 %v10524_v37 }
 0x75f   : > { %8883 = vmatprep.subr.bf16.mxu0 %v10923_v1 }
 0x762   : > { %8884 = vmatpush3.bf16.msra.mxu0 %v10525_v39 }
 0x763   : > { %8885 = vmatprep.subr.bf16.mxu0 %v10923_v1 }
 0x766   : > { %8886 = vmatpush3.bf16.msra.mxu0 %v10526_v42 }
 0x767   : > { %8887 = vmatprep.subr.bf16.mxu0 %v10923_v1 }
 0x76a   : > { %8888 = vmatpush3.bf16.msra.mxu0 %v10527_v52 }
 0x820   : > { %v8836_v45 = vpop.f32.mrb[0].mxu0  ;;  %v8858_v3 = vpop.f32.mrb[0].mxu1 }
 0x821   : > { %v8837_v40 = vpop.f32.mrb[1].mxu0  ;;  %v8859_v55 = vpop.f32.mrb[1].mxu1 }
 0x822   : > { %v8838_v59 = vadd.f32 %v8837_v40, %v8836_v45  ;;  %v8860_v60 = vadd.f32 %v8859_v55, %v8858_v3  ;;  %v8839_v57 = vpop.f32.mrb[2].mxu0  ;;  %v8861_v18 = vpop.f32.mrb[2].mxu1 }
 0x823   : > { %v8840_v32 = vpop.f32.mrb[3].mxu0  ;;  %v8862_v62 = vpop.f32.mrb[3].mxu1 }
 0x824   : > { %v7639_v0 = vadd.f32 %v8838_v59, %v7411_v22 }
 0x826   : > { %v7679_v4 = vadd.f32 %v8860_v60, %v7639_v0 }
 0x828   : > { %v7684_v31 = vmax.f32 %v7679_v4, 0.0 }
 0x82a   : > { %v7685_v61 = vpack.c.bf16 %v7684_v31, %v7684_v31 }
 0x82c   : > { %8890 = vmatmul.mubr.bf16.vlgmr.msra.gmra.mrb[4].mxu0 %v7685_v61 }
 0x8ff   : > { %v7785_v36 = vpop.f32.mrb[4].mxu0 }
 0x900   : > { %v7786_v6 = vadd.f32 %v7785_v36, %v7702_v5  ;;  %v8891_v7 = vpop.f32.mrb[5].mxu0 }
 0x901   : > { %v7788_v8 = vpop.f32.mrb[6].mxu0 }
 0x902   : > { %v7791_v9 = vsub.f32 0.0, %v7786_v6  ;;  %v8892_v10 = vpop.f32.mrb[7].mxu0 }
 0x904   : > { %v7792_v13 = vmul.f32 1.442695, %v7791_v9 }
 0x906   : > { %10530 = vpow2.f32 %v7792_v13 }
 0x910   : > { %v10531_v33 = vpop.eup %10530 }
 0x911   : > { %v7794_v53 = vadd.f32 1.0, %v10531_v33 }
 0x913   : > { %10532 = vrcp.f32 %v7794_v53 }
 0x91d   : > { %v10533_v47 = vpop.eup %10532 }
 0x91e   : > { %7797 = vst [vmem:[#allocation24] sm:$0x1] %v10533_v47 }
 0x91f PF: > { %p9562_p1 = scmp.eq.s32.totalorder %s11018_s29, 2  ;;  %s10925_s20 = smov [#allocation24]  }
 0x920   : > { %s7805_s22 = sshll.u32 %s10925_s20, 4  ;;  %s7806_s22 = int_to_ptr.vmem [resolvable:$true] %s7805_s22 }
 0x921   : > { %s10816_s18 = scalar_lea.vmem %s7806_s22, 16  ;;  %s10822_s0 = scalar_lea.vmem %s7806_s22, 32 }
 0x922   : > { %p10817_p7 = scmp.ne.s32.totalorder %s7806_s22, %s10816_s18  ;;  %p10823_p4 = scmp.lt.s32.totalorder %s7806_s22, %s7806_s22 }
 0x923   : > { %p10824_p11 = scmp.lt.s32.totalorder %s10822_s0, %s10816_s18 }
 0x924   : > { %p10818_p3 = pnand %p10817_p7, %p9562_p1 }
 0x925   : > { %p10825_p12 = por %p10824_p11, %p10823_p4 }
 0x926   : > { %p10819_p6 = pneg %p10818_p3 }
 0x928   : > { %p10826_p13 = pnand %p10825_p12, %p10819_p6 }
 0x92a   : > { %10829 = shalt.err (!%p10826_p13)
}
 0x92b   : > { %s11897_s14 = sld [smem:[#allocation34_spill]] }
 0x931   : > { %s10830_s16 = scalar_lea.hbm %s11897_s14, 16 }
 0x932   : > { %p10831_p0 = scmp.ne.s32.totalorder %s11897_s14, %s10830_s16  ;;  %p10836_p9 = scmp.lt.u32.totalorder %s10830_s16, %s11897_s14 }
 0x934   : > { %p10832_p2 = pnand %p10831_p0, %p9562_p1 }
 0x936   : > { %p10833_p5 = pneg %p10832_p2 }
 0x938   : > { %p10838_p10 = pnand %p10836_p9, %p10833_p5 }
 0x93a   : > { %10841 = shalt.err (!%p10838_p10)
}
 0x93b   : > { %9508 = dma.vmem_to_hbm [thread:$0]  (%p9562_p1), %s7806_s22, 16, %s11897_s14, [#allocation9]  }
 0x93c   : > { %10883 = dma.done.wait (%p9562_p1), [#allocation9], 16  }
 0x93d   : > { %10885 = vsyncadd (%p9562_p1), [#allocation9], 4294967280 }
 0x93e PF: > { %p31_p8 = scmp.ge.s32.totalorder %s11231_s23, 5   ;;  %s11898_s25 = smov %s10892_s26 }
 0x93f   : > { %s11899_s26 = smov %s10896_s27  ;;  %s11900_s27 = smov %s11242_s19 }
 0x940   : > { %s11901_s0 = smov %s11231_s23  ;;  %33 = sbr.rel (!%p31_p8) target bundleno = 13 (0xd), region = 149 }
 0x947   :  { %7818 = vsyncpa [#allocation8], 1 }
 0x948   :  { %7820 = vsyncpa [#allocation8 + $0x1], 1 }
 0x949   :  { %7821 = vsyncpa [#allocation11], 1 }
 0x94a   :  { %7822 = vsyncpa [#allocation14], 1 }
 0x94b   :  { %7823 = vsyncpa [#allocation17], 1 }
 0x94c   :  { %7824 = vsyncpa [#allocation20], 1 }
 0x94d   :  { %7825 = vsyncpa [#allocation23], 1 }
 0x94e   :  { %7826 = vsyncpa [#allocation9], 1 }
 0x94f   :  { %7828 = vsyncpa [#allocation9 + $0x1], 1 }

</bundles_post_ra>
